<compile_context>
chip_gen: v6e
topology: v6e:2x2x1
jax: 0.10.0
libtpu: 0.0.40
codegen_flags: <defaults>
</compile_context>

<pallas_src>
import functools
import math

import numpy as np
import jax
import jax.numpy as jnp
from jax.experimental import pallas as pl
from jax.experimental.pallas import tpu as pltpu


# --------------------------------------------------------------------------
# Fused Pallas kernel: all layers, both directions, whole sequence.
# --------------------------------------------------------------------------
def _onlstm_stack_kernel(x2_ref, wih_ref, whh_ref, bias_ref, mcomb_ref,
                         out_ref, ti_sc, buf_sc, *,
                         T, Bd, Beff, H, n_chunk, L, bidirectional):
    """x2_ref:   (T*Beff, D)  layer-0 input in per-step READ order
                              (block t = [x[t] (fwd rows); x[T-1-t] (rev rows)])
       wih_ref:  (L, D, Gp)   W_ih^T per layer, gate-reordered + lane-padded
       whh_ref:  (L, D, Gp)   W_hh^T per layer (already * (1 - dropout))
       bias_ref: (L, 1, Gp)   b_ih + b_hh per layer (reordered + padded)
       mcomb_ref:(2n, 4H)     block-diag [cumsum-expansion | group-sum] matrix
       out_ref:  (T, Bd, Hout) final-layer output, storage order
       ti_sc:    (T*Beff, Gp) hoisted input-projection scratch
       buf_sc:   (T*Beff, D)  inter-layer activations, next-layer READ order
    """
    n2 = 2 * n_chunk
    H4 = 4 * H
    mcomb = mcomb_ref[...]                               # (2n, 4H)

    for l in range(L):                                   # static layer loop
        wih = wih_ref[l]                                 # (D, Gp) hoisted loads
        whh = whh_ref[l]                                 # (D, Gp)
        bias = bias_ref[l]                               # (1, Gp)

        # Hoisted input projection: one matmul for all T*Beff rows.
        prev2 = x2_ref[...] if l == 0 else buf_sc[...]
        ti_sc[...] = jnp.dot(prev2, wih,
                             preferred_element_type=jnp.float32) + bias

        last = (l == L - 1)
        h = jnp.zeros((Beff, H), jnp.float32)
        c = jnp.zeros((Beff, H), jnp.float32)
        for t in range(T):                               # static unroll (serial)
            g = ti_sc[pl.ds(t * Beff, Beff), :] + jnp.dot(
                h, whh, preferred_element_type=jnp.float32)        # (Beff, Gp)

            # Grouped cumsoftmax of both master gates: one exp + one tiny matmul.
            z = g[:, H4:H4 + n2]                                   # (Beff, 2n)
            z = z - jnp.max(z, axis=-1, keepdims=True)             # shared shift (exact)
            e = jnp.exp(z)
            r = jnp.dot(e, mcomb, preferred_element_type=jnp.float32)  # (Beff, 4H)
            cum = r[:, :2 * H] / r[:, 2 * H:]                      # (Beff, 2H)
            cg_in = 1.0 - cum[:, :H]                               # master input gate
            cg_fg = cum[:, H:]                                     # master forget gate

            sg = jax.nn.sigmoid(g[:, :3 * H])                      # one pass: out|in|fg
            out_g = sg[:, :H]
            in_g = sg[:, H:2 * H]
            fg_g = sg[:, 2 * H:]
            cell = jnp.tanh(g[:, 3 * H:H4])

            overlap = cg_fg * cg_in
            fg_g = fg_g * overlap + (cg_fg - overlap)
            in_g = in_g * overlap + (cg_in - overlap)
            c = fg_g * c + in_g * cell
            h = out_g * jnp.tanh(c)

            if last:
                # Final layer: storage order; direction feature-concat folded
                # into the store.
                if bidirectional:
                    out_ref[t, :, :H] = h[:Bd].astype(out_ref.dtype)
                    out_ref[t, :, H:] = h[Bd:].astype(out_ref.dtype)
                else:
                    out_ref[t] = h.astype(out_ref.dtype)
            else:
                # Intermediate layer: store in the NEXT layer's read order
                # (reverse rows go to time index T-1-t).
                if bidirectional:
                    buf_sc[pl.ds(t * Beff, Bd), :] = h[:Bd]
                    buf_sc[pl.ds((T - 1 - t) * Beff + Bd, Bd), :] = h[Bd:]
                else:
                    buf_sc[pl.ds(t * Beff, Beff), :] = h


# --------------------------------------------------------------------------
# One-time host-side parameter prep (hoisted out of the forward path).
# --------------------------------------------------------------------------
def prepare_onlstm_params(params, *, chunk_size, dropout):
    L = len(params)
    G, D = np.asarray(params[0][0]).shape
    H = np.asarray(params[0][2]).shape[1]
    assert D == H, "ONLSTMStack requires equal layer sizes (curr_layer=zeros_like(x))"
    n = H // chunk_size
    assert G == 4 * H + 2 * n
    Gp = ((G + 127) // 128) * 128                      # lane-aligned gate width

    # original gate order: [c_in(n), c_fg(n), out(H), cell(H), in(H), fg(H)]
    # new order:           [out(H), in(H), fg(H), cell(H), c_in(n), c_fg(n), pad]
    perm = np.concatenate([
        2 * n + np.arange(H),                          # out
        2 * n + 2 * H + np.arange(H),                  # in
        2 * n + 3 * H + np.arange(H),                  # fg
        2 * n + H + np.arange(H),                      # cell
        np.arange(n),                                  # c_in
        n + np.arange(n),                              # c_fg
    ])

    wih_all = np.zeros((L, D, Gp), np.float32)
    whh_all = np.zeros((L, H, Gp), np.float32)
    bias_all = np.zeros((L, 1, Gp), np.float32)
    for l, (w_ih, b_ih, w_hh, b_hh) in enumerate(params):
        w_ih = np.asarray(w_ih, np.float32)
        w_hh = np.asarray(w_hh, np.float32) * (1.0 - dropout)   # DropConnect (eval)
        wih_all[l, :, :G] = w_ih[perm].T
        whh_all[l, :, :G] = w_hh[perm].T
        bias_all[l, 0, :G] = (np.asarray(b_ih, np.float32)
                              + np.asarray(b_hh, np.float32))[perm]

    # Block-diagonal [cumsum-expansion | group-sum] matrix (2n, 4H):
    #   cols [0,H):   cumsum expansion for c_in;  cols [H,2H): for c_fg
    #   cols [2H,3H): group sum of c_in;          cols [3H,4H): group sum of c_fg
    j = np.arange(n)[:, None]
    hh = np.arange(H)[None, :] // chunk_size
    expand = (j <= hh).astype(np.float32)              # (n, H)
    mcomb = np.zeros((2 * n, 4 * H), np.float32)
    mcomb[:n, :H] = expand
    mcomb[n:, H:2 * H] = expand
    mcomb[:n, 2 * H:3 * H] = 1.0
    mcomb[n:, 3 * H:] = 1.0

    return (jnp.asarray(wih_all), jnp.asarray(whh_all),
            jnp.asarray(bias_all), jnp.asarray(mcomb))


# --------------------------------------------------------------------------
# Wrapper: one pallas_call for the whole stack.
# --------------------------------------------------------------------------
def onlstm_stack_forward(x, prep, *, chunk_size, bidirectional):
    wih_all, whh_all, bias_all, mcomb = prep
    L, D, Gp = wih_all.shape
    H = D
    n_chunk = H // chunk_size
    T, B, In = x.shape
    assert In == D

    Bd = ((B + 7) // 8) * 8                     # sublane-align per-direction batch
    if Bd != B:
        x = jnp.pad(x, ((0, 0), (0, Bd - B), (0, 0)))
    Beff = 2 * Bd if bidirectional else Bd
    Hout = 2 * H if bidirectional else H

    x = x.astype(jnp.float32)
    if bidirectional:
        # Per-step READ order: block t = [x[t] (fwd rows); x[T-1-t] (rev rows)].
        x2 = jnp.concatenate([x, x[::-1]], axis=1).reshape(T * Beff, D)
    else:
        x2 = x.reshape(T * Beff, D)

    kernel = functools.partial(
        _onlstm_stack_kernel, T=T, Bd=Bd, Beff=Beff, H=H,
        n_chunk=n_chunk, L=L, bidirectional=bidirectional)

    out = pl.pallas_call(
        kernel,
        out_shape=jax.ShapeDtypeStruct((T, Bd, Hout), jnp.float32),
        grid_spec=pltpu.PrefetchScalarGridSpec(
            num_scalar_prefetch=0,
            grid=(1,),                                             # single launch
            in_specs=[
                pl.BlockSpec((T * Beff, D), lambda i: (0, 0)),         # x2
                pl.BlockSpec((L, D, Gp), lambda i: (0, 0, 0)),         # W_ih^T (all L)
                pl.BlockSpec((L, D, Gp), lambda i: (0, 0, 0)),         # W_hh^T (all L)
                pl.BlockSpec((L, 1, Gp), lambda i: (0, 0, 0)),         # fused biases
                pl.BlockSpec((2 * n_chunk, 4 * H), lambda i: (0, 0)),  # mcomb
            ],
            out_specs=pl.BlockSpec((T, Bd, Hout), lambda i: (0, 0, 0)),
            scratch_shapes=[
                pltpu.VMEM((T * Beff, Gp), jnp.float32),   # hoisted projection
                pltpu.VMEM((T * Beff, D), jnp.float32),    # inter-layer activations
            ],
        ),
        compiler_params=pltpu.CompilerParams(
            dimension_semantics=("arbitrary",),
            vmem_limit_bytes=32 * 1024 * 1024),
    )(x2, wih_all, whh_all, bias_all, mcomb)

    return out[:, :B] if Bd != B else out


# --------------------------------------------------------------------------
# Pure-JAX reference (mirrors the PyTorch code) for correctness checking.
# --------------------------------------------------------------------------
def _ref_layer(x, w_ih, b_ih, w_hh, b_hh, *, chunk_size, dropout, reverse):
    T, B, In = x.shape
    H = w_hh.shape[1]
    n_chunk = H // chunk_size
    w_hh_eff = w_hh * (1.0 - dropout)

    t_input = jnp.einsum("tbi,gi->tbg", x, w_ih) + b_ih
    h = jnp.zeros((B, H), jnp.float32)
    c = jnp.zeros((B, n_chunk, chunk_size), jnp.float32)
    outs = []
    for t in range(T):
        tt = T - 1 - t if reverse else t
        gates = t_input[tt] + h @ w_hh_eff.T + b_hh
        c_in = gates[:, :n_chunk]
        c_fg = gates[:, n_chunk:2 * n_chunk]
        rest = gates[:, 2 * n_chunk:].reshape(B, 4 * n_chunk, chunk_size)
        out_g, cell, in_g, fg_g = jnp.split(rest, 4, axis=1)
        cum_in = (1.0 - jnp.cumsum(jax.nn.softmax(c_in, axis=-1), axis=-1))[:, :, None]
        cum_fg = jnp.cumsum(jax.nn.softmax(c_fg, axis=-1), axis=-1)[:, :, None]
        in_g = jax.nn.sigmoid(in_g)
        fg_g = jax.nn.sigmoid(fg_g)
        cell = jnp.tanh(cell)
        out_g = jax.nn.sigmoid(out_g)
        overlap = cum_fg * cum_in
        fg_g = fg_g * overlap + (cum_fg - overlap)
        in_g = in_g * overlap + (cum_in - overlap)
        c = fg_g * c + in_g * cell
        h = (out_g * jnp.tanh(c)).reshape(B, H)
        outs.append(h)
    return jnp.stack(outs, axis=0)


def _ref_stack(x, params, *, chunk_size, dropout, bidirectional):
    def run(reverse):
        prev = x
        out = None
        for (w_ih, b_ih, w_hh, b_hh) in params:
            out = _ref_layer(prev, w_ih, b_ih, w_hh, b_hh, chunk_size=chunk_size,
                             dropout=dropout, reverse=reverse)
            prev = out
        return out
    if bidirectional:
        return jnp.concatenate([run(False), run(True)], axis=-1)
    return run(False)


# --------------------------------------------------------------------------
if __name__ == "__main__":
    key = jax.random.PRNGKey(0)

    # ONLSTMStack(layer_sizes=[32, 32, 32], chunk_size=8, dropout=0.25,
    #             biderectional=True), eval mode.
    layer_sizes = [32, 32, 32]
    chunk_size = 8
    dropout = 0.25
    T, B = 8, 8

    n_layers = len(layer_sizes) - 1
    keys = jax.random.split(key, 1 + 4 * n_layers)
    x = jax.random.normal(keys[0], (T, B, layer_sizes[0]), dtype=jnp.float32)

    params = []
    kidx = 1
    for l in range(n_layers):
        In, H = layer_sizes[l], layer_sizes[l + 1]
        n_chunk = H // chunk_size
        G = 4 * H + 2 * n_chunk
        bi, bh = 1.0 / math.sqrt(In), 1.0 / math.sqrt(H)
        w_ih = jax.random.uniform(keys[kidx], (G, In), jnp.float32, -bi, bi); kidx += 1
        b_ih = jax.random.uniform(keys[kidx], (G,), jnp.float32, -bi, bi); kidx += 1
        w_hh = jax.random.uniform(keys[kidx], (G, H), jnp.float32, -bh, bh); kidx += 1
        b_hh = jax.random.uniform(keys[kidx], (G,), jnp.float32, -bh, bh); kidx += 1
        params.append((w_ih, b_ih, w_hh, b_hh))

    prep = prepare_onlstm_params(params, chunk_size=chunk_size, dropout=dropout)

    for bidirectional in (True, False):
        fwd = jax.jit(functools.partial(onlstm_stack_forward,
                                        chunk_size=chunk_size,
                                        bidirectional=bidirectional))
        out = jax.block_until_ready(fwd(x, prep))
        expected_feat = layer_sizes[-1] * (2 if bidirectional else 1)
        assert out.shape == (T, B, expected_feat), out.shape

        ref = _ref_stack(x, params, chunk_size=chunk_size,
                         dropout=dropout, bidirectional=bidirectional)
        err = float(jnp.max(jnp.abs(out - ref)))
        assert err < 5e-3, f"bidirectional={bidirectional}: max abs error {err}"

    print("KERNEL_OK")
</pallas_src>

<mosaic_0001>
module attributes {stable_mosaic.version = 11 : i64} {
  func.func @_onlstm_stack_kernel(%arg0: i32, %arg1: memref<128x32xf32, #tpu.memory_space<vmem>>, %arg2: memref<2x32x256xf32, #tpu.memory_space<vmem>>, %arg3: memref<2x32x256xf32, #tpu.memory_space<vmem>>, %arg4: memref<2x1x256xf32, #tpu.memory_space<vmem>>, %arg5: memref<8x128xf32, #tpu.memory_space<vmem>>, %arg6: memref<8x8x64xf32, #tpu.memory_space<vmem>>, %arg7: memref<128x256xf32, #tpu.memory_space<vmem>>, %arg8: memref<128x32xf32, #tpu.memory_space<vmem>>) attributes {dimension_semantics = [#tpu.dimension_semantics<arbitrary>], iteration_bounds = array<i64: 1>, scalar_prefetch = 0 : i64, scratch_operands = 2 : i64, tpu.core_type = #tpu.core_type<tc>, window_params = [{pipeline_mode = #tpu.pipeline_mode<synchronous>, transform_indices = @transform_0, window_bounds = array<i64: 128, 32>}, {pipeline_mode = #tpu.pipeline_mode<synchronous>, transform_indices = @transform_1, window_bounds = array<i64: 2, 32, 256>}, {pipeline_mode = #tpu.pipeline_mode<synchronous>, transform_indices = @transform_2, window_bounds = array<i64: 2, 32, 256>}, {pipeline_mode = #tpu.pipeline_mode<synchronous>, transform_indices = @transform_3, window_bounds = array<i64: 2, 1, 256>}, {pipeline_mode = #tpu.pipeline_mode<synchronous>, transform_indices = @transform_4, window_bounds = array<i64: 8, 128>}, {pipeline_mode = #tpu.pipeline_mode<synchronous>, transform_indices = @transform_5, window_bounds = array<i64: 8, 8, 64>}]} {
    %c0 = arith.constant 0 : index
    %c0_0 = arith.constant 0 : index
    %0 = vector.load %arg5[%c0, %c0_0] : memref<8x128xf32, #tpu.memory_space<vmem>>, vector<8x128xf32>
    %c0_1 = arith.constant 0 : index
    %c0_2 = arith.constant 0 : index
    %c0_3 = arith.constant 0 : index
    %1 = vector.load %arg2[%c0_1, %c0_2, %c0_3] : memref<2x32x256xf32, #tpu.memory_space<vmem>>, vector<1x32x256xf32>
    %2 = vector.shape_cast %1 : vector<1x32x256xf32> to vector<32x256xf32>
    %c0_4 = arith.constant 0 : index
    %c0_5 = arith.constant 0 : index
    %c0_6 = arith.constant 0 : index
    %3 = vector.load %arg3[%c0_4, %c0_5, %c0_6] : memref<2x32x256xf32, #tpu.memory_space<vmem>>, vector<1x32x256xf32>
    %4 = vector.shape_cast %3 : vector<1x32x256xf32> to vector<32x256xf32>
    %c0_7 = arith.constant 0 : index
    %c0_8 = arith.constant 0 : index
    %c0_9 = arith.constant 0 : index
    %5 = vector.load %arg4[%c0_7, %c0_8, %c0_9] : memref<2x1x256xf32, #tpu.memory_space<vmem>>, vector<1x1x256xf32>
    %6 = vector.shape_cast %5 : vector<1x1x256xf32> to vector<1x256xf32>
    %c0_10 = arith.constant 0 : index
    %c0_11 = arith.constant 0 : index
    %7 = vector.load %arg1[%c0_10, %c0_11] : memref<128x32xf32, #tpu.memory_space<vmem>>, vector<128x32xf32>
    %cst = arith.constant dense<0.000000e+00> : vector<128x256xf32>
    %8 = tpu.matmul %7, %2, %cst {dimension_numbers = #tpu.dot_dimension_numbers<[1], [0], [0], [1], [0, 0, 1, 1], [], []>} : vector<128x32xf32>, vector<32x256xf32>, vector<128x256xf32> -> vector<128x256xf32>
    %9 = vector.broadcast %6 : vector<1x256xf32> to vector<128x256xf32>
    %10 = arith.addf %8, %9 : vector<128x256xf32>
    %c0_12 = arith.constant 0 : index
    %c0_13 = arith.constant 0 : index
    %11 = vector.load %arg7[%c0_12, %c0_13] : memref<128x256xf32, #tpu.memory_space<vmem>>, vector<128x256xf32>
    tpu.vector_store %arg7[%c0_12, %c0_13], %10 {strides = array<i32>} : memref<128x256xf32, #tpu.memory_space<vmem>>, vector<128x256xf32>,
    %cst_14 = arith.constant 0.000000e+00 : f32
    %12 = vector.broadcast %cst_14 : f32 to vector<16x32xf32>
    %cst_15 = arith.constant 0.000000e+00 : f32
    %13 = vector.broadcast %cst_15 : f32 to vector<16x32xf32>
    %c0_16 = arith.constant 0 : index
    %c0_17 = arith.constant 0 : index
    %14 = vector.load %arg7[%c0_16, %c0_17] : memref<128x256xf32, #tpu.memory_space<vmem>>, vector<16x256xf32>
    %cst_18 = arith.constant dense<0.000000e+00> : vector<16x256xf32>
    %15 = tpu.matmul %12, %4, %cst_18 {dimension_numbers = #tpu.dot_dimension_numbers<[1], [0], [0], [1], [0, 0, 1, 1], [], []>} : vector<16x32xf32>, vector<32x256xf32>, vector<16x256xf32> -> vector<16x256xf32>
    %16 = arith.addf %14, %15 : vector<16x256xf32>
    %17 = vector.extract_strided_slice %16 {offsets = [0, 128], sizes = [16, 8], strides = [1, 1]} : vector<16x256xf32> to vector<16x8xf32>
    %cst_19 = arith.constant dense<0xFF800000> : vector<16xf32>
    %18 = vector.multi_reduction <maximumf>, %17, %cst_19 [1] : vector<16x8xf32> to vector<16xf32>
    %19 = vector.shape_cast %18 : vector<16xf32> to vector<16x1xf32>
    %20 = vector.broadcast %19 : vector<16x1xf32> to vector<16x8xf32>
    %21 = arith.subf %17, %20 : vector<16x8xf32>
    %22 = math.exp %21 : vector<16x8xf32>
    %cst_20 = arith.constant dense<0.000000e+00> : vector<16x128xf32>
    %23 = tpu.matmul %22, %0, %cst_20 {dimension_numbers = #tpu.dot_dimension_numbers<[1], [0], [0], [1], [0, 0, 1, 1], [], []>} : vector<16x8xf32>, vector<8x128xf32>, vector<16x128xf32> -> vector<16x128xf32>
    %24 = vector.extract_strided_slice %23 {offsets = [0, 0], sizes = [16, 64], strides = [1, 1]} : vector<16x128xf32> to vector<16x64xf32>
    %25 = vector.extract_strided_slice %23 {offsets = [0, 64], sizes = [16, 64], strides = [1, 1]} : vector<16x128xf32> to vector<16x64xf32>
    %26 = arith.divf %24, %25 : vector<16x64xf32>
    %27 = vector.extract_strided_slice %26 {offsets = [0, 0], sizes = [16, 32], strides = [1, 1]} : vector<16x64xf32> to vector<16x32xf32>
    %cst_21 = arith.constant 1.000000e+00 : f32
    %28 = vector.broadcast %cst_21 : f32 to vector<16x32xf32>
    %29 = arith.subf %28, %27 : vector<16x32xf32>
    %30 = vector.extract_strided_slice %26 {offsets = [0, 32], sizes = [16, 32], strides = [1, 1]} : vector<16x64xf32> to vector<16x32xf32>
    %31 = vector.extract_strided_slice %16 {offsets = [0, 0], sizes = [16, 96], strides = [1, 1]} : vector<16x256xf32> to vector<16x96xf32>
    %32 = arith.negf %31 : vector<16x96xf32>
    %33 = math.exp %32 : vector<16x96xf32>
    %cst_22 = arith.constant 1.000000e+00 : f32
    %34 = vector.broadcast %cst_22 : f32 to vector<16x96xf32>
    %35 = arith.addf %34, %33 : vector<16x96xf32>
    %36 = arith.divf %34, %35 : vector<16x96xf32>
    %37 = vector.extract_strided_slice %36 {offsets = [0, 0], sizes = [16, 32], strides = [1, 1]} : vector<16x96xf32> to vector<16x32xf32>
    %38 = vector.extract_strided_slice %36 {offsets = [0, 32], sizes = [16, 32], strides = [1, 1]} : vector<16x96xf32> to vector<16x32xf32>
    %39 = vector.extract_strided_slice %36 {offsets = [0, 64], sizes = [16, 32], strides = [1, 1]} : vector<16x96xf32> to vector<16x32xf32>
    %40 = vector.extract_strided_slice %16 {offsets = [0, 96], sizes = [16, 32], strides = [1, 1]} : vector<16x256xf32> to vector<16x32xf32>
    %41 = math.tanh %40 : vector<16x32xf32>
    %42 = arith.mulf %30, %29 : vector<16x32xf32>
    %43 = arith.mulf %39, %42 : vector<16x32xf32>
    %44 = arith.subf %30, %42 : vector<16x32xf32>
    %45 = arith.addf %43, %44 : vector<16x32xf32>
    %46 = arith.mulf %38, %42 : vector<16x32xf32>
    %47 = arith.subf %29, %42 : vector<16x32xf32>
    %48 = arith.addf %46, %47 : vector<16x32xf32>
    %49 = arith.mulf %45, %13 : vector<16x32xf32>
    %50 = arith.mulf %48, %41 : vector<16x32xf32>
    %51 = arith.addf %49, %50 : vector<16x32xf32>
    %52 = math.tanh %51 : vector<16x32xf32>
    %53 = arith.mulf %37, %52 : vector<16x32xf32>
    %54 = vector.extract_strided_slice %53 {offsets = [0, 0], sizes = [8, 32], strides = [1, 1]} : vector<16x32xf32> to vector<8x32xf32>
    %c0_23 = arith.constant 0 : index
    %c0_24 = arith.constant 0 : index
    %55 = vector.load %arg8[%c0_23, %c0_24] : memref<128x32xf32, #tpu.memory_space<vmem>>, vector<8x32xf32>
    tpu.vector_store %arg8[%c0_23, %c0_24], %54 {strides = array<i32>} : memref<128x32xf32, #tpu.memory_space<vmem>>, vector<8x32xf32>,
    %56 = vector.extract_strided_slice %53 {offsets = [8, 0], sizes = [8, 32], strides = [1, 1]} : vector<16x32xf32> to vector<8x32xf32>
    %c120 = arith.constant 120 : index
    %c0_25 = arith.constant 0 : index
    %57 = vector.load %arg8[%c120, %c0_25] : memref<128x32xf32, #tpu.memory_space<vmem>>, vector<8x32xf32>
    tpu.vector_store %arg8[%c120, %c0_25], %56 {strides = array<i32>} : memref<128x32xf32, #tpu.memory_space<vmem>>, vector<8x32xf32>,
    %c16 = arith.constant 16 : index
    %c0_26 = arith.constant 0 : index
    %58 = vector.load %arg7[%c16, %c0_26] : memref<128x256xf32, #tpu.memory_space<vmem>>, vector<16x256xf32>
    %cst_27 = arith.constant dense<0.000000e+00> : vector<16x256xf32>
    %59 = tpu.matmul %53, %4, %cst_27 {dimension_numbers = #tpu.dot_dimension_numbers<[1], [0], [0], [1], [0, 0, 1, 1], [], []>} : vector<16x32xf32>, vector<32x256xf32>, vector<16x256xf32> -> vector<16x256xf32>
    %60 = arith.addf %58, %59 : vector<16x256xf32>
    %61 = vector.extract_strided_slice %60 {offsets = [0, 128], sizes = [16, 8], strides = [1, 1]} : vector<16x256xf32> to vector<16x8xf32>
    %cst_28 = arith.constant dense<0xFF800000> : vector<16xf32>
    %62 = vector.multi_reduction <maximumf>, %61, %cst_28 [1] : vector<16x8xf32> to vector<16xf32>
    %63 = vector.shape_cast %62 : vector<16xf32> to vector<16x1xf32>
    %64 = vector.broadcast %63 : vector<16x1xf32> to vector<16x8xf32>
    %65 = arith.subf %61, %64 : vector<16x8xf32>
    %66 = math.exp %65 : vector<16x8xf32>
    %cst_29 = arith.constant dense<0.000000e+00> : vector<16x128xf32>
    %67 = tpu.matmul %66, %0, %cst_29 {dimension_numbers = #tpu.dot_dimension_numbers<[1], [0], [0], [1], [0, 0, 1, 1], [], []>} : vector<16x8xf32>, vector<8x128xf32>, vector<16x128xf32> -> vector<16x128xf32>
    %68 = vector.extract_strided_slice %67 {offsets = [0, 0], sizes = [16, 64], strides = [1, 1]} : vector<16x128xf32> to vector<16x64xf32>
    %69 = vector.extract_strided_slice %67 {offsets = [0, 64], sizes = [16, 64], strides = [1, 1]} : vector<16x128xf32> to vector<16x64xf32>
    %70 = arith.divf %68, %69 : vector<16x64xf32>
    %71 = vector.extract_strided_slice %70 {offsets = [0, 0], sizes = [16, 32], strides = [1, 1]} : vector<16x64xf32> to vector<16x32xf32>
    %cst_30 = arith.constant 1.000000e+00 : f32
    %72 = vector.broadcast %cst_30 : f32 to vector<16x32xf32>
    %73 = arith.subf %72, %71 : vector<16x32xf32>
    %74 = vector.extract_strided_slice %70 {offsets = [0, 32], sizes = [16, 32], strides = [1, 1]} : vector<16x64xf32> to vector<16x32xf32>
    %75 = vector.extract_strided_slice %60 {offsets = [0, 0], sizes = [16, 96], strides = [1, 1]} : vector<16x256xf32> to vector<16x96xf32>
    %76 = arith.negf %75 : vector<16x96xf32>
    %77 = math.exp %76 : vector<16x96xf32>
    %cst_31 = arith.constant 1.000000e+00 : f32
    %78 = vector.broadcast %cst_31 : f32 to vector<16x96xf32>
    %79 = arith.addf %78, %77 : vector<16x96xf32>
    %80 = arith.divf %78, %79 : vector<16x96xf32>
    %81 = vector.extract_strided_slice %80 {offsets = [0, 0], sizes = [16, 32], strides = [1, 1]} : vector<16x96xf32> to vector<16x32xf32>
    %82 = vector.extract_strided_slice %80 {offsets = [0, 32], sizes = [16, 32], strides = [1, 1]} : vector<16x96xf32> to vector<16x32xf32>
    %83 = vector.extract_strided_slice %80 {offsets = [0, 64], sizes = [16, 32], strides = [1, 1]} : vector<16x96xf32> to vector<16x32xf32>
    %84 = vector.extract_strided_slice %60 {offsets = [0, 96], sizes = [16, 32], strides = [1, 1]} : vector<16x256xf32> to vector<16x32xf32>
    %85 = math.tanh %84 : vector<16x32xf32>
    %86 = arith.mulf %74, %73 : vector<16x32xf32>
    %87 = arith.mulf %83, %86 : vector<16x32xf32>
    %88 = arith.subf %74, %86 : vector<16x32xf32>
    %89 = arith.addf %87, %88 : vector<16x32xf32>
    %90 = arith.mulf %82, %86 : vector<16x32xf32>
    %91 = arith.subf %73, %86 : vector<16x32xf32>
    %92 = arith.addf %90, %91 : vector<16x32xf32>
    %93 = arith.mulf %89, %51 : vector<16x32xf32>
    %94 = arith.mulf %92, %85 : vector<16x32xf32>
    %95 = arith.addf %93, %94 : vector<16x32xf32>
    %96 = math.tanh %95 : vector<16x32xf32>
    %97 = arith.mulf %81, %96 : vector<16x32xf32>
    %98 = vector.extract_strided_slice %97 {offsets = [0, 0], sizes = [8, 32], strides = [1, 1]} : vector<16x32xf32> to vector<8x32xf32>
    %c16_32 = arith.constant 16 : index
    %c0_33 = arith.constant 0 : index
    %99 = vector.load %arg8[%c16_32, %c0_33] : memref<128x32xf32, #tpu.memory_space<vmem>>, vector<8x32xf32>
    tpu.vector_store %arg8[%c16_32, %c0_33], %98 {strides = array<i32>} : memref<128x32xf32, #tpu.memory_space<vmem>>, vector<8x32xf32>,
    %100 = vector.extract_strided_slice %97 {offsets = [8, 0], sizes = [8, 32], strides = [1, 1]} : vector<16x32xf32> to vector<8x32xf32>
    %c104 = arith.constant 104 : index
    %c0_34 = arith.constant 0 : index
    %101 = vector.load %arg8[%c104, %c0_34] : memref<128x32xf32, #tpu.memory_space<vmem>>, vector<8x32xf32>
    tpu.vector_store %arg8[%c104, %c0_34], %100 {strides = array<i32>} : memref<128x32xf32, #tpu.memory_space<vmem>>, vector<8x32xf32>,
    %c32 = arith.constant 32 : index
    %c0_35 = arith.constant 0 : index
    %102 = vector.load %arg7[%c32, %c0_35] : memref<128x256xf32, #tpu.memory_space<vmem>>, vector<16x256xf32>
    %cst_36 = arith.constant dense<0.000000e+00> : vector<16x256xf32>
    %103 = tpu.matmul %97, %4, %cst_36 {dimension_numbers = #tpu.dot_dimension_numbers<[1], [0], [0], [1], [0, 0, 1, 1], [], []>} : vector<16x32xf32>, vector<32x256xf32>, vector<16x256xf32> -> vector<16x256xf32>
    %104 = arith.addf %102, %103 : vector<16x256xf32>
    %105 = vector.extract_strided_slice %104 {offsets = [0, 128], sizes = [16, 8], strides = [1, 1]} : vector<16x256xf32> to vector<16x8xf32>
    %cst_37 = arith.constant dense<0xFF800000> : vector<16xf32>
    %106 = vector.multi_reduction <maximumf>, %105, %cst_37 [1] : vector<16x8xf32> to vector<16xf32>
    %107 = vector.shape_cast %106 : vector<16xf32> to vector<16x1xf32>
    %108 = vector.broadcast %107 : vector<16x1xf32> to vector<16x8xf32>
    %109 = arith.subf %105, %108 : vector<16x8xf32>
    %110 = math.exp %109 : vector<16x8xf32>
    %cst_38 = arith.constant dense<0.000000e+00> : vector<16x128xf32>
    %111 = tpu.matmul %110, %0, %cst_38 {dimension_numbers = #tpu.dot_dimension_numbers<[1], [0], [0], [1], [0, 0, 1, 1], [], []>} : vector<16x8xf32>, vector<8x128xf32>, vector<16x128xf32> -> vector<16x128xf32>
    %112 = vector.extract_strided_slice %111 {offsets = [0, 0], sizes = [16, 64], strides = [1, 1]} : vector<16x128xf32> to vector<16x64xf32>
    %113 = vector.extract_strided_slice %111 {offsets = [0, 64], sizes = [16, 64], strides = [1, 1]} : vector<16x128xf32> to vector<16x64xf32>
    %114 = arith.divf %112, %113 : vector<16x64xf32>
    %115 = vector.extract_strided_slice %114 {offsets = [0, 0], sizes = [16, 32], strides = [1, 1]} : vector<16x64xf32> to vector<16x32xf32>
    %cst_39 = arith.constant 1.000000e+00 : f32
    %116 = vector.broadcast %cst_39 : f32 to vector<16x32xf32>
    %117 = arith.subf %116, %115 : vector<16x32xf32>
    %118 = vector.extract_strided_slice %114 {offsets = [0, 32], sizes = [16, 32], strides = [1, 1]} : vector<16x64xf32> to vector<16x32xf32>
    %119 = vector.extract_strided_slice %104 {offsets = [0, 0], sizes = [16, 96], strides = [1, 1]} : vector<16x256xf32> to vector<16x96xf32>
    %120 = arith.negf %119 : vector<16x96xf32>
    %121 = math.exp %120 : vector<16x96xf32>
    %cst_40 = arith.constant 1.000000e+00 : f32
    %122 = vector.broadcast %cst_40 : f32 to vector<16x96xf32>
    %123 = arith.addf %122, %121 : vector<16x96xf32>
    %124 = arith.divf %122, %123 : vector<16x96xf32>
    %125 = vector.extract_strided_slice %124 {offsets = [0, 0], sizes = [16, 32], strides = [1, 1]} : vector<16x96xf32> to vector<16x32xf32>
    %126 = vector.extract_strided_slice %124 {offsets = [0, 32], sizes = [16, 32], strides = [1, 1]} : vector<16x96xf32> to vector<16x32xf32>
    %127 = vector.extract_strided_slice %124 {offsets = [0, 64], sizes = [16, 32], strides = [1, 1]} : vector<16x96xf32> to vector<16x32xf32>
    %128 = vector.extract_strided_slice %104 {offsets = [0, 96], sizes = [16, 32], strides = [1, 1]} : vector<16x256xf32> to vector<16x32xf32>
    %129 = math.tanh %128 : vector<16x32xf32>
    %130 = arith.mulf %118, %117 : vector<16x32xf32>
    %131 = arith.mulf %127, %130 : vector<16x32xf32>
    %132 = arith.subf %118, %130 : vector<16x32xf32>
    %133 = arith.addf %131, %132 : vector<16x32xf32>
    %134 = arith.mulf %126, %130 : vector<16x32xf32>
    %135 = arith.subf %117, %130 : vector<16x32xf32>
    %136 = arith.addf %134, %135 : vector<16x32xf32>
    %137 = arith.mulf %133, %95 : vector<16x32xf32>
    %138 = arith.mulf %136, %129 : vector<16x32xf32>
    %139 = arith.addf %137, %138 : vector<16x32xf32>
    %140 = math.tanh %139 : vector<16x32xf32>
    %141 = arith.mulf %125, %140 : vector<16x32xf32>
    %142 = vector.extract_strided_slice %141 {offsets = [0, 0], sizes = [8, 32], strides = [1, 1]} : vector<16x32xf32> to vector<8x32xf32>
    %c32_41 = arith.constant 32 : index
    %c0_42 = arith.constant 0 : index
    %143 = vector.load %arg8[%c32_41, %c0_42] : memref<128x32xf32, #tpu.memory_space<vmem>>, vector<8x32xf32>
    tpu.vector_store %arg8[%c32_41, %c0_42], %142 {strides = array<i32>} : memref<128x32xf32, #tpu.memory_space<vmem>>, vector<8x32xf32>,
    %144 = vector.extract_strided_slice %141 {offsets = [8, 0], sizes = [8, 32], strides = [1, 1]} : vector<16x32xf32> to vector<8x32xf32>
    %c88 = arith.constant 88 : index
    %c0_43 = arith.constant 0 : index
    %145 = vector.load %arg8[%c88, %c0_43] : memref<128x32xf32, #tpu.memory_space<vmem>>, vector<8x32xf32>
    tpu.vector_store %arg8[%c88, %c0_43], %144 {strides = array<i32>} : memref<128x32xf32, #tpu.memory_space<vmem>>, vector<8x32xf32>,
    %c48 = arith.constant 48 : index
    %c0_44 = arith.constant 0 : index
    %146 = vector.load %arg7[%c48, %c0_44] : memref<128x256xf32, #tpu.memory_space<vmem>>, vector<16x256xf32>
    %cst_45 = arith.constant dense<0.000000e+00> : vector<16x256xf32>
    %147 = tpu.matmul %141, %4, %cst_45 {dimension_numbers = #tpu.dot_dimension_numbers<[1], [0], [0], [1], [0, 0, 1, 1], [], []>} : vector<16x32xf32>, vector<32x256xf32>, vector<16x256xf32> -> vector<16x256xf32>
    %148 = arith.addf %146, %147 : vector<16x256xf32>
    %149 = vector.extract_strided_slice %148 {offsets = [0, 128], sizes = [16, 8], strides = [1, 1]} : vector<16x256xf32> to vector<16x8xf32>
    %cst_46 = arith.constant dense<0xFF800000> : vector<16xf32>
    %150 = vector.multi_reduction <maximumf>, %149, %cst_46 [1] : vector<16x8xf32> to vector<16xf32>
    %151 = vector.shape_cast %150 : vector<16xf32> to vector<16x1xf32>
    %152 = vector.broadcast %151 : vector<16x1xf32> to vector<16x8xf32>
    %153 = arith.subf %149, %152 : vector<16x8xf32>
    %154 = math.exp %153 : vector<16x8xf32>
    %cst_47 = arith.constant dense<0.000000e+00> : vector<16x128xf32>
    %155 = tpu.matmul %154, %0, %cst_47 {dimension_numbers = #tpu.dot_dimension_numbers<[1], [0], [0], [1], [0, 0, 1, 1], [], []>} : vector<16x8xf32>, vector<8x128xf32>, vector<16x128xf32> -> vector<16x128xf32>
    %156 = vector.extract_strided_slice %155 {offsets = [0, 0], sizes = [16, 64], strides = [1, 1]} : vector<16x128xf32> to vector<16x64xf32>
    %157 = vector.extract_strided_slice %155 {offsets = [0, 64], sizes = [16, 64], strides = [1, 1]} : vector<16x128xf32> to vector<16x64xf32>
    %158 = arith.divf %156, %157 : vector<16x64xf32>
    %159 = vector.extract_strided_slice %158 {offsets = [0, 0], sizes = [16, 32], strides = [1, 1]} : vector<16x64xf32> to vector<16x32xf32>
    %cst_48 = arith.constant 1.000000e+00 : f32
    %160 = vector.broadcast %cst_48 : f32 to vector<16x32xf32>
    %161 = arith.subf %160, %159 : vector<16x32xf32>
    %162 = vector.extract_strided_slice %158 {offsets = [0, 32], sizes = [16, 32], strides = [1, 1]} : vector<16x64xf32> to vector<16x32xf32>
    %163 = vector.extract_strided_slice %148 {offsets = [0, 0], sizes = [16, 96], strides = [1, 1]} : vector<16x256xf32> to vector<16x96xf32>
    %164 = arith.negf %163 : vector<16x96xf32>
    %165 = math.exp %164 : vector<16x96xf32>
    %cst_49 = arith.constant 1.000000e+00 : f32
    %166 = vector.broadcast %cst_49 : f32 to vector<16x96xf32>
    %167 = arith.addf %166, %165 : vector<16x96xf32>
    %168 = arith.divf %166, %167 : vector<16x96xf32>
    %169 = vector.extract_strided_slice %168 {offsets = [0, 0], sizes = [16, 32], strides = [1, 1]} : vector<16x96xf32> to vector<16x32xf32>
    %170 = vector.extract_strided_slice %168 {offsets = [0, 32], sizes = [16, 32], strides = [1, 1]} : vector<16x96xf32> to vector<16x32xf32>
    %171 = vector.extract_strided_slice %168 {offsets = [0, 64], sizes = [16, 32], strides = [1, 1]} : vector<16x96xf32> to vector<16x32xf32>
    %172 = vector.extract_strided_slice %148 {offsets = [0, 96], sizes = [16, 32], strides = [1, 1]} : vector<16x256xf32> to vector<16x32xf32>
    %173 = math.tanh %172 : vector<16x32xf32>
    %174 = arith.mulf %162, %161 : vector<16x32xf32>
    %175 = arith.mulf %171, %174 : vector<16x32xf32>
    %176 = arith.subf %162, %174 : vector<16x32xf32>
    %177 = arith.addf %175, %176 : vector<16x32xf32>
    %178 = arith.mulf %170, %174 : vector<16x32xf32>
    %179 = arith.subf %161, %174 : vector<16x32xf32>
    %180 = arith.addf %178, %179 : vector<16x32xf32>
    %181 = arith.mulf %177, %139 : vector<16x32xf32>
    %182 = arith.mulf %180, %173 : vector<16x32xf32>
    %183 = arith.addf %181, %182 : vector<16x32xf32>
    %184 = math.tanh %183 : vector<16x32xf32>
    %185 = arith.mulf %169, %184 : vector<16x32xf32>
    %186 = vector.extract_strided_slice %185 {offsets = [0, 0], sizes = [8, 32], strides = [1, 1]} : vector<16x32xf32> to vector<8x32xf32>
    %c48_50 = arith.constant 48 : index
    %c0_51 = arith.constant 0 : index
    %187 = vector.load %arg8[%c48_50, %c0_51] : memref<128x32xf32, #tpu.memory_space<vmem>>, vector<8x32xf32>
    tpu.vector_store %arg8[%c48_50, %c0_51], %186 {strides = array<i32>} : memref<128x32xf32, #tpu.memory_space<vmem>>, vector<8x32xf32>,
    %188 = vector.extract_strided_slice %185 {offsets = [8, 0], sizes = [8, 32], strides = [1, 1]} : vector<16x32xf32> to vector<8x32xf32>
    %c72 = arith.constant 72 : index
    %c0_52 = arith.constant 0 : index
    %189 = vector.load %arg8[%c72, %c0_52] : memref<128x32xf32, #tpu.memory_space<vmem>>, vector<8x32xf32>
    tpu.vector_store %arg8[%c72, %c0_52], %188 {strides = array<i32>} : memref<128x32xf32, #tpu.memory_space<vmem>>, vector<8x32xf32>,
    %c64 = arith.constant 64 : index
    %c0_53 = arith.constant 0 : index
    %190 = vector.load %arg7[%c64, %c0_53] : memref<128x256xf32, #tpu.memory_space<vmem>>, vector<16x256xf32>
    %cst_54 = arith.constant dense<0.000000e+00> : vector<16x256xf32>
    %191 = tpu.matmul %185, %4, %cst_54 {dimension_numbers = #tpu.dot_dimension_numbers<[1], [0], [0], [1], [0, 0, 1, 1], [], []>} : vector<16x32xf32>, vector<32x256xf32>, vector<16x256xf32> -> vector<16x256xf32>
    %192 = arith.addf %190, %191 : vector<16x256xf32>
    %193 = vector.extract_strided_slice %192 {offsets = [0, 128], sizes = [16, 8], strides = [1, 1]} : vector<16x256xf32> to vector<16x8xf32>
    %cst_55 = arith.constant dense<0xFF800000> : vector<16xf32>
    %194 = vector.multi_reduction <maximumf>, %193, %cst_55 [1] : vector<16x8xf32> to vector<16xf32>
    %195 = vector.shape_cast %194 : vector<16xf32> to vector<16x1xf32>
    %196 = vector.broadcast %195 : vector<16x1xf32> to vector<16x8xf32>
    %197 = arith.subf %193, %196 : vector<16x8xf32>
    %198 = math.exp %197 : vector<16x8xf32>
    %cst_56 = arith.constant dense<0.000000e+00> : vector<16x128xf32>
    %199 = tpu.matmul %198, %0, %cst_56 {dimension_numbers = #tpu.dot_dimension_numbers<[1], [0], [0], [1], [0, 0, 1, 1], [], []>} : vector<16x8xf32>, vector<8x128xf32>, vector<16x128xf32> -> vector<16x128xf32>
    %200 = vector.extract_strided_slice %199 {offsets = [0, 0], sizes = [16, 64], strides = [1, 1]} : vector<16x128xf32> to vector<16x64xf32>
    %201 = vector.extract_strided_slice %199 {offsets = [0, 64], sizes = [16, 64], strides = [1, 1]} : vector<16x128xf32> to vector<16x64xf32>
    %202 = arith.divf %200, %201 : vector<16x64xf32>
    %203 = vector.extract_strided_slice %202 {offsets = [0, 0], sizes = [16, 32], strides = [1, 1]} : vector<16x64xf32> to vector<16x32xf32>
    %cst_57 = arith.constant 1.000000e+00 : f32
    %204 = vector.broadcast %cst_57 : f32 to vector<16x32xf32>
    %205 = arith.subf %204, %203 : vector<16x32xf32>
    %206 = vector.extract_strided_slice %202 {offsets = [0, 32], sizes = [16, 32], strides = [1, 1]} : vector<16x64xf32> to vector<16x32xf32>
    %207 = vector.extract_strided_slice %192 {offsets = [0, 0], sizes = [16, 96], strides = [1, 1]} : vector<16x256xf32> to vector<16x96xf32>
    %208 = arith.negf %207 : vector<16x96xf32>
    %209 = math.exp %208 : vector<16x96xf32>
    %cst_58 = arith.constant 1.000000e+00 : f32
    %210 = vector.broadcast %cst_58 : f32 to vector<16x96xf32>
    %211 = arith.addf %210, %209 : vector<16x96xf32>
    %212 = arith.divf %210, %211 : vector<16x96xf32>
    %213 = vector.extract_strided_slice %212 {offsets = [0, 0], sizes = [16, 32], strides = [1, 1]} : vector<16x96xf32> to vector<16x32xf32>
    %214 = vector.extract_strided_slice %212 {offsets = [0, 32], sizes = [16, 32], strides = [1, 1]} : vector<16x96xf32> to vector<16x32xf32>
    %215 = vector.extract_strided_slice %212 {offsets = [0, 64], sizes = [16, 32], strides = [1, 1]} : vector<16x96xf32> to vector<16x32xf32>
    %216 = vector.extract_strided_slice %192 {offsets = [0, 96], sizes = [16, 32], strides = [1, 1]} : vector<16x256xf32> to vector<16x32xf32>
    %217 = math.tanh %216 : vector<16x32xf32>
    %218 = arith.mulf %206, %205 : vector<16x32xf32>
    %219 = arith.mulf %215, %218 : vector<16x32xf32>
    %220 = arith.subf %206, %218 : vector<16x32xf32>
    %221 = arith.addf %219, %220 : vector<16x32xf32>
    %222 = arith.mulf %214, %218 : vector<16x32xf32>
    %223 = arith.subf %205, %218 : vector<16x32xf32>
    %224 = arith.addf %222, %223 : vector<16x32xf32>
    %225 = arith.mulf %221, %183 : vector<16x32xf32>
    %226 = arith.mulf %224, %217 : vector<16x32xf32>
    %227 = arith.addf %225, %226 : vector<16x32xf32>
    %228 = math.tanh %227 : vector<16x32xf32>
    %229 = arith.mulf %213, %228 : vector<16x32xf32>
    %230 = vector.extract_strided_slice %229 {offsets = [0, 0], sizes = [8, 32], strides = [1, 1]} : vector<16x32xf32> to vector<8x32xf32>
    %c64_59 = arith.constant 64 : index
    %c0_60 = arith.constant 0 : index
    %231 = vector.load %arg8[%c64_59, %c0_60] : memref<128x32xf32, #tpu.memory_space<vmem>>, vector<8x32xf32>
    tpu.vector_store %arg8[%c64_59, %c0_60], %230 {strides = array<i32>} : memref<128x32xf32, #tpu.memory_space<vmem>>, vector<8x32xf32>,
    %232 = vector.extract_strided_slice %229 {offsets = [8, 0], sizes = [8, 32], strides = [1, 1]} : vector<16x32xf32> to vector<8x32xf32>
    %c56 = arith.constant 56 : index
    %c0_61 = arith.constant 0 : index
    %233 = vector.load %arg8[%c56, %c0_61] : memref<128x32xf32, #tpu.memory_space<vmem>>, vector<8x32xf32>
    tpu.vector_store %arg8[%c56, %c0_61], %232 {strides = array<i32>} : memref<128x32xf32, #tpu.memory_space<vmem>>, vector<8x32xf32>,
    %c80 = arith.constant 80 : index
    %c0_62 = arith.constant 0 : index
    %234 = vector.load %arg7[%c80, %c0_62] : memref<128x256xf32, #tpu.memory_space<vmem>>, vector<16x256xf32>
    %cst_63 = arith.constant dense<0.000000e+00> : vector<16x256xf32>
    %235 = tpu.matmul %229, %4, %cst_63 {dimension_numbers = #tpu.dot_dimension_numbers<[1], [0], [0], [1], [0, 0, 1, 1], [], []>} : vector<16x32xf32>, vector<32x256xf32>, vector<16x256xf32> -> vector<16x256xf32>
    %236 = arith.addf %234, %235 : vector<16x256xf32>
    %237 = vector.extract_strided_slice %236 {offsets = [0, 128], sizes = [16, 8], strides = [1, 1]} : vector<16x256xf32> to vector<16x8xf32>
    %cst_64 = arith.constant dense<0xFF800000> : vector<16xf32>
    %238 = vector.multi_reduction <maximumf>, %237, %cst_64 [1] : vector<16x8xf32> to vector<16xf32>
    %239 = vector.shape_cast %238 : vector<16xf32> to vector<16x1xf32>
    %240 = vector.broadcast %239 : vector<16x1xf32> to vector<16x8xf32>
    %241 = arith.subf %237, %240 : vector<16x8xf32>
    %242 = math.exp %241 : vector<16x8xf32>
    %cst_65 = arith.constant dense<0.000000e+00> : vector<16x128xf32>
    %243 = tpu.matmul %242, %0, %cst_65 {dimension_numbers = #tpu.dot_dimension_numbers<[1], [0], [0], [1], [0, 0, 1, 1], [], []>} : vector<16x8xf32>, vector<8x128xf32>, vector<16x128xf32> -> vector<16x128xf32>
    %244 = vector.extract_strided_slice %243 {offsets = [0, 0], sizes = [16, 64], strides = [1, 1]} : vector<16x128xf32> to vector<16x64xf32>
    %245 = vector.extract_strided_slice %243 {offsets = [0, 64], sizes = [16, 64], strides = [1, 1]} : vector<16x128xf32> to vector<16x64xf32>
    %246 = arith.divf %244, %245 : vector<16x64xf32>
    %247 = vector.extract_strided_slice %246 {offsets = [0, 0], sizes = [16, 32], strides = [1, 1]} : vector<16x64xf32> to vector<16x32xf32>
    %cst_66 = arith.constant 1.000000e+00 : f32
    %248 = vector.broadcast %cst_66 : f32 to vector<16x32xf32>
    %249 = arith.subf %248, %247 : vector<16x32xf32>
    %250 = vector.extract_strided_slice %246 {offsets = [0, 32], sizes = [16, 32], strides = [1, 1]} : vector<16x64xf32> to vector<16x32xf32>
    %251 = vector.extract_strided_slice %236 {offsets = [0, 0], sizes = [16, 96], strides = [1, 1]} : vector<16x256xf32> to vector<16x96xf32>
    %252 = arith.negf %251 : vector<16x96xf32>
    %253 = math.exp %252 : vector<16x96xf32>
    %cst_67 = arith.constant 1.000000e+00 : f32
    %254 = vector.broadcast %cst_67 : f32 to vector<16x96xf32>
    %255 = arith.addf %254, %253 : vector<16x96xf32>
    %256 = arith.divf %254, %255 : vector<16x96xf32>
    %257 = vector.extract_strided_slice %256 {offsets = [0, 0], sizes = [16, 32], strides = [1, 1]} : vector<16x96xf32> to vector<16x32xf32>
    %258 = vector.extract_strided_slice %256 {offsets = [0, 32], sizes = [16, 32], strides = [1, 1]} : vector<16x96xf32> to vector<16x32xf32>
    %259 = vector.extract_strided_slice %256 {offsets = [0, 64], sizes = [16, 32], strides = [1, 1]} : vector<16x96xf32> to vector<16x32xf32>
    %260 = vector.extract_strided_slice %236 {offsets = [0, 96], sizes = [16, 32], strides = [1, 1]} : vector<16x256xf32> to vector<16x32xf32>
    %261 = math.tanh %260 : vector<16x32xf32>
    %262 = arith.mulf %250, %249 : vector<16x32xf32>
    %263 = arith.mulf %259, %262 : vector<16x32xf32>
    %264 = arith.subf %250, %262 : vector<16x32xf32>
    %265 = arith.addf %263, %264 : vector<16x32xf32>
    %266 = arith.mulf %258, %262 : vector<16x32xf32>
    %267 = arith.subf %249, %262 : vector<16x32xf32>
    %268 = arith.addf %266, %267 : vector<16x32xf32>
    %269 = arith.mulf %265, %227 : vector<16x32xf32>
    %270 = arith.mulf %268, %261 : vector<16x32xf32>
    %271 = arith.addf %269, %270 : vector<16x32xf32>
    %272 = math.tanh %271 : vector<16x32xf32>
    %273 = arith.mulf %257, %272 : vector<16x32xf32>
    %274 = vector.extract_strided_slice %273 {offsets = [0, 0], sizes = [8, 32], strides = [1, 1]} : vector<16x32xf32> to vector<8x32xf32>
    %c80_68 = arith.constant 80 : index
    %c0_69 = arith.constant 0 : index
    %275 = vector.load %arg8[%c80_68, %c0_69] : memref<128x32xf32, #tpu.memory_space<vmem>>, vector<8x32xf32>
    tpu.vector_store %arg8[%c80_68, %c0_69], %274 {strides = array<i32>} : memref<128x32xf32, #tpu.memory_space<vmem>>, vector<8x32xf32>,
    %276 = vector.extract_strided_slice %273 {offsets = [8, 0], sizes = [8, 32], strides = [1, 1]} : vector<16x32xf32> to vector<8x32xf32>
    %c40 = arith.constant 40 : index
    %c0_70 = arith.constant 0 : index
    %277 = vector.load %arg8[%c40, %c0_70] : memref<128x32xf32, #tpu.memory_space<vmem>>, vector<8x32xf32>
    tpu.vector_store %arg8[%c40, %c0_70], %276 {strides = array<i32>} : memref<128x32xf32, #tpu.memory_space<vmem>>, vector<8x32xf32>,
    %c96 = arith.constant 96 : index
    %c0_71 = arith.constant 0 : index
    %278 = vector.load %arg7[%c96, %c0_71] : memref<128x256xf32, #tpu.memory_space<vmem>>, vector<16x256xf32>
    %cst_72 = arith.constant dense<0.000000e+00> : vector<16x256xf32>
    %279 = tpu.matmul %273, %4, %cst_72 {dimension_numbers = #tpu.dot_dimension_numbers<[1], [0], [0], [1], [0, 0, 1, 1], [], []>} : vector<16x32xf32>, vector<32x256xf32>, vector<16x256xf32> -> vector<16x256xf32>
    %280 = arith.addf %278, %279 : vector<16x256xf32>
    %281 = vector.extract_strided_slice %280 {offsets = [0, 128], sizes = [16, 8], strides = [1, 1]} : vector<16x256xf32> to vector<16x8xf32>
    %cst_73 = arith.constant dense<0xFF800000> : vector<16xf32>
    %282 = vector.multi_reduction <maximumf>, %281, %cst_73 [1] : vector<16x8xf32> to vector<16xf32>
    %283 = vector.shape_cast %282 : vector<16xf32> to vector<16x1xf32>
    %284 = vector.broadcast %283 : vector<16x1xf32> to vector<16x8xf32>
    %285 = arith.subf %281, %284 : vector<16x8xf32>
    %286 = math.exp %285 : vector<16x8xf32>
    %cst_74 = arith.constant dense<0.000000e+00> : vector<16x128xf32>
    %287 = tpu.matmul %286, %0, %cst_74 {dimension_numbers = #tpu.dot_dimension_numbers<[1], [0], [0], [1], [0, 0, 1, 1], [], []>} : vector<16x8xf32>, vector<8x128xf32>, vector<16x128xf32> -> vector<16x128xf32>
    %288 = vector.extract_strided_slice %287 {offsets = [0, 0], sizes = [16, 64], strides = [1, 1]} : vector<16x128xf32> to vector<16x64xf32>
    %289 = vector.extract_strided_slice %287 {offsets = [0, 64], sizes = [16, 64], strides = [1, 1]} : vector<16x128xf32> to vector<16x64xf32>
    %290 = arith.divf %288, %289 : vector<16x64xf32>
    %291 = vector.extract_strided_slice %290 {offsets = [0, 0], sizes = [16, 32], strides = [1, 1]} : vector<16x64xf32> to vector<16x32xf32>
    %cst_75 = arith.constant 1.000000e+00 : f32
    %292 = vector.broadcast %cst_75 : f32 to vector<16x32xf32>
    %293 = arith.subf %292, %291 : vector<16x32xf32>
    %294 = vector.extract_strided_slice %290 {offsets = [0, 32], sizes = [16, 32], strides = [1, 1]} : vector<16x64xf32> to vector<16x32xf32>
    %295 = vector.extract_strided_slice %280 {offsets = [0, 0], sizes = [16, 96], strides = [1, 1]} : vector<16x256xf32> to vector<16x96xf32>
    %296 = arith.negf %295 : vector<16x96xf32>
    %297 = math.exp %296 : vector<16x96xf32>
    %cst_76 = arith.constant 1.000000e+00 : f32
    %298 = vector.broadcast %cst_76 : f32 to vector<16x96xf32>
    %299 = arith.addf %298, %297 : vector<16x96xf32>
    %300 = arith.divf %298, %299 : vector<16x96xf32>
    %301 = vector.extract_strided_slice %300 {offsets = [0, 0], sizes = [16, 32], strides = [1, 1]} : vector<16x96xf32> to vector<16x32xf32>
    %302 = vector.extract_strided_slice %300 {offsets = [0, 32], sizes = [16, 32], strides = [1, 1]} : vector<16x96xf32> to vector<16x32xf32>
    %303 = vector.extract_strided_slice %300 {offsets = [0, 64], sizes = [16, 32], strides = [1, 1]} : vector<16x96xf32> to vector<16x32xf32>
    %304 = vector.extract_strided_slice %280 {offsets = [0, 96], sizes = [16, 32], strides = [1, 1]} : vector<16x256xf32> to vector<16x32xf32>
    %305 = math.tanh %304 : vector<16x32xf32>
    %306 = arith.mulf %294, %293 : vector<16x32xf32>
    %307 = arith.mulf %303, %306 : vector<16x32xf32>
    %308 = arith.subf %294, %306 : vector<16x32xf32>
    %309 = arith.addf %307, %308 : vector<16x32xf32>
    %310 = arith.mulf %302, %306 : vector<16x32xf32>
    %311 = arith.subf %293, %306 : vector<16x32xf32>
    %312 = arith.addf %310, %311 : vector<16x32xf32>
    %313 = arith.mulf %309, %271 : vector<16x32xf32>
    %314 = arith.mulf %312, %305 : vector<16x32xf32>
    %315 = arith.addf %313, %314 : vector<16x32xf32>
    %316 = math.tanh %315 : vector<16x32xf32>
    %317 = arith.mulf %301, %316 : vector<16x32xf32>
    %318 = vector.extract_strided_slice %317 {offsets = [0, 0], sizes = [8, 32], strides = [1, 1]} : vector<16x32xf32> to vector<8x32xf32>
    %c96_77 = arith.constant 96 : index
    %c0_78 = arith.constant 0 : index
    %319 = vector.load %arg8[%c96_77, %c0_78] : memref<128x32xf32, #tpu.memory_space<vmem>>, vector<8x32xf32>
    tpu.vector_store %arg8[%c96_77, %c0_78], %318 {strides = array<i32>} : memref<128x32xf32, #tpu.memory_space<vmem>>, vector<8x32xf32>,
    %320 = vector.extract_strided_slice %317 {offsets = [8, 0], sizes = [8, 32], strides = [1, 1]} : vector<16x32xf32> to vector<8x32xf32>
    %c24 = arith.constant 24 : index
    %c0_79 = arith.constant 0 : index
    %321 = vector.load %arg8[%c24, %c0_79] : memref<128x32xf32, #tpu.memory_space<vmem>>, vector<8x32xf32>
    tpu.vector_store %arg8[%c24, %c0_79], %320 {strides = array<i32>} : memref<128x32xf32, #tpu.memory_space<vmem>>, vector<8x32xf32>,
    %c112 = arith.constant 112 : index
    %c0_80 = arith.constant 0 : index
    %322 = vector.load %arg7[%c112, %c0_80] : memref<128x256xf32, #tpu.memory_space<vmem>>, vector<16x256xf32>
    %cst_81 = arith.constant dense<0.000000e+00> : vector<16x256xf32>
    %323 = tpu.matmul %317, %4, %cst_81 {dimension_numbers = #tpu.dot_dimension_numbers<[1], [0], [0], [1], [0, 0, 1, 1], [], []>} : vector<16x32xf32>, vector<32x256xf32>, vector<16x256xf32> -> vector<16x256xf32>
    %324 = arith.addf %322, %323 : vector<16x256xf32>
    %325 = vector.extract_strided_slice %324 {offsets = [0, 128], sizes = [16, 8], strides = [1, 1]} : vector<16x256xf32> to vector<16x8xf32>
    %cst_82 = arith.constant dense<0xFF800000> : vector<16xf32>
    %326 = vector.multi_reduction <maximumf>, %325, %cst_82 [1] : vector<16x8xf32> to vector<16xf32>
    %327 = vector.shape_cast %326 : vector<16xf32> to vector<16x1xf32>
    %328 = vector.broadcast %327 : vector<16x1xf32> to vector<16x8xf32>
    %329 = arith.subf %325, %328 : vector<16x8xf32>
    %330 = math.exp %329 : vector<16x8xf32>
    %cst_83 = arith.constant dense<0.000000e+00> : vector<16x128xf32>
    %331 = tpu.matmul %330, %0, %cst_83 {dimension_numbers = #tpu.dot_dimension_numbers<[1], [0], [0], [1], [0, 0, 1, 1], [], []>} : vector<16x8xf32>, vector<8x128xf32>, vector<16x128xf32> -> vector<16x128xf32>
    %332 = vector.extract_strided_slice %331 {offsets = [0, 0], sizes = [16, 64], strides = [1, 1]} : vector<16x128xf32> to vector<16x64xf32>
    %333 = vector.extract_strided_slice %331 {offsets = [0, 64], sizes = [16, 64], strides = [1, 1]} : vector<16x128xf32> to vector<16x64xf32>
    %334 = arith.divf %332, %333 : vector<16x64xf32>
    %335 = vector.extract_strided_slice %334 {offsets = [0, 0], sizes = [16, 32], strides = [1, 1]} : vector<16x64xf32> to vector<16x32xf32>
    %cst_84 = arith.constant 1.000000e+00 : f32
    %336 = vector.broadcast %cst_84 : f32 to vector<16x32xf32>
    %337 = arith.subf %336, %335 : vector<16x32xf32>
    %338 = vector.extract_strided_slice %334 {offsets = [0, 32], sizes = [16, 32], strides = [1, 1]} : vector<16x64xf32> to vector<16x32xf32>
    %339 = vector.extract_strided_slice %324 {offsets = [0, 0], sizes = [16, 96], strides = [1, 1]} : vector<16x256xf32> to vector<16x96xf32>
    %340 = arith.negf %339 : vector<16x96xf32>
    %341 = math.exp %340 : vector<16x96xf32>
    %cst_85 = arith.constant 1.000000e+00 : f32
    %342 = vector.broadcast %cst_85 : f32 to vector<16x96xf32>
    %343 = arith.addf %342, %341 : vector<16x96xf32>
    %344 = arith.divf %342, %343 : vector<16x96xf32>
    %345 = vector.extract_strided_slice %344 {offsets = [0, 0], sizes = [16, 32], strides = [1, 1]} : vector<16x96xf32> to vector<16x32xf32>
    %346 = vector.extract_strided_slice %344 {offsets = [0, 32], sizes = [16, 32], strides = [1, 1]} : vector<16x96xf32> to vector<16x32xf32>
    %347 = vector.extract_strided_slice %344 {offsets = [0, 64], sizes = [16, 32], strides = [1, 1]} : vector<16x96xf32> to vector<16x32xf32>
    %348 = vector.extract_strided_slice %324 {offsets = [0, 96], sizes = [16, 32], strides = [1, 1]} : vector<16x256xf32> to vector<16x32xf32>
    %349 = math.tanh %348 : vector<16x32xf32>
    %350 = arith.mulf %338, %337 : vector<16x32xf32>
    %351 = arith.mulf %347, %350 : vector<16x32xf32>
    %352 = arith.subf %338, %350 : vector<16x32xf32>
    %353 = arith.addf %351, %352 : vector<16x32xf32>
    %354 = arith.mulf %346, %350 : vector<16x32xf32>
    %355 = arith.subf %337, %350 : vector<16x32xf32>
    %356 = arith.addf %354, %355 : vector<16x32xf32>
    %357 = arith.mulf %353, %315 : vector<16x32xf32>
    %358 = arith.mulf %356, %349 : vector<16x32xf32>
    %359 = arith.addf %357, %358 : vector<16x32xf32>
    %360 = math.tanh %359 : vector<16x32xf32>
    %361 = arith.mulf %345, %360 : vector<16x32xf32>
    %362 = vector.extract_strided_slice %361 {offsets = [0, 0], sizes = [8, 32], strides = [1, 1]} : vector<16x32xf32> to vector<8x32xf32>
    %c112_86 = arith.constant 112 : index
    %c0_87 = arith.constant 0 : index
    %363 = vector.load %arg8[%c112_86, %c0_87] : memref<128x32xf32, #tpu.memory_space<vmem>>, vector<8x32xf32>
    tpu.vector_store %arg8[%c112_86, %c0_87], %362 {strides = array<i32>} : memref<128x32xf32, #tpu.memory_space<vmem>>, vector<8x32xf32>,
    %364 = vector.extract_strided_slice %361 {offsets = [8, 0], sizes = [8, 32], strides = [1, 1]} : vector<16x32xf32> to vector<8x32xf32>
    %c8 = arith.constant 8 : index
    %c0_88 = arith.constant 0 : index
    %365 = vector.load %arg8[%c8, %c0_88] : memref<128x32xf32, #tpu.memory_space<vmem>>, vector<8x32xf32>
    tpu.vector_store %arg8[%c8, %c0_88], %364 {strides = array<i32>} : memref<128x32xf32, #tpu.memory_space<vmem>>, vector<8x32xf32>,
    %c1 = arith.constant 1 : index
    %c0_89 = arith.constant 0 : index
    %c0_90 = arith.constant 0 : index
    %366 = vector.load %arg2[%c1, %c0_89, %c0_90] : memref<2x32x256xf32, #tpu.memory_space<vmem>>, vector<1x32x256xf32>
    %367 = vector.shape_cast %366 : vector<1x32x256xf32> to vector<32x256xf32>
    %c1_91 = arith.constant 1 : index
    %c0_92 = arith.constant 0 : index
    %c0_93 = arith.constant 0 : index
    %368 = vector.load %arg3[%c1_91, %c0_92, %c0_93] : memref<2x32x256xf32, #tpu.memory_space<vmem>>, vector<1x32x256xf32>
    %369 = vector.shape_cast %368 : vector<1x32x256xf32> to vector<32x256xf32>
    %c1_94 = arith.constant 1 : index
    %c0_95 = arith.constant 0 : index
    %c0_96 = arith.constant 0 : index
    %370 = vector.load %arg4[%c1_94, %c0_95, %c0_96] : memref<2x1x256xf32, #tpu.memory_space<vmem>>, vector<1x1x256xf32>
    %371 = vector.shape_cast %370 : vector<1x1x256xf32> to vector<1x256xf32>
    %c0_97 = arith.constant 0 : index
    %c0_98 = arith.constant 0 : index
    %372 = vector.load %arg8[%c0_97, %c0_98] : memref<128x32xf32, #tpu.memory_space<vmem>>, vector<128x32xf32>
    %cst_99 = arith.constant dense<0.000000e+00> : vector<128x256xf32>
    %373 = tpu.matmul %372, %367, %cst_99 {dimension_numbers = #tpu.dot_dimension_numbers<[1], [0], [0], [1], [0, 0, 1, 1], [], []>} : vector<128x32xf32>, vector<32x256xf32>, vector<128x256xf32> -> vector<128x256xf32>
    %374 = vector.broadcast %371 : vector<1x256xf32> to vector<128x256xf32>
    %375 = arith.addf %373, %374 : vector<128x256xf32>
    %c0_100 = arith.constant 0 : index
    %c0_101 = arith.constant 0 : index
    %376 = vector.load %arg7[%c0_100, %c0_101] : memref<128x256xf32, #tpu.memory_space<vmem>>, vector<128x256xf32>
    tpu.vector_store %arg7[%c0_100, %c0_101], %375 {strides = array<i32>} : memref<128x256xf32, #tpu.memory_space<vmem>>, vector<128x256xf32>,
    %cst_102 = arith.constant 0.000000e+00 : f32
    %377 = vector.broadcast %cst_102 : f32 to vector<16x32xf32>
    %cst_103 = arith.constant 0.000000e+00 : f32
    %378 = vector.broadcast %cst_103 : f32 to vector<16x32xf32>
    %c0_104 = arith.constant 0 : index
    %c0_105 = arith.constant 0 : index
    %379 = vector.load %arg7[%c0_104, %c0_105] : memref<128x256xf32, #tpu.memory_space<vmem>>, vector<16x256xf32>
    %cst_106 = arith.constant dense<0.000000e+00> : vector<16x256xf32>
    %380 = tpu.matmul %377, %369, %cst_106 {dimension_numbers = #tpu.dot_dimension_numbers<[1], [0], [0], [1], [0, 0, 1, 1], [], []>} : vector<16x32xf32>, vector<32x256xf32>, vector<16x256xf32> -> vector<16x256xf32>
    %381 = arith.addf %379, %380 : vector<16x256xf32>
    %382 = vector.extract_strided_slice %381 {offsets = [0, 128], sizes = [16, 8], strides = [1, 1]} : vector<16x256xf32> to vector<16x8xf32>
    %cst_107 = arith.constant dense<0xFF800000> : vector<16xf32>
    %383 = vector.multi_reduction <maximumf>, %382, %cst_107 [1] : vector<16x8xf32> to vector<16xf32>
    %384 = vector.shape_cast %383 : vector<16xf32> to vector<16x1xf32>
    %385 = vector.broadcast %384 : vector<16x1xf32> to vector<16x8xf32>
    %386 = arith.subf %382, %385 : vector<16x8xf32>
    %387 = math.exp %386 : vector<16x8xf32>
    %cst_108 = arith.constant dense<0.000000e+00> : vector<16x128xf32>
    %388 = tpu.matmul %387, %0, %cst_108 {dimension_numbers = #tpu.dot_dimension_numbers<[1], [0], [0], [1], [0, 0, 1, 1], [], []>} : vector<16x8xf32>, vector<8x128xf32>, vector<16x128xf32> -> vector<16x128xf32>
    %389 = vector.extract_strided_slice %388 {offsets = [0, 0], sizes = [16, 64], strides = [1, 1]} : vector<16x128xf32> to vector<16x64xf32>
    %390 = vector.extract_strided_slice %388 {offsets = [0, 64], sizes = [16, 64], strides = [1, 1]} : vector<16x128xf32> to vector<16x64xf32>
    %391 = arith.divf %389, %390 : vector<16x64xf32>
    %392 = vector.extract_strided_slice %391 {offsets = [0, 0], sizes = [16, 32], strides = [1, 1]} : vector<16x64xf32> to vector<16x32xf32>
    %cst_109 = arith.constant 1.000000e+00 : f32
    %393 = vector.broadcast %cst_109 : f32 to vector<16x32xf32>
    %394 = arith.subf %393, %392 : vector<16x32xf32>
    %395 = vector.extract_strided_slice %391 {offsets = [0, 32], sizes = [16, 32], strides = [1, 1]} : vector<16x64xf32> to vector<16x32xf32>
    %396 = vector.extract_strided_slice %381 {offsets = [0, 0], sizes = [16, 96], strides = [1, 1]} : vector<16x256xf32> to vector<16x96xf32>
    %397 = arith.negf %396 : vector<16x96xf32>
    %398 = math.exp %397 : vector<16x96xf32>
    %cst_110 = arith.constant 1.000000e+00 : f32
    %399 = vector.broadcast %cst_110 : f32 to vector<16x96xf32>
    %400 = arith.addf %399, %398 : vector<16x96xf32>
    %401 = arith.divf %399, %400 : vector<16x96xf32>
    %402 = vector.extract_strided_slice %401 {offsets = [0, 0], sizes = [16, 32], strides = [1, 1]} : vector<16x96xf32> to vector<16x32xf32>
    %403 = vector.extract_strided_slice %401 {offsets = [0, 32], sizes = [16, 32], strides = [1, 1]} : vector<16x96xf32> to vector<16x32xf32>
    %404 = vector.extract_strided_slice %401 {offsets = [0, 64], sizes = [16, 32], strides = [1, 1]} : vector<16x96xf32> to vector<16x32xf32>
    %405 = vector.extract_strided_slice %381 {offsets = [0, 96], sizes = [16, 32], strides = [1, 1]} : vector<16x256xf32> to vector<16x32xf32>
    %406 = math.tanh %405 : vector<16x32xf32>
    %407 = arith.mulf %395, %394 : vector<16x32xf32>
    %408 = arith.mulf %404, %407 : vector<16x32xf32>
    %409 = arith.subf %395, %407 : vector<16x32xf32>
    %410 = arith.addf %408, %409 : vector<16x32xf32>
    %411 = arith.mulf %403, %407 : vector<16x32xf32>
    %412 = arith.subf %394, %407 : vector<16x32xf32>
    %413 = arith.addf %411, %412 : vector<16x32xf32>
    %414 = arith.mulf %410, %378 : vector<16x32xf32>
    %415 = arith.mulf %413, %406 : vector<16x32xf32>
    %416 = arith.addf %414, %415 : vector<16x32xf32>
    %417 = math.tanh %416 : vector<16x32xf32>
    %418 = arith.mulf %402, %417 : vector<16x32xf32>
    %419 = vector.extract_strided_slice %418 {offsets = [0, 0], sizes = [8, 32], strides = [1, 1]} : vector<16x32xf32> to vector<8x32xf32>
    %c0_111 = arith.constant 0 : index
    %c0_112 = arith.constant 0 : index
    %c0_113 = arith.constant 0 : index
    %420 = vector.load %arg6[%c0_111, %c0_112, %c0_113] : memref<8x8x64xf32, #tpu.memory_space<vmem>>, vector<1x8x32xf32>
    %421 = vector.shape_cast %420 : vector<1x8x32xf32> to vector<8x32xf32>
    %422 = vector.shape_cast %419 : vector<8x32xf32> to vector<1x8x32xf32>
    tpu.vector_store %arg6[%c0_111, %c0_112, %c0_113], %422 {strides = array<i32>} : memref<8x8x64xf32, #tpu.memory_space<vmem>>, vector<1x8x32xf32>,
    %423 = vector.extract_strided_slice %418 {offsets = [8, 0], sizes = [8, 32], strides = [1, 1]} : vector<16x32xf32> to vector<8x32xf32>
    %c0_114 = arith.constant 0 : index
    %c0_115 = arith.constant 0 : index
    %c32_116 = arith.constant 32 : index
    %424 = vector.load %arg6[%c0_114, %c0_115, %c32_116] : memref<8x8x64xf32, #tpu.memory_space<vmem>>, vector<1x8x32xf32>
    %425 = vector.shape_cast %424 : vector<1x8x32xf32> to vector<8x32xf32>
    %426 = vector.shape_cast %423 : vector<8x32xf32> to vector<1x8x32xf32>
    tpu.vector_store %arg6[%c0_114, %c0_115, %c32_116], %426 {strides = array<i32>} : memref<8x8x64xf32, #tpu.memory_space<vmem>>, vector<1x8x32xf32>,
    %c16_117 = arith.constant 16 : index
    %c0_118 = arith.constant 0 : index
    %427 = vector.load %arg7[%c16_117, %c0_118] : memref<128x256xf32, #tpu.memory_space<vmem>>, vector<16x256xf32>
    %cst_119 = arith.constant dense<0.000000e+00> : vector<16x256xf32>
    %428 = tpu.matmul %418, %369, %cst_119 {dimension_numbers = #tpu.dot_dimension_numbers<[1], [0], [0], [1], [0, 0, 1, 1], [], []>} : vector<16x32xf32>, vector<32x256xf32>, vector<16x256xf32> -> vector<16x256xf32>
    %429 = arith.addf %427, %428 : vector<16x256xf32>
    %430 = vector.extract_strided_slice %429 {offsets = [0, 128], sizes = [16, 8], strides = [1, 1]} : vector<16x256xf32> to vector<16x8xf32>
    %cst_120 = arith.constant dense<0xFF800000> : vector<16xf32>
    %431 = vector.multi_reduction <maximumf>, %430, %cst_120 [1] : vector<16x8xf32> to vector<16xf32>
    %432 = vector.shape_cast %431 : vector<16xf32> to vector<16x1xf32>
    %433 = vector.broadcast %432 : vector<16x1xf32> to vector<16x8xf32>
    %434 = arith.subf %430, %433 : vector<16x8xf32>
    %435 = math.exp %434 : vector<16x8xf32>
    %cst_121 = arith.constant dense<0.000000e+00> : vector<16x128xf32>
    %436 = tpu.matmul %435, %0, %cst_121 {dimension_numbers = #tpu.dot_dimension_numbers<[1], [0], [0], [1], [0, 0, 1, 1], [], []>} : vector<16x8xf32>, vector<8x128xf32>, vector<16x128xf32> -> vector<16x128xf32>
    %437 = vector.extract_strided_slice %436 {offsets = [0, 0], sizes = [16, 64], strides = [1, 1]} : vector<16x128xf32> to vector<16x64xf32>
    %438 = vector.extract_strided_slice %436 {offsets = [0, 64], sizes = [16, 64], strides = [1, 1]} : vector<16x128xf32> to vector<16x64xf32>
    %439 = arith.divf %437, %438 : vector<16x64xf32>
    %440 = vector.extract_strided_slice %439 {offsets = [0, 0], sizes = [16, 32], strides = [1, 1]} : vector<16x64xf32> to vector<16x32xf32>
    %cst_122 = arith.constant 1.000000e+00 : f32
    %441 = vector.broadcast %cst_122 : f32 to vector<16x32xf32>
    %442 = arith.subf %441, %440 : vector<16x32xf32>
    %443 = vector.extract_strided_slice %439 {offsets = [0, 32], sizes = [16, 32], strides = [1, 1]} : vector<16x64xf32> to vector<16x32xf32>
    %444 = vector.extract_strided_slice %429 {offsets = [0, 0], sizes = [16, 96], strides = [1, 1]} : vector<16x256xf32> to vector<16x96xf32>
    %445 = arith.negf %444 : vector<16x96xf32>
    %446 = math.exp %445 : vector<16x96xf32>
    %cst_123 = arith.constant 1.000000e+00 : f32
    %447 = vector.broadcast %cst_123 : f32 to vector<16x96xf32>
    %448 = arith.addf %447, %446 : vector<16x96xf32>
    %449 = arith.divf %447, %448 : vector<16x96xf32>
    %450 = vector.extract_strided_slice %449 {offsets = [0, 0], sizes = [16, 32], strides = [1, 1]} : vector<16x96xf32> to vector<16x32xf32>
    %451 = vector.extract_strided_slice %449 {offsets = [0, 32], sizes = [16, 32], strides = [1, 1]} : vector<16x96xf32> to vector<16x32xf32>
    %452 = vector.extract_strided_slice %449 {offsets = [0, 64], sizes = [16, 32], strides = [1, 1]} : vector<16x96xf32> to vector<16x32xf32>
    %453 = vector.extract_strided_slice %429 {offsets = [0, 96], sizes = [16, 32], strides = [1, 1]} : vector<16x256xf32> to vector<16x32xf32>
    %454 = math.tanh %453 : vector<16x32xf32>
    %455 = arith.mulf %443, %442 : vector<16x32xf32>
    %456 = arith.mulf %452, %455 : vector<16x32xf32>
    %457 = arith.subf %443, %455 : vector<16x32xf32>
    %458 = arith.addf %456, %457 : vector<16x32xf32>
    %459 = arith.mulf %451, %455 : vector<16x32xf32>
    %460 = arith.subf %442, %455 : vector<16x32xf32>
    %461 = arith.addf %459, %460 : vector<16x32xf32>
    %462 = arith.mulf %458, %416 : vector<16x32xf32>
    %463 = arith.mulf %461, %454 : vector<16x32xf32>
    %464 = arith.addf %462, %463 : vector<16x32xf32>
    %465 = math.tanh %464 : vector<16x32xf32>
    %466 = arith.mulf %450, %465 : vector<16x32xf32>
    %467 = vector.extract_strided_slice %466 {offsets = [0, 0], sizes = [8, 32], strides = [1, 1]} : vector<16x32xf32> to vector<8x32xf32>
    %c1_124 = arith.constant 1 : index
    %c0_125 = arith.constant 0 : index
    %c0_126 = arith.constant 0 : index
    %468 = vector.load %arg6[%c1_124, %c0_125, %c0_126] : memref<8x8x64xf32, #tpu.memory_space<vmem>>, vector<1x8x32xf32>
    %469 = vector.shape_cast %468 : vector<1x8x32xf32> to vector<8x32xf32>
    %470 = vector.shape_cast %467 : vector<8x32xf32> to vector<1x8x32xf32>
    tpu.vector_store %arg6[%c1_124, %c0_125, %c0_126], %470 {strides = array<i32>} : memref<8x8x64xf32, #tpu.memory_space<vmem>>, vector<1x8x32xf32>,
    %471 = vector.extract_strided_slice %466 {offsets = [8, 0], sizes = [8, 32], strides = [1, 1]} : vector<16x32xf32> to vector<8x32xf32>
    %c1_127 = arith.constant 1 : index
    %c0_128 = arith.constant 0 : index
    %c32_129 = arith.constant 32 : index
    %472 = vector.load %arg6[%c1_127, %c0_128, %c32_129] : memref<8x8x64xf32, #tpu.memory_space<vmem>>, vector<1x8x32xf32>
    %473 = vector.shape_cast %472 : vector<1x8x32xf32> to vector<8x32xf32>
    %474 = vector.shape_cast %471 : vector<8x32xf32> to vector<1x8x32xf32>
    tpu.vector_store %arg6[%c1_127, %c0_128, %c32_129], %474 {strides = array<i32>} : memref<8x8x64xf32, #tpu.memory_space<vmem>>, vector<1x8x32xf32>,
    %c32_130 = arith.constant 32 : index
    %c0_131 = arith.constant 0 : index
    %475 = vector.load %arg7[%c32_130, %c0_131] : memref<128x256xf32, #tpu.memory_space<vmem>>, vector<16x256xf32>
    %cst_132 = arith.constant dense<0.000000e+00> : vector<16x256xf32>
    %476 = tpu.matmul %466, %369, %cst_132 {dimension_numbers = #tpu.dot_dimension_numbers<[1], [0], [0], [1], [0, 0, 1, 1], [], []>} : vector<16x32xf32>, vector<32x256xf32>, vector<16x256xf32> -> vector<16x256xf32>
    %477 = arith.addf %475, %476 : vector<16x256xf32>
    %478 = vector.extract_strided_slice %477 {offsets = [0, 128], sizes = [16, 8], strides = [1, 1]} : vector<16x256xf32> to vector<16x8xf32>
    %cst_133 = arith.constant dense<0xFF800000> : vector<16xf32>
    %479 = vector.multi_reduction <maximumf>, %478, %cst_133 [1] : vector<16x8xf32> to vector<16xf32>
    %480 = vector.shape_cast %479 : vector<16xf32> to vector<16x1xf32>
    %481 = vector.broadcast %480 : vector<16x1xf32> to vector<16x8xf32>
    %482 = arith.subf %478, %481 : vector<16x8xf32>
    %483 = math.exp %482 : vector<16x8xf32>
    %cst_134 = arith.constant dense<0.000000e+00> : vector<16x128xf32>
    %484 = tpu.matmul %483, %0, %cst_134 {dimension_numbers = #tpu.dot_dimension_numbers<[1], [0], [0], [1], [0, 0, 1, 1], [], []>} : vector<16x8xf32>, vector<8x128xf32>, vector<16x128xf32> -> vector<16x128xf32>
    %485 = vector.extract_strided_slice %484 {offsets = [0, 0], sizes = [16, 64], strides = [1, 1]} : vector<16x128xf32> to vector<16x64xf32>
    %486 = vector.extract_strided_slice %484 {offsets = [0, 64], sizes = [16, 64], strides = [1, 1]} : vector<16x128xf32> to vector<16x64xf32>
    %487 = arith.divf %485, %486 : vector<16x64xf32>
    %488 = vector.extract_strided_slice %487 {offsets = [0, 0], sizes = [16, 32], strides = [1, 1]} : vector<16x64xf32> to vector<16x32xf32>
    %cst_135 = arith.constant 1.000000e+00 : f32
    %489 = vector.broadcast %cst_135 : f32 to vector<16x32xf32>
    %490 = arith.subf %489, %488 : vector<16x32xf32>
    %491 = vector.extract_strided_slice %487 {offsets = [0, 32], sizes = [16, 32], strides = [1, 1]} : vector<16x64xf32> to vector<16x32xf32>
    %492 = vector.extract_strided_slice %477 {offsets = [0, 0], sizes = [16, 96], strides = [1, 1]} : vector<16x256xf32> to vector<16x96xf32>
    %493 = arith.negf %492 : vector<16x96xf32>
    %494 = math.exp %493 : vector<16x96xf32>
    %cst_136 = arith.constant 1.000000e+00 : f32
    %495 = vector.broadcast %cst_136 : f32 to vector<16x96xf32>
    %496 = arith.addf %495, %494 : vector<16x96xf32>
    %497 = arith.divf %495, %496 : vector<16x96xf32>
    %498 = vector.extract_strided_slice %497 {offsets = [0, 0], sizes = [16, 32], strides = [1, 1]} : vector<16x96xf32> to vector<16x32xf32>
    %499 = vector.extract_strided_slice %497 {offsets = [0, 32], sizes = [16, 32], strides = [1, 1]} : vector<16x96xf32> to vector<16x32xf32>
    %500 = vector.extract_strided_slice %497 {offsets = [0, 64], sizes = [16, 32], strides = [1, 1]} : vector<16x96xf32> to vector<16x32xf32>
    %501 = vector.extract_strided_slice %477 {offsets = [0, 96], sizes = [16, 32], strides = [1, 1]} : vector<16x256xf32> to vector<16x32xf32>
    %502 = math.tanh %501 : vector<16x32xf32>
    %503 = arith.mulf %491, %490 : vector<16x32xf32>
    %504 = arith.mulf %500, %503 : vector<16x32xf32>
    %505 = arith.subf %491, %503 : vector<16x32xf32>
    %506 = arith.addf %504, %505 : vector<16x32xf32>
    %507 = arith.mulf %499, %503 : vector<16x32xf32>
    %508 = arith.subf %490, %503 : vector<16x32xf32>
    %509 = arith.addf %507, %508 : vector<16x32xf32>
    %510 = arith.mulf %506, %464 : vector<16x32xf32>
    %511 = arith.mulf %509, %502 : vector<16x32xf32>
    %512 = arith.addf %510, %511 : vector<16x32xf32>
    %513 = math.tanh %512 : vector<16x32xf32>
    %514 = arith.mulf %498, %513 : vector<16x32xf32>
    %515 = vector.extract_strided_slice %514 {offsets = [0, 0], sizes = [8, 32], strides = [1, 1]} : vector<16x32xf32> to vector<8x32xf32>
    %c2 = arith.constant 2 : index
    %c0_137 = arith.constant 0 : index
    %c0_138 = arith.constant 0 : index
    %516 = vector.load %arg6[%c2, %c0_137, %c0_138] : memref<8x8x64xf32, #tpu.memory_space<vmem>>, vector<1x8x32xf32>
    %517 = vector.shape_cast %516 : vector<1x8x32xf32> to vector<8x32xf32>
    %518 = vector.shape_cast %515 : vector<8x32xf32> to vector<1x8x32xf32>
    tpu.vector_store %arg6[%c2, %c0_137, %c0_138], %518 {strides = array<i32>} : memref<8x8x64xf32, #tpu.memory_space<vmem>>, vector<1x8x32xf32>,
    %519 = vector.extract_strided_slice %514 {offsets = [8, 0], sizes = [8, 32], strides = [1, 1]} : vector<16x32xf32> to vector<8x32xf32>
    %c2_139 = arith.constant 2 : index
    %c0_140 = arith.constant 0 : index
    %c32_141 = arith.constant 32 : index
    %520 = vector.load %arg6[%c2_139, %c0_140, %c32_141] : memref<8x8x64xf32, #tpu.memory_space<vmem>>, vector<1x8x32xf32>
    %521 = vector.shape_cast %520 : vector<1x8x32xf32> to vector<8x32xf32>
    %522 = vector.shape_cast %519 : vector<8x32xf32> to vector<1x8x32xf32>
    tpu.vector_store %arg6[%c2_139, %c0_140, %c32_141], %522 {strides = array<i32>} : memref<8x8x64xf32, #tpu.memory_space<vmem>>, vector<1x8x32xf32>,
    %c48_142 = arith.constant 48 : index
    %c0_143 = arith.constant 0 : index
    %523 = vector.load %arg7[%c48_142, %c0_143] : memref<128x256xf32, #tpu.memory_space<vmem>>, vector<16x256xf32>
    %cst_144 = arith.constant dense<0.000000e+00> : vector<16x256xf32>
    %524 = tpu.matmul %514, %369, %cst_144 {dimension_numbers = #tpu.dot_dimension_numbers<[1], [0], [0], [1], [0, 0, 1, 1], [], []>} : vector<16x32xf32>, vector<32x256xf32>, vector<16x256xf32> -> vector<16x256xf32>
    %525 = arith.addf %523, %524 : vector<16x256xf32>
    %526 = vector.extract_strided_slice %525 {offsets = [0, 128], sizes = [16, 8], strides = [1, 1]} : vector<16x256xf32> to vector<16x8xf32>
    %cst_145 = arith.constant dense<0xFF800000> : vector<16xf32>
    %527 = vector.multi_reduction <maximumf>, %526, %cst_145 [1] : vector<16x8xf32> to vector<16xf32>
    %528 = vector.shape_cast %527 : vector<16xf32> to vector<16x1xf32>
    %529 = vector.broadcast %528 : vector<16x1xf32> to vector<16x8xf32>
    %530 = arith.subf %526, %529 : vector<16x8xf32>
    %531 = math.exp %530 : vector<16x8xf32>
    %cst_146 = arith.constant dense<0.000000e+00> : vector<16x128xf32>
    %532 = tpu.matmul %531, %0, %cst_146 {dimension_numbers = #tpu.dot_dimension_numbers<[1], [0], [0], [1], [0, 0, 1, 1], [], []>} : vector<16x8xf32>, vector<8x128xf32>, vector<16x128xf32> -> vector<16x128xf32>
    %533 = vector.extract_strided_slice %532 {offsets = [0, 0], sizes = [16, 64], strides = [1, 1]} : vector<16x128xf32> to vector<16x64xf32>
    %534 = vector.extract_strided_slice %532 {offsets = [0, 64], sizes = [16, 64], strides = [1, 1]} : vector<16x128xf32> to vector<16x64xf32>
    %535 = arith.divf %533, %534 : vector<16x64xf32>
    %536 = vector.extract_strided_slice %535 {offsets = [0, 0], sizes = [16, 32], strides = [1, 1]} : vector<16x64xf32> to vector<16x32xf32>
    %cst_147 = arith.constant 1.000000e+00 : f32
    %537 = vector.broadcast %cst_147 : f32 to vector<16x32xf32>
    %538 = arith.subf %537, %536 : vector<16x32xf32>
    %539 = vector.extract_strided_slice %535 {offsets = [0, 32], sizes = [16, 32], strides = [1, 1]} : vector<16x64xf32> to vector<16x32xf32>
    %540 = vector.extract_strided_slice %525 {offsets = [0, 0], sizes = [16, 96], strides = [1, 1]} : vector<16x256xf32> to vector<16x96xf32>
    %541 = arith.negf %540 : vector<16x96xf32>
    %542 = math.exp %541 : vector<16x96xf32>
    %cst_148 = arith.constant 1.000000e+00 : f32
    %543 = vector.broadcast %cst_148 : f32 to vector<16x96xf32>
    %544 = arith.addf %543, %542 : vector<16x96xf32>
    %545 = arith.divf %543, %544 : vector<16x96xf32>
    %546 = vector.extract_strided_slice %545 {offsets = [0, 0], sizes = [16, 32], strides = [1, 1]} : vector<16x96xf32> to vector<16x32xf32>
    %547 = vector.extract_strided_slice %545 {offsets = [0, 32], sizes = [16, 32], strides = [1, 1]} : vector<16x96xf32> to vector<16x32xf32>
    %548 = vector.extract_strided_slice %545 {offsets = [0, 64], sizes = [16, 32], strides = [1, 1]} : vector<16x96xf32> to vector<16x32xf32>
    %549 = vector.extract_strided_slice %525 {offsets = [0, 96], sizes = [16, 32], strides = [1, 1]} : vector<16x256xf32> to vector<16x32xf32>
    %550 = math.tanh %549 : vector<16x32xf32>
    %551 = arith.mulf %539, %538 : vector<16x32xf32>
    %552 = arith.mulf %548, %551 : vector<16x32xf32>
    %553 = arith.subf %539, %551 : vector<16x32xf32>
    %554 = arith.addf %552, %553 : vector<16x32xf32>
    %555 = arith.mulf %547, %551 : vector<16x32xf32>
    %556 = arith.subf %538, %551 : vector<16x32xf32>
    %557 = arith.addf %555, %556 : vector<16x32xf32>
    %558 = arith.mulf %554, %512 : vector<16x32xf32>
    %559 = arith.mulf %557, %550 : vector<16x32xf32>
    %560 = arith.addf %558, %559 : vector<16x32xf32>
    %561 = math.tanh %560 : vector<16x32xf32>
    %562 = arith.mulf %546, %561 : vector<16x32xf32>
    %563 = vector.extract_strided_slice %562 {offsets = [0, 0], sizes = [8, 32], strides = [1, 1]} : vector<16x32xf32> to vector<8x32xf32>
    %c3 = arith.constant 3 : index
    %c0_149 = arith.constant 0 : index
    %c0_150 = arith.constant 0 : index
    %564 = vector.load %arg6[%c3, %c0_149, %c0_150] : memref<8x8x64xf32, #tpu.memory_space<vmem>>, vector<1x8x32xf32>
    %565 = vector.shape_cast %564 : vector<1x8x32xf32> to vector<8x32xf32>
    %566 = vector.shape_cast %563 : vector<8x32xf32> to vector<1x8x32xf32>
    tpu.vector_store %arg6[%c3, %c0_149, %c0_150], %566 {strides = array<i32>} : memref<8x8x64xf32, #tpu.memory_space<vmem>>, vector<1x8x32xf32>,
    %567 = vector.extract_strided_slice %562 {offsets = [8, 0], sizes = [8, 32], strides = [1, 1]} : vector<16x32xf32> to vector<8x32xf32>
    %c3_151 = arith.constant 3 : index
    %c0_152 = arith.constant 0 : index
    %c32_153 = arith.constant 32 : index
    %568 = vector.load %arg6[%c3_151, %c0_152, %c32_153] : memref<8x8x64xf32, #tpu.memory_space<vmem>>, vector<1x8x32xf32>
    %569 = vector.shape_cast %568 : vector<1x8x32xf32> to vector<8x32xf32>
    %570 = vector.shape_cast %567 : vector<8x32xf32> to vector<1x8x32xf32>
    tpu.vector_store %arg6[%c3_151, %c0_152, %c32_153], %570 {strides = array<i32>} : memref<8x8x64xf32, #tpu.memory_space<vmem>>, vector<1x8x32xf32>,
    %c64_154 = arith.constant 64 : index
    %c0_155 = arith.constant 0 : index
    %571 = vector.load %arg7[%c64_154, %c0_155] : memref<128x256xf32, #tpu.memory_space<vmem>>, vector<16x256xf32>
    %cst_156 = arith.constant dense<0.000000e+00> : vector<16x256xf32>
    %572 = tpu.matmul %562, %369, %cst_156 {dimension_numbers = #tpu.dot_dimension_numbers<[1], [0], [0], [1], [0, 0, 1, 1], [], []>} : vector<16x32xf32>, vector<32x256xf32>, vector<16x256xf32> -> vector<16x256xf32>
    %573 = arith.addf %571, %572 : vector<16x256xf32>
    %574 = vector.extract_strided_slice %573 {offsets = [0, 128], sizes = [16, 8], strides = [1, 1]} : vector<16x256xf32> to vector<16x8xf32>
    %cst_157 = arith.constant dense<0xFF800000> : vector<16xf32>
    %575 = vector.multi_reduction <maximumf>, %574, %cst_157 [1] : vector<16x8xf32> to vector<16xf32>
    %576 = vector.shape_cast %575 : vector<16xf32> to vector<16x1xf32>
    %577 = vector.broadcast %576 : vector<16x1xf32> to vector<16x8xf32>
    %578 = arith.subf %574, %577 : vector<16x8xf32>
    %579 = math.exp %578 : vector<16x8xf32>
    %cst_158 = arith.constant dense<0.000000e+00> : vector<16x128xf32>
    %580 = tpu.matmul %579, %0, %cst_158 {dimension_numbers = #tpu.dot_dimension_numbers<[1], [0], [0], [1], [0, 0, 1, 1], [], []>} : vector<16x8xf32>, vector<8x128xf32>, vector<16x128xf32> -> vector<16x128xf32>
    %581 = vector.extract_strided_slice %580 {offsets = [0, 0], sizes = [16, 64], strides = [1, 1]} : vector<16x128xf32> to vector<16x64xf32>
    %582 = vector.extract_strided_slice %580 {offsets = [0, 64], sizes = [16, 64], strides = [1, 1]} : vector<16x128xf32> to vector<16x64xf32>
    %583 = arith.divf %581, %582 : vector<16x64xf32>
    %584 = vector.extract_strided_slice %583 {offsets = [0, 0], sizes = [16, 32], strides = [1, 1]} : vector<16x64xf32> to vector<16x32xf32>
    %cst_159 = arith.constant 1.000000e+00 : f32
    %585 = vector.broadcast %cst_159 : f32 to vector<16x32xf32>
    %586 = arith.subf %585, %584 : vector<16x32xf32>
    %587 = vector.extract_strided_slice %583 {offsets = [0, 32], sizes = [16, 32], strides = [1, 1]} : vector<16x64xf32> to vector<16x32xf32>
    %588 = vector.extract_strided_slice %573 {offsets = [0, 0], sizes = [16, 96], strides = [1, 1]} : vector<16x256xf32> to vector<16x96xf32>
    %589 = arith.negf %588 : vector<16x96xf32>
    %590 = math.exp %589 : vector<16x96xf32>
    %cst_160 = arith.constant 1.000000e+00 : f32
    %591 = vector.broadcast %cst_160 : f32 to vector<16x96xf32>
    %592 = arith.addf %591, %590 : vector<16x96xf32>
    %593 = arith.divf %591, %592 : vector<16x96xf32>
    %594 = vector.extract_strided_slice %593 {offsets = [0, 0], sizes = [16, 32], strides = [1, 1]} : vector<16x96xf32> to vector<16x32xf32>
    %595 = vector.extract_strided_slice %593 {offsets = [0, 32], sizes = [16, 32], strides = [1, 1]} : vector<16x96xf32> to vector<16x32xf32>
    %596 = vector.extract_strided_slice %593 {offsets = [0, 64], sizes = [16, 32], strides = [1, 1]} : vector<16x96xf32> to vector<16x32xf32>
    %597 = vector.extract_strided_slice %573 {offsets = [0, 96], sizes = [16, 32], strides = [1, 1]} : vector<16x256xf32> to vector<16x32xf32>
    %598 = math.tanh %597 : vector<16x32xf32>
    %599 = arith.mulf %587, %586 : vector<16x32xf32>
    %600 = arith.mulf %596, %599 : vector<16x32xf32>
    %601 = arith.subf %587, %599 : vector<16x32xf32>
    %602 = arith.addf %600, %601 : vector<16x32xf32>
    %603 = arith.mulf %595, %599 : vector<16x32xf32>
    %604 = arith.subf %586, %599 : vector<16x32xf32>
    %605 = arith.addf %603, %604 : vector<16x32xf32>
    %606 = arith.mulf %602, %560 : vector<16x32xf32>
    %607 = arith.mulf %605, %598 : vector<16x32xf32>
    %608 = arith.addf %606, %607 : vector<16x32xf32>
    %609 = math.tanh %608 : vector<16x32xf32>
    %610 = arith.mulf %594, %609 : vector<16x32xf32>
    %611 = vector.extract_strided_slice %610 {offsets = [0, 0], sizes = [8, 32], strides = [1, 1]} : vector<16x32xf32> to vector<8x32xf32>
    %c4 = arith.constant 4 : index
    %c0_161 = arith.constant 0 : index
    %c0_162 = arith.constant 0 : index
    %612 = vector.load %arg6[%c4, %c0_161, %c0_162] : memref<8x8x64xf32, #tpu.memory_space<vmem>>, vector<1x8x32xf32>
    %613 = vector.shape_cast %612 : vector<1x8x32xf32> to vector<8x32xf32>
    %614 = vector.shape_cast %611 : vector<8x32xf32> to vector<1x8x32xf32>
    tpu.vector_store %arg6[%c4, %c0_161, %c0_162], %614 {strides = array<i32>} : memref<8x8x64xf32, #tpu.memory_space<vmem>>, vector<1x8x32xf32>,
    %615 = vector.extract_strided_slice %610 {offsets = [8, 0], sizes = [8, 32], strides = [1, 1]} : vector<16x32xf32> to vector<8x32xf32>
    %c4_163 = arith.constant 4 : index
    %c0_164 = arith.constant 0 : index
    %c32_165 = arith.constant 32 : index
    %616 = vector.load %arg6[%c4_163, %c0_164, %c32_165] : memref<8x8x64xf32, #tpu.memory_space<vmem>>, vector<1x8x32xf32>
    %617 = vector.shape_cast %616 : vector<1x8x32xf32> to vector<8x32xf32>
    %618 = vector.shape_cast %615 : vector<8x32xf32> to vector<1x8x32xf32>
    tpu.vector_store %arg6[%c4_163, %c0_164, %c32_165], %618 {strides = array<i32>} : memref<8x8x64xf32, #tpu.memory_space<vmem>>, vector<1x8x32xf32>,
    %c80_166 = arith.constant 80 : index
    %c0_167 = arith.constant 0 : index
    %619 = vector.load %arg7[%c80_166, %c0_167] : memref<128x256xf32, #tpu.memory_space<vmem>>, vector<16x256xf32>
    %cst_168 = arith.constant dense<0.000000e+00> : vector<16x256xf32>
    %620 = tpu.matmul %610, %369, %cst_168 {dimension_numbers = #tpu.dot_dimension_numbers<[1], [0], [0], [1], [0, 0, 1, 1], [], []>} : vector<16x32xf32>, vector<32x256xf32>, vector<16x256xf32> -> vector<16x256xf32>
    %621 = arith.addf %619, %620 : vector<16x256xf32>
    %622 = vector.extract_strided_slice %621 {offsets = [0, 128], sizes = [16, 8], strides = [1, 1]} : vector<16x256xf32> to vector<16x8xf32>
    %cst_169 = arith.constant dense<0xFF800000> : vector<16xf32>
    %623 = vector.multi_reduction <maximumf>, %622, %cst_169 [1] : vector<16x8xf32> to vector<16xf32>
    %624 = vector.shape_cast %623 : vector<16xf32> to vector<16x1xf32>
    %625 = vector.broadcast %624 : vector<16x1xf32> to vector<16x8xf32>
    %626 = arith.subf %622, %625 : vector<16x8xf32>
    %627 = math.exp %626 : vector<16x8xf32>
    %cst_170 = arith.constant dense<0.000000e+00> : vector<16x128xf32>
    %628 = tpu.matmul %627, %0, %cst_170 {dimension_numbers = #tpu.dot_dimension_numbers<[1], [0], [0], [1], [0, 0, 1, 1], [], []>} : vector<16x8xf32>, vector<8x128xf32>, vector<16x128xf32> -> vector<16x128xf32>
    %629 = vector.extract_strided_slice %628 {offsets = [0, 0], sizes = [16, 64], strides = [1, 1]} : vector<16x128xf32> to vector<16x64xf32>
    %630 = vector.extract_strided_slice %628 {offsets = [0, 64], sizes = [16, 64], strides = [1, 1]} : vector<16x128xf32> to vector<16x64xf32>
    %631 = arith.divf %629, %630 : vector<16x64xf32>
    %632 = vector.extract_strided_slice %631 {offsets = [0, 0], sizes = [16, 32], strides = [1, 1]} : vector<16x64xf32> to vector<16x32xf32>
    %cst_171 = arith.constant 1.000000e+00 : f32
    %633 = vector.broadcast %cst_171 : f32 to vector<16x32xf32>
    %634 = arith.subf %633, %632 : vector<16x32xf32>
    %635 = vector.extract_strided_slice %631 {offsets = [0, 32], sizes = [16, 32], strides = [1, 1]} : vector<16x64xf32> to vector<16x32xf32>
    %636 = vector.extract_strided_slice %621 {offsets = [0, 0], sizes = [16, 96], strides = [1, 1]} : vector<16x256xf32> to vector<16x96xf32>
    %637 = arith.negf %636 : vector<16x96xf32>
    %638 = math.exp %637 : vector<16x96xf32>
    %cst_172 = arith.constant 1.000000e+00 : f32
    %639 = vector.broadcast %cst_172 : f32 to vector<16x96xf32>
    %640 = arith.addf %639, %638 : vector<16x96xf32>
    %641 = arith.divf %639, %640 : vector<16x96xf32>
    %642 = vector.extract_strided_slice %641 {offsets = [0, 0], sizes = [16, 32], strides = [1, 1]} : vector<16x96xf32> to vector<16x32xf32>
    %643 = vector.extract_strided_slice %641 {offsets = [0, 32], sizes = [16, 32], strides = [1, 1]} : vector<16x96xf32> to vector<16x32xf32>
    %644 = vector.extract_strided_slice %641 {offsets = [0, 64], sizes = [16, 32], strides = [1, 1]} : vector<16x96xf32> to vector<16x32xf32>
    %645 = vector.extract_strided_slice %621 {offsets = [0, 96], sizes = [16, 32], strides = [1, 1]} : vector<16x256xf32> to vector<16x32xf32>
    %646 = math.tanh %645 : vector<16x32xf32>
    %647 = arith.mulf %635, %634 : vector<16x32xf32>
    %648 = arith.mulf %644, %647 : vector<16x32xf32>
    %649 = arith.subf %635, %647 : vector<16x32xf32>
    %650 = arith.addf %648, %649 : vector<16x32xf32>
    %651 = arith.mulf %643, %647 : vector<16x32xf32>
    %652 = arith.subf %634, %647 : vector<16x32xf32>
    %653 = arith.addf %651, %652 : vector<16x32xf32>
    %654 = arith.mulf %650, %608 : vector<16x32xf32>
    %655 = arith.mulf %653, %646 : vector<16x32xf32>
    %656 = arith.addf %654, %655 : vector<16x32xf32>
    %657 = math.tanh %656 : vector<16x32xf32>
    %658 = arith.mulf %642, %657 : vector<16x32xf32>
    %659 = vector.extract_strided_slice %658 {offsets = [0, 0], sizes = [8, 32], strides = [1, 1]} : vector<16x32xf32> to vector<8x32xf32>
    %c5 = arith.constant 5 : index
    %c0_173 = arith.constant 0 : index
    %c0_174 = arith.constant 0 : index
    %660 = vector.load %arg6[%c5, %c0_173, %c0_174] : memref<8x8x64xf32, #tpu.memory_space<vmem>>, vector<1x8x32xf32>
    %661 = vector.shape_cast %660 : vector<1x8x32xf32> to vector<8x32xf32>
    %662 = vector.shape_cast %659 : vector<8x32xf32> to vector<1x8x32xf32>
    tpu.vector_store %arg6[%c5, %c0_173, %c0_174], %662 {strides = array<i32>} : memref<8x8x64xf32, #tpu.memory_space<vmem>>, vector<1x8x32xf32>,
    %663 = vector.extract_strided_slice %658 {offsets = [8, 0], sizes = [8, 32], strides = [1, 1]} : vector<16x32xf32> to vector<8x32xf32>
    %c5_175 = arith.constant 5 : index
    %c0_176 = arith.constant 0 : index
    %c32_177 = arith.constant 32 : index
    %664 = vector.load %arg6[%c5_175, %c0_176, %c32_177] : memref<8x8x64xf32, #tpu.memory_space<vmem>>, vector<1x8x32xf32>
    %665 = vector.shape_cast %664 : vector<1x8x32xf32> to vector<8x32xf32>
    %666 = vector.shape_cast %663 : vector<8x32xf32> to vector<1x8x32xf32>
    tpu.vector_store %arg6[%c5_175, %c0_176, %c32_177], %666 {strides = array<i32>} : memref<8x8x64xf32, #tpu.memory_space<vmem>>, vector<1x8x32xf32>,
    %c96_178 = arith.constant 96 : index
    %c0_179 = arith.constant 0 : index
    %667 = vector.load %arg7[%c96_178, %c0_179] : memref<128x256xf32, #tpu.memory_space<vmem>>, vector<16x256xf32>
    %cst_180 = arith.constant dense<0.000000e+00> : vector<16x256xf32>
    %668 = tpu.matmul %658, %369, %cst_180 {dimension_numbers = #tpu.dot_dimension_numbers<[1], [0], [0], [1], [0, 0, 1, 1], [], []>} : vector<16x32xf32>, vector<32x256xf32>, vector<16x256xf32> -> vector<16x256xf32>
    %669 = arith.addf %667, %668 : vector<16x256xf32>
    %670 = vector.extract_strided_slice %669 {offsets = [0, 128], sizes = [16, 8], strides = [1, 1]} : vector<16x256xf32> to vector<16x8xf32>
    %cst_181 = arith.constant dense<0xFF800000> : vector<16xf32>
    %671 = vector.multi_reduction <maximumf>, %670, %cst_181 [1] : vector<16x8xf32> to vector<16xf32>
    %672 = vector.shape_cast %671 : vector<16xf32> to vector<16x1xf32>
    %673 = vector.broadcast %672 : vector<16x1xf32> to vector<16x8xf32>
    %674 = arith.subf %670, %673 : vector<16x8xf32>
    %675 = math.exp %674 : vector<16x8xf32>
    %cst_182 = arith.constant dense<0.000000e+00> : vector<16x128xf32>
    %676 = tpu.matmul %675, %0, %cst_182 {dimension_numbers = #tpu.dot_dimension_numbers<[1], [0], [0], [1], [0, 0, 1, 1], [], []>} : vector<16x8xf32>, vector<8x128xf32>, vector<16x128xf32> -> vector<16x128xf32>
    %677 = vector.extract_strided_slice %676 {offsets = [0, 0], sizes = [16, 64], strides = [1, 1]} : vector<16x128xf32> to vector<16x64xf32>
    %678 = vector.extract_strided_slice %676 {offsets = [0, 64], sizes = [16, 64], strides = [1, 1]} : vector<16x128xf32> to vector<16x64xf32>
    %679 = arith.divf %677, %678 : vector<16x64xf32>
    %680 = vector.extract_strided_slice %679 {offsets = [0, 0], sizes = [16, 32], strides = [1, 1]} : vector<16x64xf32> to vector<16x32xf32>
    %cst_183 = arith.constant 1.000000e+00 : f32
    %681 = vector.broadcast %cst_183 : f32 to vector<16x32xf32>
    %682 = arith.subf %681, %680 : vector<16x32xf32>
    %683 = vector.extract_strided_slice %679 {offsets = [0, 32], sizes = [16, 32], strides = [1, 1]} : vector<16x64xf32> to vector<16x32xf32>
    %684 = vector.extract_strided_slice %669 {offsets = [0, 0], sizes = [16, 96], strides = [1, 1]} : vector<16x256xf32> to vector<16x96xf32>
    %685 = arith.negf %684 : vector<16x96xf32>
    %686 = math.exp %685 : vector<16x96xf32>
    %cst_184 = arith.constant 1.000000e+00 : f32
    %687 = vector.broadcast %cst_184 : f32 to vector<16x96xf32>
    %688 = arith.addf %687, %686 : vector<16x96xf32>
    %689 = arith.divf %687, %688 : vector<16x96xf32>
    %690 = vector.extract_strided_slice %689 {offsets = [0, 0], sizes = [16, 32], strides = [1, 1]} : vector<16x96xf32> to vector<16x32xf32>
    %691 = vector.extract_strided_slice %689 {offsets = [0, 32], sizes = [16, 32], strides = [1, 1]} : vector<16x96xf32> to vector<16x32xf32>
    %692 = vector.extract_strided_slice %689 {offsets = [0, 64], sizes = [16, 32], strides = [1, 1]} : vector<16x96xf32> to vector<16x32xf32>
    %693 = vector.extract_strided_slice %669 {offsets = [0, 96], sizes = [16, 32], strides = [1, 1]} : vector<16x256xf32> to vector<16x32xf32>
    %694 = math.tanh %693 : vector<16x32xf32>
    %695 = arith.mulf %683, %682 : vector<16x32xf32>
    %696 = arith.mulf %692, %695 : vector<16x32xf32>
    %697 = arith.subf %683, %695 : vector<16x32xf32>
    %698 = arith.addf %696, %697 : vector<16x32xf32>
    %699 = arith.mulf %691, %695 : vector<16x32xf32>
    %700 = arith.subf %682, %695 : vector<16x32xf32>
    %701 = arith.addf %699, %700 : vector<16x32xf32>
    %702 = arith.mulf %698, %656 : vector<16x32xf32>
    %703 = arith.mulf %701, %694 : vector<16x32xf32>
    %704 = arith.addf %702, %703 : vector<16x32xf32>
    %705 = math.tanh %704 : vector<16x32xf32>
    %706 = arith.mulf %690, %705 : vector<16x32xf32>
    %707 = vector.extract_strided_slice %706 {offsets = [0, 0], sizes = [8, 32], strides = [1, 1]} : vector<16x32xf32> to vector<8x32xf32>
    %c6 = arith.constant 6 : index
    %c0_185 = arith.constant 0 : index
    %c0_186 = arith.constant 0 : index
    %708 = vector.load %arg6[%c6, %c0_185, %c0_186] : memref<8x8x64xf32, #tpu.memory_space<vmem>>, vector<1x8x32xf32>
    %709 = vector.shape_cast %708 : vector<1x8x32xf32> to vector<8x32xf32>
    %710 = vector.shape_cast %707 : vector<8x32xf32> to vector<1x8x32xf32>
    tpu.vector_store %arg6[%c6, %c0_185, %c0_186], %710 {strides = array<i32>} : memref<8x8x64xf32, #tpu.memory_space<vmem>>, vector<1x8x32xf32>,
    %711 = vector.extract_strided_slice %706 {offsets = [8, 0], sizes = [8, 32], strides = [1, 1]} : vector<16x32xf32> to vector<8x32xf32>
    %c6_187 = arith.constant 6 : index
    %c0_188 = arith.constant 0 : index
    %c32_189 = arith.constant 32 : index
    %712 = vector.load %arg6[%c6_187, %c0_188, %c32_189] : memref<8x8x64xf32, #tpu.memory_space<vmem>>, vector<1x8x32xf32>
    %713 = vector.shape_cast %712 : vector<1x8x32xf32> to vector<8x32xf32>
    %714 = vector.shape_cast %711 : vector<8x32xf32> to vector<1x8x32xf32>
    tpu.vector_store %arg6[%c6_187, %c0_188, %c32_189], %714 {strides = array<i32>} : memref<8x8x64xf32, #tpu.memory_space<vmem>>, vector<1x8x32xf32>,
    %c112_190 = arith.constant 112 : index
    %c0_191 = arith.constant 0 : index
    %715 = vector.load %arg7[%c112_190, %c0_191] : memref<128x256xf32, #tpu.memory_space<vmem>>, vector<16x256xf32>
    %cst_192 = arith.constant dense<0.000000e+00> : vector<16x256xf32>
    %716 = tpu.matmul %706, %369, %cst_192 {dimension_numbers = #tpu.dot_dimension_numbers<[1], [0], [0], [1], [0, 0, 1, 1], [], []>} : vector<16x32xf32>, vector<32x256xf32>, vector<16x256xf32> -> vector<16x256xf32>
    %717 = arith.addf %715, %716 : vector<16x256xf32>
    %718 = vector.extract_strided_slice %717 {offsets = [0, 128], sizes = [16, 8], strides = [1, 1]} : vector<16x256xf32> to vector<16x8xf32>
    %cst_193 = arith.constant dense<0xFF800000> : vector<16xf32>
    %719 = vector.multi_reduction <maximumf>, %718, %cst_193 [1] : vector<16x8xf32> to vector<16xf32>
    %720 = vector.shape_cast %719 : vector<16xf32> to vector<16x1xf32>
    %721 = vector.broadcast %720 : vector<16x1xf32> to vector<16x8xf32>
    %722 = arith.subf %718, %721 : vector<16x8xf32>
    %723 = math.exp %722 : vector<16x8xf32>
    %cst_194 = arith.constant dense<0.000000e+00> : vector<16x128xf32>
    %724 = tpu.matmul %723, %0, %cst_194 {dimension_numbers = #tpu.dot_dimension_numbers<[1], [0], [0], [1], [0, 0, 1, 1], [], []>} : vector<16x8xf32>, vector<8x128xf32>, vector<16x128xf32> -> vector<16x128xf32>
    %725 = vector.extract_strided_slice %724 {offsets = [0, 0], sizes = [16, 64], strides = [1, 1]} : vector<16x128xf32> to vector<16x64xf32>
    %726 = vector.extract_strided_slice %724 {offsets = [0, 64], sizes = [16, 64], strides = [1, 1]} : vector<16x128xf32> to vector<16x64xf32>
    %727 = arith.divf %725, %726 : vector<16x64xf32>
    %728 = vector.extract_strided_slice %727 {offsets = [0, 0], sizes = [16, 32], strides = [1, 1]} : vector<16x64xf32> to vector<16x32xf32>
    %cst_195 = arith.constant 1.000000e+00 : f32
    %729 = vector.broadcast %cst_195 : f32 to vector<16x32xf32>
    %730 = arith.subf %729, %728 : vector<16x32xf32>
    %731 = vector.extract_strided_slice %727 {offsets = [0, 32], sizes = [16, 32], strides = [1, 1]} : vector<16x64xf32> to vector<16x32xf32>
    %732 = vector.extract_strided_slice %717 {offsets = [0, 0], sizes = [16, 96], strides = [1, 1]} : vector<16x256xf32> to vector<16x96xf32>
    %733 = arith.negf %732 : vector<16x96xf32>
    %734 = math.exp %733 : vector<16x96xf32>
    %cst_196 = arith.constant 1.000000e+00 : f32
    %735 = vector.broadcast %cst_196 : f32 to vector<16x96xf32>
    %736 = arith.addf %735, %734 : vector<16x96xf32>
    %737 = arith.divf %735, %736 : vector<16x96xf32>
    %738 = vector.extract_strided_slice %737 {offsets = [0, 0], sizes = [16, 32], strides = [1, 1]} : vector<16x96xf32> to vector<16x32xf32>
    %739 = vector.extract_strided_slice %737 {offsets = [0, 32], sizes = [16, 32], strides = [1, 1]} : vector<16x96xf32> to vector<16x32xf32>
    %740 = vector.extract_strided_slice %737 {offsets = [0, 64], sizes = [16, 32], strides = [1, 1]} : vector<16x96xf32> to vector<16x32xf32>
    %741 = vector.extract_strided_slice %717 {offsets = [0, 96], sizes = [16, 32], strides = [1, 1]} : vector<16x256xf32> to vector<16x32xf32>
    %742 = math.tanh %741 : vector<16x32xf32>
    %743 = arith.mulf %731, %730 : vector<16x32xf32>
    %744 = arith.mulf %740, %743 : vector<16x32xf32>
    %745 = arith.subf %731, %743 : vector<16x32xf32>
    %746 = arith.addf %744, %745 : vector<16x32xf32>
    %747 = arith.mulf %739, %743 : vector<16x32xf32>
    %748 = arith.subf %730, %743 : vector<16x32xf32>
    %749 = arith.addf %747, %748 : vector<16x32xf32>
    %750 = arith.mulf %746, %704 : vector<16x32xf32>
    %751 = arith.mulf %749, %742 : vector<16x32xf32>
    %752 = arith.addf %750, %751 : vector<16x32xf32>
    %753 = math.tanh %752 : vector<16x32xf32>
    %754 = arith.mulf %738, %753 : vector<16x32xf32>
    %755 = vector.extract_strided_slice %754 {offsets = [0, 0], sizes = [8, 32], strides = [1, 1]} : vector<16x32xf32> to vector<8x32xf32>
    %c7 = arith.constant 7 : index
    %c0_197 = arith.constant 0 : index
    %c0_198 = arith.constant 0 : index
    %756 = vector.load %arg6[%c7, %c0_197, %c0_198] : memref<8x8x64xf32, #tpu.memory_space<vmem>>, vector<1x8x32xf32>
    %757 = vector.shape_cast %756 : vector<1x8x32xf32> to vector<8x32xf32>
    %758 = vector.shape_cast %755 : vector<8x32xf32> to vector<1x8x32xf32>
    tpu.vector_store %arg6[%c7, %c0_197, %c0_198], %758 {strides = array<i32>} : memref<8x8x64xf32, #tpu.memory_space<vmem>>, vector<1x8x32xf32>,
    %759 = vector.extract_strided_slice %754 {offsets = [8, 0], sizes = [8, 32], strides = [1, 1]} : vector<16x32xf32> to vector<8x32xf32>
    %c7_199 = arith.constant 7 : index
    %c0_200 = arith.constant 0 : index
    %c32_201 = arith.constant 32 : index
    %760 = vector.load %arg6[%c7_199, %c0_200, %c32_201] : memref<8x8x64xf32, #tpu.memory_space<vmem>>, vector<1x8x32xf32>
    %761 = vector.shape_cast %760 : vector<1x8x32xf32> to vector<8x32xf32>
    %762 = vector.shape_cast %759 : vector<8x32xf32> to vector<1x8x32xf32>
    tpu.vector_store %arg6[%c7_199, %c0_200, %c32_201], %762 {strides = array<i32>} : memref<8x8x64xf32, #tpu.memory_space<vmem>>, vector<1x8x32xf32>,
    return
  }
  func.func @transform_0(%arg0: i32) -> (i32, i32) {
    %c0_i32 = arith.constant 0 : i32
    %c0_i32_0 = arith.constant 0 : i32
    %c0_i32_1 = arith.constant 0 : i32
    return %c0_i32, %c0_i32_0 : i32, i32
  }
  func.func @transform_1(%arg0: i32) -> (i32, i32, i32) {
    %c0_i32 = arith.constant 0 : i32
    %c0_i32_0 = arith.constant 0 : i32
    %c0_i32_1 = arith.constant 0 : i32
    %c0_i32_2 = arith.constant 0 : i32
    return %c0_i32, %c0_i32_0, %c0_i32_1 : i32, i32, i32
  }
  func.func @transform_2(%arg0: i32) -> (i32, i32, i32) {
    %c0_i32 = arith.constant 0 : i32
    %c0_i32_0 = arith.constant 0 : i32
    %c0_i32_1 = arith.constant 0 : i32
    %c0_i32_2 = arith.constant 0 : i32
    return %c0_i32, %c0_i32_0, %c0_i32_1 : i32, i32, i32
  }
  func.func @transform_3(%arg0: i32) -> (i32, i32, i32) {
    %c0_i32 = arith.constant 0 : i32
    %c0_i32_0 = arith.constant 0 : i32
    %c0_i32_1 = arith.constant 0 : i32
    %c0_i32_2 = arith.constant 0 : i32
    return %c0_i32, %c0_i32_0, %c0_i32_1 : i32, i32, i32
  }
  func.func @transform_4(%arg0: i32) -> (i32, i32) {
    %c0_i32 = arith.constant 0 : i32
    %c0_i32_0 = arith.constant 0 : i32
    %c0_i32_1 = arith.constant 0 : i32
    return %c0_i32, %c0_i32_0 : i32, i32
  }
  func.func @transform_5(%arg0: i32) -> (i32, i32, i32) {
    %c0_i32 = arith.constant 0 : i32
    %c0_i32_0 = arith.constant 0 : i32
    %c0_i32_1 = arith.constant 0 : i32
    %c0_i32_2 = arith.constant 0 : i32
    return %c0_i32, %c0_i32_0, %c0_i32_1 : i32, i32, i32
  }
}

</mosaic_0001>

<bundles_post_ra>
// kernel: onlstm_stack_forward.1
= control target key start
LH: loop header
LB: loop body
LE: loop exit
PB: predicated region body
PF: predicated region fallthrough
CT: control target
= control target key end

     0   :  { %s7557_s0 = inlined_call_operand.vmem [shape: f32[128,32], index: 0, kind: input, shape index: {}]   ;;  %s7558_s1 = inlined_call_operand.vmem [shape: f32[2,32,256], index: 1, kind: input, shape index: {}]   ;;  %s7559_s2 = inlined_call_operand.vmem [shape: f32[2,32,256], index: 2, kind: input, shape index: {}]   ;;  %s7560_s3 = inlined_call_operand.vmem [shape: f32[2,1,256], index: 3, kind: input, shape index: {}]   ;;  %s7561_s4 = inlined_call_operand.vmem [shape: f32[8,128], index: 4, kind: input, shape index: {}]   ;;  %s7562_s5 = inlined_call_operand.hbm [shape: f32[8,8,64], index: 5, kind: output, shape index: {}]  }
   0x1   :  { %v29_v0 = vld [vmem:[%s7558_s1 + $0x38] sm:$0xff]  ;;  %v28_v2 = vld [vmem:[%s7558_s1 + $0x30] sm:$0xff]  ;;  %v27_v4 = vld [vmem:[%s7558_s1 + $0x28] sm:$0xff] }
   0x2   :  { %v6181_v1 = vld [vmem:[%s7559_s2 + $0x38] sm:$0xff]  ;;  %139 = vmatprep.subr.mxu0 %v29_v0  ;;  %v6190_v3 = vld [vmem:[%s7559_s2 + $0x30] sm:$0xff]  ;;  %v6198_v5 = vld [vmem:[%s7559_s2 + $0x28] sm:$0xff] }
   0x3   :  { %339 = vmatprep.subr.mxu1 %v6181_v1  ;;  %140 = vmatpush1.msra.mxu0 %v28_v2  ;;  %v26_v6 = vld [vmem:[%s7558_s1 + $0x20] sm:$0xff]  ;;  %v25_v8 = vld [vmem:[%s7558_s1 + $0x18] sm:$0xff]  ;;  %v24_v10 = vld [vmem:[%s7558_s1 + $0x10] sm:$0xff] }
   0x4   :  { %340 = vmatpush1.msra.mxu1 %v6190_v3  ;;  %v6207_v7 = vld [vmem:[%s7559_s2 + $0x20] sm:$0xff]  ;;  %141 = vmatprep.subr.mxu0 %v27_v4  ;;  %v6216_v9 = vld [vmem:[%s7559_s2 + $0x18] sm:$0xff]  ;;  %v6224_v11 = vld [vmem:[%s7559_s2 + $0x10] sm:$0xff] }
   0x5   :  { %341 = vmatprep.subr.mxu1 %v6198_v5  ;;  %142 = vmatpush1.msra.mxu0 %v26_v6  ;;  %v23_v12 = vld [vmem:[%s7558_s1 + $0x8] sm:$0xff]  ;;  %v22_v14 = vld [vmem:[%s7558_s1] sm:$0xff] }
   0x6   :  { %342 = vmatpush1.msra.mxu1 %v6207_v7  ;;  %v6233_v13 = vld [vmem:[%s7559_s2 + $0x8] sm:$0xff]  ;;  %143 = vmatprep.subr.mxu0 %v25_v8  ;;  %v6243_v15 = vld [vmem:[%s7559_s2] sm:$0xff] }
   0x7   :  { %343 = vmatprep.subr.mxu1 %v6216_v9  ;;  %144 = vmatpush1.msra.mxu0 %v24_v10 }
   0x8   :  { %344 = vmatpush1.msra.mxu1 %v6224_v11 }
   0x9   :  { %10 = vsyncpa [#allocation5], 0  ;;  %145 = vmatprep.subr.mxu0 %v23_v12  ;;  %345 = vmatprep.subr.mxu1 %v6233_v13  ;;  %v39_v16 = vld [vmem:[%s7557_s0] sm:$0xff]  ;;  %vm66_vm0 = vcmask 261120   ;;  %v6138_v17 = vmov 0.0   ;;  %v40_v18 = vld [vmem:[%s7557_s0 + $0x8] sm:$0xff]  ;;  %v56_v19 = vlaneseq }
   0xa   :  { %146 = vmatpush1.msra.mxu0 %v22_v14  ;;  %179 = vmatprep.mubr.f32.mxu0 %v6138_v17  ;;  %v38_v22 = vld [vmem:[%s7560_s3] sm:$0x3]  ;;  %vm396_vm1 = vcmask 64512   ;;  %s6139_s8 = smov 64   ;;  %s6140_s9 = smov 32   ;;  %vm3291_vm2 = vcmask 523520  }
   0xb   :  { %346 = vmatpush1.msra.mxu1 %v6243_v15  ;;  %379 = vmatprep.mubr.f32.mxu1 %v6138_v17  ;;  %v6270_v20 = vshrl.u32 %v56_v19, 7  ;;  %v6298_v44 = vld [vmem:[%s7561_s4] sm:$0xff]  ;;  %s6141_s10 = smov 96  }
   0xc   :  { %5437 = vmatmul.mubr.msk.f32.vlgmr.msra.gmra.mxu0 %vm66_vm0, %v39_v16  ;;  %380 = vmatmul.mubr.f32.vlgmr.msra.gmra.mxu1 %v6138_v17 }
   0xd   :  { %185 = vmatprep.mubr.f32.mxu0 %v6138_v17  ;;  %385 = vmatprep.mubr.f32.mxu1 %v6138_v17  ;;  %v58_v21 = vsub.s32 0, %v6270_v20  ;;  %v62_v23 = vsub.s32 1, %v6270_v20 }
   0xe   :  { %1540 = vmatprep.subr.mxu0 %v6181_v1  ;;  %5626 = vmatprep.subr.mxu1 %v6298_v44 }
   0xf   :  { %1541 = vmatpush1.msra.mxu0 %v6190_v3  ;;  %v6279_v24 = vrot.slane %v38_v22, %v58_v21  ;;  %v6283_v25 = vrot.slane %v38_v22, %v62_v23  ;;  %5627 = vmatpush3.msra.mxu1 %v6298_v44 }
  0x10   :  { %5438 = vmatmul.mubr.msk.f32.gmra.mxu0 %vm66_vm0, %v40_v18  ;;  %386 = vmatmul.mubr.f32.gmra.mxu1 %v6138_v17 }
  0x11   :  { %191 = vmatprep.mubr.f32.mxu0 %v6138_v17  ;;  %1542 = vmatprep.subr.mxu0 %v6198_v5 }
  0x12   :  { %1543 = vmatpush1.msra.mxu0 %v6207_v7  ;;  %640 = vmatprep.subr.mxu1 %v6181_v1 }
  0x13   :  { %1544 = vmatprep.subr.mxu0 %v6216_v9 }
  0x14   :  { %1545 = vmatpush1.msra.mxu0 %v6224_v11 }
  0x15   :  { %1546 = vmatprep.subr.mxu0 %v6233_v13 }
  0x16   :  { %1547 = vmatpush1.msra.mxu0 %v6243_v15 }
  0x17   :  { %5651 = vmatprep.subr.mxu0 %v6298_v44 }
  0xcc   :  { %v181_v26 = vpop.f32.mrf.mxu0  ;;  %v381_v27 = vpop.f32.mrf.mxu1 }
  0xcd   :  { %v182_v28 = vadd.f32 %v181_v26, %v6279_v24 }
  0xce   :  { %v183_v29 = vpop.f32.mrf.mxu0  ;;  %v383_v30 = vpop.f32.mrf.mxu1 }
  0xcf   :  { %v6286_v31 = vadd.f32 %v381_v27, %v182_v28  ;;  %v184_v32 = vadd.f32 %v183_v29, %v6283_v25 }
  0xd0   :  { %v187_v33 = vpop.f32.mrf.mxu0  ;;  %v387_v34 = vpop.f32.mrf.mxu1 }
  0xd1   :  { %v393_v35 = vadd.f32 %v383_v30, %v184_v32  ;;  %v188_v36 = vadd.f32 %v187_v33, %v6279_v24  ;;  %v5455_v22 = vmul.f32 -1.442695, %v6286_v31 }
  0xd2   :  { %v189_v37 = vpop.f32.mrf.mxu0  ;;  %v389_v41 = vpop.f32.mrf.mxu1 }
  0xd3   :  { %v6290_v38 = vadd.f32 %v387_v34, %v188_v36  ;;  %v190_v39 = vadd.f32 %v189_v37, %v6283_v25  ;;  %v397_v40 = vsel %vm396_vm1, %v393_v35, -inf }
  0xd4   :  { %398 = vmax.xlane.f32.xlu0 %v397_v40 }
  0xd5   :  { %v395_v42 = vadd.f32 %v389_v41, %v190_v39  ;;  %v5456_v26 = vmul.f32 -1.442695, %v6290_v38 }
  0xd7   :  { %v400_v43 = vsel %vm396_vm1, %v395_v42, -inf }
  0xd8   :  { %401 = vmax.xlane.f32.xlu0 %v400_v43  ;;  %v41_v43 = vld [vmem:[%s7557_s0 + $0x10] sm:$0xff] }
  0xd9   :  { %5439 = vmatmul.mubr.msk.f32.gmra.mxu0 %vm66_vm0, %v41_v43 }
  0xda   :  { %197 = vmatprep.mubr.f32.mxu0 %v6138_v17 }
 0x15d   :  { %v399_v45 = vpop.xlane.xlu0 %398 }
 0x15e   :  { %v403_v46 = vsub.f32 %v393_v35, %v399_v45 }
 0x160   :  { %v405_v47 = vmul.f32 1.442695, %v403_v46 }
 0x161   :  { %v402_v48 = vpop.xlane.xlu0 %401 }
 0x162   :  { %5713 = vpow2.f32 %v405_v47  ;;  %v404_v49 = vsub.f32 %v395_v42, %v402_v48 }
 0x164   :  { %v407_v50 = vmul.f32 1.442695, %v404_v49 }
 0x166   :  { %5715 = vpow2.f32 %v407_v50 }
 0x16f   :  { %v5714_v51 = vpop.eup %5713 }
 0x170   :  { %5628 = vmatprep.mubr.msk.f32.mxu1 %vm396_vm1, %v5714_v51 }
 0x173   :  { %v5716_v52 = vpop.eup %5715 }
 0x174   :  { %5629 = vmatmul.mubr.msk.f32.vlgmr.msra.gmra.mxu1 %vm396_vm1, %v5716_v52 }
 0x175   :  { %641 = vmatpush1.msra.mxu1 %v6190_v3  ;;  %680 = vmatprep.mubr.f32.mxu1 %v6138_v17 }
 0x176   :  { %642 = vmatprep.subr.mxu1 %v6198_v5 }
 0x177   :  { %643 = vmatpush1.msra.mxu1 %v6207_v7 }
 0x178   :  { %644 = vmatprep.subr.mxu1 %v6216_v9 }
 0x179   :  { %645 = vmatpush1.msra.mxu1 %v6224_v11 }
 0x17a   :  { %646 = vmatprep.subr.mxu1 %v6233_v13 }
 0x17b   :  { %647 = vmatpush1.msra.mxu1 %v6243_v15 }
 0x17c   :  { %5631 = vmatprep.subr.mxu1 %v6298_v44 }
 0x234   :  { %v5630_v53 = vpop.f32.mrf.mxu1 }
 0x236   :  { %v481_v54 = vpop.f32.mrf.mxu1 }
 0x237   :  { %492 = vrot.lane.b32.xlu1 %v481_v54, %s6139_s8 }
 0x23b   :  { %494 = vrot.lane.b32.xlu1 %v5630_v53, %s6139_s8 }
 0x2a9   :  { %v493_v55 = vpop.permute.xlu1 %492 }
 0x2aa   :  { %5717 = vrcp.f32 %v493_v55 }
 0x2ad   :  { %v495_v56 = vpop.permute.xlu1 %494 }
 0x2ae   :  { %5719 = vrcp.f32 %v495_v56 }
 0x2af   :  { %5721 = vtanh.f32 %v6290_v38 }
 0x2b0   :  { %5723 = vtanh.f32 %v6286_v31 }
 0x2b1   :  { %5725 = vpow2.f32 %v5455_v22 }
 0x2b2   :  { %5727 = vpow2.f32 %v5456_v26 }
 0x2b7   :  { %v5718_v57 = vpop.eup %5717 }
 0x2b8   :  { %v499_v58 = vmul.f32 %v5718_v57, %v481_v54 }
 0x2ba   :  { %v502_v59 = vsub.f32 1.0, %v499_v58 }
 0x2bb   :  { %v5720_v60 = vpop.eup %5719 }
 0x2bc   :  { %520 = vrot.lane.b32.xlu0 %v502_v59, %s6140_s9  ;;  %v501_v61 = vmul.f32 %v5720_v60, %v5630_v53  ;;  %v5722_v63 = vpop.eup %5721 }
 0x2bd   :  { %v5724_v12 = vpop.eup %5723 }
 0x2be   :  { %v503_v62 = vsub.f32 1.0, %v501_v61  ;;  %v5726_v27 = vpop.eup %5725 }
 0x2bf   :  { %v510_v28 = vadd.f32 1.0, %v5726_v27  ;;  %v5728_v29 = vpop.eup %5727 }
 0x2c0   :  { %576 = vrot.lane.b32.xlu0 %v5722_v63, %s6139_s8  ;;  %522 = vrot.lane.b32.xlu1 %v503_v62, %s6140_s9  ;;  %v511_v30 = vadd.f32 1.0, %v5728_v29 }
 0x2c1   :  { %5729 = vrcp.f32 %v510_v28 }
 0x2c2   :  { %5731 = vrcp.f32 %v511_v30 }
 0x2ce   :  { %v5730_v33 = vpop.eup %5729 }
 0x2cf   :  { %v5732_v37 = vpop.eup %5731 }
 0x32e   :  { %v521_v0 = vpop.permute.xlu0 %520 }
 0x32f   :  { %v526_v2 = vmul.f32 %v521_v0, %v499_v58 }
 0x331   :  { %552 = vrot.lane.b32.xlu1 %v526_v2, %s6141_s10  ;;  %v538_v4 = vsub.f32 %v499_v58, %v526_v2  ;;  %v550_v34 = vmul.f32 %v5730_v33, %v526_v2 }
 0x332   :  { %v523_v6 = vpop.permute.xlu1 %522  ;;  %v577_v38 = vpop.permute.xlu0 %576 }
 0x333   :  { %v527_v8 = vmul.f32 %v523_v6, %v501_v61  ;;  %542 = vrot.lane.b32.xlu0 %v538_v4, %s6140_s9  ;;  %v193_v4 = vpop.f32.mrf.mxu0 }
 0x335   :  { %554 = vrot.lane.b32.xlu1 %v527_v8, %s6141_s10  ;;  %v539_v10 = vsub.f32 %v501_v61, %v527_v8  ;;  %v551_v40 = vmul.f32 %v5732_v37, %v527_v8  ;;  %v195_v6 = vpop.f32.mrf.mxu0 }
 0x337   :  { %544 = vrot.lane.b32.xlu0 %v539_v10, %s6140_s9 }
 0x339   :  { %574 = vrot.lane.b32.xlu1 %v5724_v12, %s6139_s8 }
 0x3a3   :  { %v553_v14 = vpop.permute.xlu1 %552 }
 0x3a4   :  { %v558_v16 = vsub.f32 %v502_v59, %v553_v14  ;;  %v42_v59 = vld [vmem:[%s7557_s0 + $0x18] sm:$0xff]  ;;  %v196_v14 = vadd.f32 %v195_v6, %v6283_v25 }
 0x3a5   :  { %v543_v47 = vpop.permute.xlu0 %542  ;;  %5440 = vmatmul.mubr.msk.f32.gmra.mxu0 %vm66_vm0, %v42_v59 }
 0x3a6   :  { %562 = vrot.lane.b32.xlu1 %v558_v16, %s6140_s9  ;;  %203 = vmatprep.mubr.f32.mxu0 %v6138_v17 }
 0x3a7   :  { %v555_v18 = vpop.permute.xlu1 %554 }
 0x3a8   :  { %v559_v19 = vsub.f32 %v503_v62, %v555_v18 }
 0x3a9   :  { %v545_v51 = vpop.permute.xlu0 %544 }
 0x3aa   :  { %564 = vrot.lane.b32.xlu1 %v559_v19, %s6140_s9 }
 0x3ab   :  { %v575_v32 = vpop.permute.xlu1 %574 }
 0x3ae   :  { %530 = vrot.lane.b32.xlu1 %v526_v2, %s6140_s9 }
 0x3b2   :  { %532 = vrot.lane.b32.xlu1 %v527_v8, %s6140_s9  ;;  %v194_v8 = vadd.f32 %v193_v4, %v6279_v24 }
 0x418   :  { %v563_v35 = vpop.permute.xlu1 %562 }
 0x419   :  { %v568_v36 = vadd.f32 %v563_v35, %v550_v34 }
 0x41b   :  { %v580_v39 = vmul.f32 %v575_v32, %v568_v36 }
 0x41c   :  { %v565_v41 = vpop.permute.xlu1 %564 }
 0x41d   :  { %v569_v31 = vadd.f32 %v565_v41, %v551_v40  ;;  %584 = vrot.lane.b32.xlu1 %v580_v39, %s6140_s9 }
 0x41f   :  { %v581_v42 = vmul.f32 %v577_v38, %v569_v31 }
 0x420   :  { %v531_v45 = vpop.permute.xlu1 %530 }
 0x421   :  { %586 = vrot.lane.b32.xlu0 %v581_v42, %s6140_s9  ;;  %v536_v46 = vmul.f32 %v5730_v33, %v531_v45 }
 0x423   :  { %v548_v49 = vadd.f32 %v543_v47, %v536_v46 }
 0x424   :  { %v533_v48 = vpop.permute.xlu1 %532 }
 0x425   :  { %v537_v50 = vmul.f32 %v5732_v37, %v533_v48  ;;  %v570_v53 = vmul.f32 0.0, %v548_v49 }
 0x427   :  { %v549_v52 = vadd.f32 %v545_v51, %v537_v50 }
 0x429   :  { %v571_v56 = vmul.f32 0.0, %v549_v52 }
 0x465   :  { %v199_v10 = vpop.f32.mrf.mxu0 }
 0x466   :  { %v200_v16 = vadd.f32 %v199_v10, %v6279_v24 }
 0x467   :  { %v201_v19 = vpop.f32.mrf.mxu0 }
 0x468   :  { %v202_v28 = vadd.f32 %v201_v19, %v6283_v25 }
 0x48f   :  { %v585_v54 = vpop.permute.xlu1 %584 }
 0x490   :  { %v6340_v55 = vadd.f32 %v585_v54, %v570_v53 }
 0x492   :  { %5733 = vtanh.f32 %v6340_v55 }
 0x493   :  { %v587_v57 = vpop.permute.xlu0 %586 }
 0x494   :  { %v6343_v58 = vadd.f32 %v587_v57, %v571_v56 }
 0x496   :  { %5735 = vtanh.f32 %v6343_v58 }
 0x49f   :  { %v5734_v60 = vpop.eup %5733 }
 0x4a0   :  { %596 = vrot.lane.b32.xlu1 %v5734_v60, %s6139_s8 }
 0x4a3   :  { %v5736_v61 = vpop.eup %5735 }
 0x4a4   :  { %598 = vrot.lane.b32.xlu0 %v5736_v61, %s6139_s8 }
 0x512   :  { %v597_v62 = vpop.permute.xlu1 %596 }
 0x513   :  { %v602_v63 = vmul.f32 %v5730_v33, %v597_v62 }
 0x515   :  { %604 = vst.msk [vmem:[#allocation3] sm:$0xff] %vm66_vm0, %v602_v63  ;;  %5457 = vmatmul.mubr.msk.f32.vlgmr.msra.gmra.mxu1 %vm66_vm0, %v602_v63 }
 0x516   :  { %v599_v0 = vpop.permute.xlu0 %598  ;;  %686 = vmatprep.mubr.f32.mxu1 %v6138_v17  ;;  %5632 = vmatpush3.msra.mxu1 %v6298_v44 }
 0x517   :  { %v603_v2 = vmul.f32 %v5732_v37, %v599_v0  ;;  %940 = vmatprep.subr.mxu1 %v6181_v1 }
 0x519   :  { %605 = vst.msk [vmem:[#allocation3 + $0x78] sm:$0xff] %vm66_vm0, %v603_v2  ;;  %5458 = vmatmul.mubr.msk.f32.gmra.mxu1 %vm66_vm0, %v603_v2 }
 0x5d5   :  { %v682_v12 = vpop.f32.mrf.mxu1 }
 0x5d6   :  { %v6363_v18 = vadd.f32 %v682_v12, %v194_v8 }
 0x5d7   :  { %v684_v22 = vpop.f32.mrf.mxu1 }
 0x5d8   :  { %v694_v26 = vadd.f32 %v684_v22, %v196_v14  ;;  %v5461_v6 = vmul.f32 -1.442695, %v6363_v18 }
 0x5d9   :  { %v688_v27 = vpop.f32.mrf.mxu1 }
 0x5da   :  { %v6366_v29 = vadd.f32 %v688_v27, %v200_v16  ;;  %v697_v30 = vsel %vm396_vm1, %v694_v26, -inf }
 0x5db   :  { %698 = vmax.xlane.f32.xlu1 %v697_v30  ;;  %v690_v32 = vpop.f32.mrf.mxu1 }
 0x5dc   :  { %v696_v33 = vadd.f32 %v690_v32, %v202_v28  ;;  %v5462_v8 = vmul.f32 -1.442695, %v6366_v29 }
 0x5de   :  { %v700_v34 = vsel %vm396_vm1, %v696_v33, -inf }
 0x5df   :  { %701 = vmax.xlane.f32.xlu0 %v700_v34 }
 0x664   :  { %v699_v35 = vpop.xlane.xlu1 %698 }
 0x665   :  { %v703_v36 = vsub.f32 %v694_v26, %v699_v35 }
 0x667   :  { %v705_v37 = vmul.f32 1.442695, %v703_v36  ;;  %v43_v36 = vld [vmem:[%s7557_s0 + $0x20] sm:$0xff] }
 0x668   :  { %v702_v39 = vpop.xlane.xlu0 %701  ;;  %5441 = vmatmul.mubr.msk.f32.gmra.mxu0 %vm66_vm0, %v43_v36 }
 0x669   :  { %5737 = vpow2.f32 %v705_v37  ;;  %v704_v40 = vsub.f32 %v696_v33, %v702_v39  ;;  %209 = vmatprep.mubr.f32.mxu0 %v6138_v17 }
 0x66b   :  { %v707_v41 = vmul.f32 1.442695, %v704_v40 }
 0x66d   :  { %5739 = vpow2.f32 %v707_v41 }
 0x676   :  { %v5738_v31 = vpop.eup %5737 }
 0x677   :  { %5633 = vmatprep.mubr.msk.f32.mxu1 %vm396_vm1, %v5738_v31 }
 0x67a   :  { %v5740_v38 = vpop.eup %5739 }
 0x67b   :  { %5634 = vmatmul.mubr.msk.f32.vlgmr.msra.gmra.mxu1 %vm396_vm1, %v5740_v38 }
 0x67c   :  { %941 = vmatpush1.msra.mxu1 %v6190_v3  ;;  %980 = vmatprep.mubr.f32.mxu1 %v6138_v17 }
 0x67d   :  { %942 = vmatprep.subr.mxu1 %v6198_v5 }
 0x67e   :  { %943 = vmatpush1.msra.mxu1 %v6207_v7 }
 0x67f   :  { %944 = vmatprep.subr.mxu1 %v6216_v9 }
 0x680   :  { %945 = vmatpush1.msra.mxu1 %v6224_v11 }
 0x681   :  { %946 = vmatprep.subr.mxu1 %v6233_v13 }
 0x682   :  { %947 = vmatpush1.msra.mxu1 %v6243_v15 }
 0x683   :  { %5636 = vmatprep.subr.mxu1 %v6298_v44 }
 0x73b   :  { %v5635_v42 = vpop.f32.mrf.mxu1 }
 0x73c   :  { %794 = vrot.lane.b32.xlu1 %v5635_v42, %s6139_s8 }
 0x73d   :  { %v781_v43 = vpop.f32.mrf.mxu1 }
 0x73e   :  { %792 = vrot.lane.b32.xlu0 %v781_v43, %s6139_s8 }
 0x7ae   :  { %v795_v45 = vpop.permute.xlu1 %794 }
 0x7af   :  { %5741 = vrcp.f32 %v795_v45 }
 0x7b0   :  { %v793_v46 = vpop.permute.xlu0 %792 }
 0x7b1   :  { %5743 = vrcp.f32 %v793_v46 }
 0x7b2   :  { %5745 = vtanh.f32 %v6363_v18 }
 0x7b3   :  { %5747 = vtanh.f32 %v6366_v29 }
 0x7b4   :  { %5749 = vpow2.f32 %v5461_v6 }
 0x7b5   :  { %5751 = vpow2.f32 %v5462_v8 }
 0x7bc   :  { %v5742_v47 = vpop.eup %5741 }
 0x7bd   :  { %v801_v48 = vmul.f32 %v5742_v47, %v5635_v42 }
 0x7be   :  { %v5744_v49 = vpop.eup %5743 }
 0x7bf   :  { %v803_v50 = vsub.f32 1.0, %v801_v48  ;;  %v799_v51 = vmul.f32 %v5744_v49, %v781_v43  ;;  %v5746_v59 = vpop.eup %5745 }
 0x7c0   :  { %v5748_v60 = vpop.eup %5747 }
 0x7c1   :  { %822 = vrot.lane.b32.xlu0 %v803_v50, %s6140_s9  ;;  %v802_v52 = vsub.f32 1.0, %v799_v51  ;;  %v5750_v10 = vpop.eup %5749 }
 0x7c2   :  { %v810_v12 = vadd.f32 1.0, %v5750_v10  ;;  %v5752_v14 = vpop.eup %5751 }
 0x7c3   :  { %820 = vrot.lane.b32.xlu1 %v802_v52, %s6140_s9  ;;  %v811_v16 = vadd.f32 1.0, %v5752_v14 }
 0x7c4   :  { %5753 = vrcp.f32 %v810_v12 }
 0x7c5   :  { %5755 = vrcp.f32 %v811_v16 }
 0x7d1   :  { %v5754_v19 = vpop.eup %5753 }
 0x7d2   :  { %v5756_v30 = vpop.eup %5755 }
 0x833   :  { %v823_v53 = vpop.permute.xlu0 %822 }
 0x834   :  { %v827_v54 = vmul.f32 %v823_v53, %v801_v48 }
 0x835   :  { %v821_v56 = vpop.permute.xlu1 %820 }
 0x836   :  { %v826_v57 = vmul.f32 %v821_v56, %v799_v51  ;;  %854 = vrot.lane.b32.xlu0 %v827_v54, %s6141_s10  ;;  %v839_v62 = vsub.f32 %v801_v48, %v827_v54  ;;  %v851_v33 = vmul.f32 %v5756_v30, %v827_v54 }
 0x838   :  { %852 = vrot.lane.b32.xlu1 %v826_v57, %s6141_s10  ;;  %v838_v61 = vsub.f32 %v799_v51, %v826_v57  ;;  %v850_v22 = vmul.f32 %v5754_v19, %v826_v57  ;;  %v44_v51 = vld [vmem:[%s7557_s0 + $0x28] sm:$0xff] }
 0x839   :  { %5442 = vmatmul.mubr.msk.f32.gmra.mxu0 %vm66_vm0, %v44_v51 }
 0x83a   :  { %874 = vrot.lane.b32.xlu0 %v5746_v59, %s6139_s8  ;;  %215 = vmatprep.mubr.f32.mxu0 %v6138_v17 }
 0x83e   :  { %876 = vrot.lane.b32.xlu0 %v5748_v60, %s6139_s8 }
 0x842   :  { %842 = vrot.lane.b32.xlu0 %v838_v61, %s6140_s9 }
 0x846   :  { %844 = vrot.lane.b32.xlu0 %v839_v62, %s6140_s9 }
 0x8a8   :  { %v855_v2 = vpop.permute.xlu0 %854 }
 0x8a9   :  { %v859_v4 = vsub.f32 %v803_v50, %v855_v2 }
 0x8aa   :  { %v853_v63 = vpop.permute.xlu1 %852 }
 0x8ab   :  { %v858_v0 = vsub.f32 %v802_v52, %v853_v63 }
 0x8ac   :  { %v875_v26 = vpop.permute.xlu0 %874 }
 0x8ad   :  { %862 = vrot.lane.b32.xlu1 %v858_v0, %s6140_s9 }
 0x8b0   :  { %v877_v29 = vpop.permute.xlu0 %876 }
 0x8b1   :  { %864 = vrot.lane.b32.xlu1 %v859_v4, %s6140_s9 }
 0x8b4   :  { %v843_v40 = vpop.permute.xlu0 %842 }
 0x8b5   :  { %830 = vrot.lane.b32.xlu1 %v826_v57, %s6140_s9  ;;  %v205_v57 = vpop.f32.mrf.mxu0 }
 0x8b6   :  { %v206_v60 = vadd.f32 %v205_v57, %v6279_v24 }
 0x8b7   :  { %v207_v59 = vpop.f32.mrf.mxu0 }
 0x8b8   :  { %v845_v42 = vpop.permute.xlu0 %844  ;;  %v208_v63 = vadd.f32 %v207_v59, %v6283_v25 }
 0x8b9   :  { %832 = vrot.lane.b32.xlu1 %v827_v54, %s6140_s9 }
 0x8f9   :  { %v211_v61 = vpop.f32.mrf.mxu0 }
 0x8fa   :  { %v212_v0 = vadd.f32 %v211_v61, %v6279_v24 }
 0x8fb   :  { %v213_v4 = vpop.f32.mrf.mxu0 }
 0x8fc   :  { %v214_v10 = vadd.f32 %v213_v4, %v6283_v25 }
 0x91f   :  { %v863_v27 = vpop.permute.xlu1 %862 }
 0x920   :  { %v868_v28 = vadd.f32 %v863_v27, %v850_v22 }
 0x922   :  { %v880_v32 = vmul.f32 %v875_v26, %v868_v28 }
 0x923   :  { %v865_v34 = vpop.permute.xlu1 %864 }
 0x924   :  { %v869_v18 = vadd.f32 %v865_v34, %v851_v33  ;;  %884 = vrot.lane.b32.xlu1 %v880_v32, %s6140_s9 }
 0x926   :  { %v881_v35 = vmul.f32 %v877_v29, %v869_v18 }
 0x927   :  { %v831_v37 = vpop.permute.xlu1 %830 }
 0x928   :  { %886 = vrot.lane.b32.xlu0 %v881_v35, %s6140_s9  ;;  %v836_v39 = vmul.f32 %v5754_v19, %v831_v37 }
 0x92a   :  { %v848_v31 = vadd.f32 %v843_v40, %v836_v39 }
 0x92b   :  { %v833_v41 = vpop.permute.xlu1 %832 }
 0x92c   :  { %v837_v38 = vmul.f32 %v5756_v30, %v833_v41  ;;  %v870_v45 = vmul.f32 %v848_v31, %v6340_v55 }
 0x92e   :  { %v849_v43 = vadd.f32 %v845_v42, %v837_v38 }
 0x930   :  { %v871_v48 = vmul.f32 %v849_v43, %v6343_v58 }
 0x996   :  { %v885_v46 = vpop.permute.xlu1 %884 }
 0x997   :  { %v6407_v47 = vadd.f32 %v885_v46, %v870_v45 }
 0x999   :  { %5757 = vtanh.f32 %v6407_v47 }
 0x99a   :  { %v887_v49 = vpop.permute.xlu0 %886 }
 0x99b   :  { %v6411_v50 = vadd.f32 %v887_v49, %v871_v48 }
 0x99d   :  { %5759 = vtanh.f32 %v6411_v50 }
 0x9a6   :  { %v5758_v55 = vpop.eup %5757 }
 0x9a7   :  { %896 = vrot.lane.b32.xlu1 %v5758_v55, %s6139_s8 }
 0x9aa   :  { %v5760_v52 = vpop.eup %5759 }
 0x9ab   :  { %898 = vrot.lane.b32.xlu0 %v5760_v52, %s6139_s8 }
 0xa19   :  { %v897_v58 = vpop.permute.xlu1 %896 }
 0xa1a   :  { %v902_v53 = vmul.f32 %v5754_v19, %v897_v58 }
 0xa1c   :  { %904 = vst.msk [vmem:[#allocation3 + $0x10] sm:$0xff] %vm66_vm0, %v902_v53  ;;  %5463 = vmatmul.mubr.msk.f32.vlgmr.msra.gmra.mxu1 %vm66_vm0, %v902_v53 }
 0xa1d   :  { %v899_v54 = vpop.permute.xlu0 %898  ;;  %986 = vmatprep.mubr.f32.mxu1 %v6138_v17  ;;  %5637 = vmatpush3.msra.mxu1 %v6298_v44 }
 0xa1e   :  { %v903_v56 = vmul.f32 %v5756_v30, %v899_v54  ;;  %1240 = vmatprep.subr.mxu1 %v6181_v1 }
 0xa20   :  { %905 = vst.msk [vmem:[#allocation3 + $0x68] sm:$0xff] %vm66_vm0, %v903_v56  ;;  %5464 = vmatmul.mubr.msk.f32.gmra.mxu1 %vm66_vm0, %v903_v56 }
 0xadc   :  { %v982_v62 = vpop.f32.mrf.mxu1 }
 0xadd   :  { %v6431_v2 = vadd.f32 %v982_v62, %v206_v60 }
 0xade   :  { %v984_v6 = vpop.f32.mrf.mxu1 }
 0xadf   :  { %v994_v8 = vadd.f32 %v984_v6, %v208_v63  ;;  %v5467_v51 = vmul.f32 -1.442695, %v6431_v2 }
 0xae0   :  { %v988_v1 = vpop.f32.mrf.mxu1 }
 0xae1   :  { %v6434_v12 = vadd.f32 %v988_v1, %v212_v0  ;;  %v997_v14 = vsel %vm396_vm1, %v994_v8, -inf  ;;  %v45_v1 = vld [vmem:[%s7557_s0 + $0x30] sm:$0xff] }
 0xae2   :  { %998 = vmax.xlane.f32.xlu1 %v997_v14  ;;  %v990_v16 = vpop.f32.mrf.mxu1  ;;  %5443 = vmatmul.mubr.msk.f32.gmra.mxu0 %vm66_vm0, %v45_v1 }
 0xae3   :  { %v996_v19 = vadd.f32 %v990_v16, %v214_v10  ;;  %v5468_v55 = vmul.f32 -1.442695, %v6434_v12  ;;  %221 = vmatprep.mubr.f32.mxu0 %v6138_v17 }
 0xae5   :  { %v1000_v22 = vsel %vm396_vm1, %v996_v19, -inf }
 0xae6   :  { %1001 = vmax.xlane.f32.xlu0 %v1000_v22 }
 0xb6b   :  { %v999_v26 = vpop.xlane.xlu1 %998 }
 0xb6c   :  { %v1003_v27 = vsub.f32 %v994_v8, %v999_v26 }
 0xb6e   :  { %v1005_v28 = vmul.f32 1.442695, %v1003_v27 }
 0xb6f   :  { %v1002_v30 = vpop.xlane.xlu0 %1001 }
 0xb70   :  { %5761 = vpow2.f32 %v1005_v28  ;;  %v1004_v32 = vsub.f32 %v996_v19, %v1002_v30 }
 0xb72   :  { %v1007_v33 = vmul.f32 1.442695, %v1004_v32 }
 0xb74   :  { %5763 = vpow2.f32 %v1007_v33 }
 0xb7d   :  { %v5762_v34 = vpop.eup %5761 }
 0xb7e   :  { %5638 = vmatprep.mubr.msk.f32.mxu1 %vm396_vm1, %v5762_v34 }
 0xb81   :  { %v5764_v18 = vpop.eup %5763 }
 0xb82   :  { %5639 = vmatmul.mubr.msk.f32.vlgmr.msra.gmra.mxu1 %vm396_vm1, %v5764_v18 }
 0xb83   :  { %1241 = vmatpush1.msra.mxu1 %v6190_v3  ;;  %1280 = vmatprep.mubr.f32.mxu1 %v6138_v17 }
 0xb84   :  { %1242 = vmatprep.subr.mxu1 %v6198_v5 }
 0xb85   :  { %1243 = vmatpush1.msra.mxu1 %v6207_v7 }
 0xb86   :  { %1244 = vmatprep.subr.mxu1 %v6216_v9 }
 0xb87   :  { %1245 = vmatpush1.msra.mxu1 %v6224_v11 }
 0xb88   :  { %1246 = vmatprep.subr.mxu1 %v6233_v13 }
 0xb89   :  { %1247 = vmatpush1.msra.mxu1 %v6243_v15 }
 0xb8a   :  { %5641 = vmatprep.subr.mxu1 %v6298_v44 }
 0xc42   :  { %v5640_v29 = vpop.f32.mrf.mxu1 }
 0xc43   :  { %1094 = vrot.lane.b32.xlu1 %v5640_v29, %s6139_s8 }
 0xc44   :  { %v1081_v3 = vpop.f32.mrf.mxu1 }
 0xc45   :  { %1092 = vrot.lane.b32.xlu0 %v1081_v3, %s6139_s8 }
 0xcb5   :  { %v1095_v35 = vpop.permute.xlu1 %1094 }
 0xcb6   :  { %5765 = vrcp.f32 %v1095_v35 }
 0xcb7   :  { %v1093_v5 = vpop.permute.xlu0 %1092 }
 0xcb8   :  { %5767 = vrcp.f32 %v1093_v5 }
 0xcb9   :  { %5769 = vtanh.f32 %v6431_v2 }
 0xcba   :  { %5771 = vtanh.f32 %v6434_v12 }
 0xcbb   :  { %5773 = vpow2.f32 %v5467_v51 }
 0xcbc   :  { %5775 = vpow2.f32 %v5468_v55 }
 0xcc3   :  { %v5766_v7 = vpop.eup %5765 }
 0xcc4   :  { %v1101_v9 = vmul.f32 %v5766_v7, %v5640_v29  ;;  %v46_v29 = vld [vmem:[%s7557_s0 + $0x38] sm:$0xff] }
 0xcc5   :  { %v5768_v36 = vpop.eup %5767  ;;  %5444 = vmatmul.mubr.msk.f32.gmra.mxu0 %vm66_vm0, %v46_v29 }
 0xcc6   :  { %v1103_v11 = vsub.f32 1.0, %v1101_v9  ;;  %v1099_v37 = vmul.f32 %v5768_v36, %v1081_v3  ;;  %v5770_v31 = vpop.eup %5769  ;;  %227 = vmatprep.mubr.f32.mxu0 %v6138_v17 }
 0xcc7   :  { %v5772_v38 = vpop.eup %5771 }
 0xcc8   :  { %1122 = vrot.lane.b32.xlu0 %v1103_v11, %s6140_s9  ;;  %v1102_v13 = vsub.f32 1.0, %v1099_v37  ;;  %v5774_v52 = vpop.eup %5773 }
 0xcc9   :  { %v1110_v58 = vadd.f32 1.0, %v5774_v52  ;;  %v5776_v53 = vpop.eup %5775 }
 0xcca   :  { %1120 = vrot.lane.b32.xlu1 %v1102_v13, %s6140_s9  ;;  %v1111_v54 = vadd.f32 1.0, %v5776_v53 }
 0xccb   :  { %5777 = vrcp.f32 %v1110_v58 }
 0xccc   :  { %5779 = vrcp.f32 %v1111_v54 }
 0xcd8   :  { %v5778_v56 = vpop.eup %5777 }
 0xcd9   :  { %v5780_v62 = vpop.eup %5779 }
 0xd3a   :  { %v1123_v15 = vpop.permute.xlu0 %1122 }
 0xd3b   :  { %v1127_v39 = vmul.f32 %v1123_v15, %v1101_v9 }
 0xd3c   :  { %v1121_v40 = vpop.permute.xlu1 %1120 }
 0xd3d   :  { %v1126_v41 = vmul.f32 %v1121_v40, %v1099_v37  ;;  %1154 = vrot.lane.b32.xlu0 %v1127_v39, %s6141_s10  ;;  %v1139_v43 = vsub.f32 %v1101_v9, %v1127_v39  ;;  %v1151_v0 = vmul.f32 %v5780_v62, %v1127_v39  ;;  %v217_v9 = vpop.f32.mrf.mxu0 }
 0xd3f   :  { %1152 = vrot.lane.b32.xlu1 %v1126_v41, %s6141_s10  ;;  %v1138_v42 = vsub.f32 %v1099_v37, %v1126_v41  ;;  %v1150_v57 = vmul.f32 %v5778_v56, %v1126_v41  ;;  %v219_v36 = vpop.f32.mrf.mxu0 }
 0xd40   :  { %v220_v15 = vadd.f32 %v219_v36, %v6283_v25 }
 0xd41   :  { %1174 = vrot.lane.b32.xlu0 %v5770_v31, %s6139_s8 }
 0xd45   :  { %1176 = vrot.lane.b32.xlu0 %v5772_v38, %s6139_s8 }
 0xd49   :  { %1142 = vrot.lane.b32.xlu0 %v1138_v42, %s6140_s9 }
 0xd4d   :  { %1144 = vrot.lane.b32.xlu0 %v1139_v43, %s6140_s9 }
 0xd85   :  { %v223_v37 = vpop.f32.mrf.mxu0 }
 0xdaf   :  { %v1155_v48 = vpop.permute.xlu0 %1154 }
 0xdb0   :  { %v1159_v49 = vsub.f32 %v1103_v11, %v1155_v48  ;;  %v218_v11 = vadd.f32 %v217_v9, %v6279_v24 }
 0xdb1   :  { %v1153_v45 = vpop.permute.xlu1 %1152 }
 0xdb2   :  { %v1158_v46 = vsub.f32 %v1102_v13, %v1153_v45 }
 0xdb3   :  { %v1175_v59 = vpop.permute.xlu0 %1174 }
 0xdb4   :  { %1162 = vrot.lane.b32.xlu1 %v1158_v46, %s6140_s9 }
 0xdb7   :  { %v1177_v6 = vpop.permute.xlu0 %1176 }
 0xdb8   :  { %1164 = vrot.lane.b32.xlu1 %v1159_v49, %s6140_s9 }
 0xdbb   :  { %v1143_v14 = vpop.permute.xlu0 %1142 }
 0xdbc   :  { %1130 = vrot.lane.b32.xlu1 %v1126_v41, %s6140_s9  ;;  %v225_v41 = vpop.f32.mrf.mxu0 }
 0xdbd   :  { %v226_v43 = vadd.f32 %v225_v41, %v6283_v25 }
 0xdbf   :  { %v1145_v26 = vpop.permute.xlu0 %1144 }
 0xdc0   :  { %1132 = vrot.lane.b32.xlu1 %v1127_v39, %s6140_s9  ;;  %v224_v39 = vadd.f32 %v223_v37, %v6279_v24 }
 0xe26   :  { %v1163_v60 = vpop.permute.xlu1 %1162 }
 0xe27   :  { %v1168_v61 = vadd.f32 %v1163_v60, %v1150_v57  ;;  %v6512_v60 = vld [vmem:[%s7559_s2 + $0x38] sm:$0xff] }
 0xe29   :  { %v1180_v63 = vmul.f32 %v1175_v59, %v1168_v61 }
 0xe2a   :  { %v1165_v4 = vpop.permute.xlu1 %1164 }
 0xe2b   :  { %v1169_v2 = vadd.f32 %v1165_v4, %v1151_v0  ;;  %1184 = vrot.lane.b32.xlu1 %v1180_v63, %s6140_s9 }
 0xe2d   :  { %v1181_v8 = vmul.f32 %v1177_v6, %v1169_v2 }
 0xe2e   :  { %v1131_v10 = vpop.permute.xlu1 %1130 }
 0xe2f   :  { %1186 = vrot.lane.b32.xlu0 %v1181_v8, %s6140_s9  ;;  %v1136_v12 = vmul.f32 %v5778_v56, %v1131_v10 }
 0xe31   :  { %v1148_v19 = vadd.f32 %v1143_v14, %v1136_v12 }
 0xe32   :  { %v1133_v16 = vpop.permute.xlu1 %1132 }
 0xe33   :  { %v1137_v22 = vmul.f32 %v5780_v62, %v1133_v16  ;;  %v1170_v28 = vmul.f32 %v1148_v19, %v6407_v47 }
 0xe35   :  { %v1149_v27 = vadd.f32 %v1145_v26, %v1137_v22 }
 0xe37   :  { %v1171_v33 = vmul.f32 %v1149_v27, %v6411_v50 }
 0xe9d   :  { %v1185_v30 = vpop.permute.xlu1 %1184 }
 0xe9e   :  { %v6475_v32 = vadd.f32 %v1185_v30, %v1170_v28 }
 0xea0   :  { %5781 = vtanh.f32 %v6475_v32 }
 0xea1   :  { %v1187_v34 = vpop.permute.xlu0 %1186 }
 0xea2   :  { %v6479_v18 = vadd.f32 %v1187_v34, %v1171_v33 }
 0xea4   :  { %5783 = vtanh.f32 %v6479_v18 }
 0xead   :  { %v5782_v47 = vpop.eup %5781 }
 0xeae   :  { %1196 = vrot.lane.b32.xlu1 %v5782_v47, %s6139_s8 }
 0xeb1   :  { %v5784_v3 = vpop.eup %5783 }
 0xeb2   :  { %1198 = vrot.lane.b32.xlu0 %v5784_v3, %s6139_s8 }
 0xf20   :  { %v1197_v50 = vpop.permute.xlu1 %1196 }
 0xf21   :  { %v1202_v35 = vmul.f32 %v5778_v56, %v1197_v50 }
 0xf23   :  { %1204 = vst.msk [vmem:[#allocation3 + $0x20] sm:$0xff] %vm66_vm0, %v1202_v35  ;;  %5469 = vmatmul.mubr.msk.f32.vlgmr.msra.gmra.mxu1 %vm66_vm0, %v1202_v35 }
 0xf24   :  { %v1199_v5 = vpop.permute.xlu0 %1198  ;;  %1286 = vmatprep.mubr.f32.mxu1 %v6138_v17  ;;  %5642 = vmatpush3.msra.mxu1 %v6298_v44 }
 0xf25   :  { %v1203_v7 = vmul.f32 %v5780_v62, %v1199_v5  ;;  %5646 = vmatprep.subr.mxu1 %v6298_v44 }
 0xf27   :  { %1205 = vst.msk [vmem:[#allocation3 + $0x58] sm:$0xff] %vm66_vm0, %v1203_v7  ;;  %5470 = vmatmul.mubr.msk.f32.gmra.mxu1 %vm66_vm0, %v1203_v7 }
 0xfe3   :  { %v1282_v13 = vpop.f32.mrf.mxu1 }
 0xfe4   :  { %v6499_v40 = vadd.f32 %v1282_v13, %v218_v11 }
 0xfe5   :  { %v1284_v31 = vpop.f32.mrf.mxu1 }
 0xfe6   :  { %v1294_v38 = vadd.f32 %v1284_v31, %v220_v15  ;;  %v5473_v29 = vmul.f32 -1.442695, %v6499_v40 }
 0xfe7   :  { %v1288_v42 = vpop.f32.mrf.mxu1 }
 0xfe8   :  { %v6502_v45 = vadd.f32 %v1288_v42, %v224_v39  ;;  %v1297_v46 = vsel %vm396_vm1, %v1294_v38, -inf  ;;  %v47_v42 = vld [vmem:[%s7557_s0 + $0x40] sm:$0xff] }
 0xfe9   :  { %1298 = vmax.xlane.f32.xlu1 %v1297_v46  ;;  %v1290_v48 = vpop.f32.mrf.mxu1  ;;  %5445 = vmatmul.mubr.msk.f32.gmra.mxu0 %vm66_vm0, %v47_v42  ;;  %v50_v46 = vld [vmem:[%s7557_s0 + $0x58] sm:$0xff] }
 0xfea   :  { %v1296_v49 = vadd.f32 %v1290_v48, %v226_v43  ;;  %v5474_v47 = vmul.f32 -1.442695, %v6502_v45  ;;  %233 = vmatprep.mubr.f32.mxu0 %v6138_v17  ;;  %v48_v43 = vld [vmem:[%s7557_s0 + $0x48] sm:$0xff]  ;;  %v51_v48 = vld [vmem:[%s7557_s0 + $0x60] sm:$0xff] }
 0xfec   :  { %v1300_v51 = vsel %vm396_vm1, %v1296_v49, -inf }
 0xfed   :  { %1301 = vmax.xlane.f32.xlu0 %v1300_v51  ;;  %5446 = vmatmul.mubr.msk.f32.gmra.mxu0 %vm66_vm0, %v48_v43  ;;  %v53_v51 = vld [vmem:[%s7557_s0 + $0x70] sm:$0xff] }
 0xfee   :  { %239 = vmatprep.mubr.f32.mxu0 %v6138_v17 }
0x1072   :  { %v1299_v55 = vpop.xlane.xlu1 %1298 }
0x1073   :  { %v1303_v52 = vsub.f32 %v1294_v38, %v1299_v55  ;;  %v54_v55 = vld [vmem:[%s7557_s0 + $0x78] sm:$0xff] }
0x1075   :  { %v1305_v58 = vmul.f32 1.442695, %v1303_v52 }
0x1076   :  { %v1302_v53 = vpop.xlane.xlu0 %1301 }
0x1077   :  { %5785 = vpow2.f32 %v1305_v58  ;;  %v1304_v54 = vsub.f32 %v1296_v49, %v1302_v53  ;;  %v52_v49 = vld [vmem:[%s7557_s0 + $0x68] sm:$0xff] }
0x1079   :  { %v1307_v56 = vmul.f32 1.442695, %v1304_v54 }
0x107b   :  { %5787 = vpow2.f32 %v1307_v56 }
0x1084   :  { %v5786_v57 = vpop.eup %5785 }
0x1085   :  { %5643 = vmatprep.mubr.msk.f32.mxu1 %vm396_vm1, %v5786_v57 }
0x1088   :  { %v5788_v59 = vpop.eup %5787 }
0x1089   :  { %5644 = vmatmul.mubr.msk.f32.vlgmr.msra.gmra.mxu1 %vm396_vm1, %v5788_v59 }
0x108a   :  { %5647 = vmatpush3.msra.mxu1 %v6298_v44 }
0x108b   :  { %1840 = vmatprep.subr.mxu1 %v6512_v60 }
0x1149   :  { %v5645_v61 = vpop.f32.mrf.mxu1 }
0x114a   :  { %1394 = vrot.lane.b32.xlu1 %v5645_v61, %s6139_s8 }
0x114b   :  { %v1381_v62 = vpop.f32.mrf.mxu1 }
0x114c   :  { %1392 = vrot.lane.b32.xlu0 %v1381_v62, %s6139_s8 }
0x11bc   :  { %v1395_v63 = vpop.permute.xlu1 %1394 }
0x11bd   :  { %5789 = vrcp.f32 %v1395_v63 }
0x11be   :  { %v1393_v0 = vpop.permute.xlu0 %1392 }
0x11bf   :  { %5791 = vrcp.f32 %v1393_v0 }
0x11c0   :  { %5793 = vtanh.f32 %v6499_v40 }
0x11c1   :  { %5795 = vtanh.f32 %v6502_v45  ;;  %v49_v45 = vld [vmem:[%s7557_s0 + $0x50] sm:$0xff] }
0x11c2   :  { %5797 = vpow2.f32 %v5473_v29  ;;  %5447 = vmatmul.mubr.msk.f32.gmra.mxu0 %vm66_vm0, %v49_v45 }
0x11c3   :  { %5799 = vpow2.f32 %v5474_v47  ;;  %245 = vmatprep.mubr.f32.mxu0 %v6138_v17 }
0x11c6   :  { %5448 = vmatmul.mubr.msk.f32.gmra.mxu0 %vm66_vm0, %v50_v46 }
0x11c7   :  { %251 = vmatprep.mubr.f32.mxu0 %v6138_v17 }
0x11ca   :  { %v5790_v4 = vpop.eup %5789  ;;  %5449 = vmatmul.mubr.msk.f32.gmra.mxu0 %vm66_vm0, %v51_v48 }
0x11cb   :  { %v1401_v2 = vmul.f32 %v5790_v4, %v5645_v61  ;;  %257 = vmatprep.mubr.f32.mxu0 %v6138_v17 }
0x11cc   :  { %v5792_v44 = vpop.eup %5791 }
0x11cd   :  { %v1403_v6 = vsub.f32 1.0, %v1401_v2  ;;  %v1399_v8 = vmul.f32 %v5792_v44, %v1381_v62  ;;  %v5794_v19 = vpop.eup %5793 }
0x11ce   :  { %v5796_v22 = vpop.eup %5795  ;;  %5450 = vmatmul.mubr.msk.f32.gmra.mxu0 %vm66_vm0, %v52_v49 }
0x11cf   :  { %1422 = vrot.lane.b32.xlu0 %v1403_v6, %s6140_s9  ;;  %v1402_v1 = vsub.f32 1.0, %v1399_v8  ;;  %v5798_v3 = vpop.eup %5797  ;;  %263 = vmatprep.mubr.f32.mxu0 %v6138_v17 }
0x11d0   :  { %v1410_v50 = vadd.f32 1.0, %v5798_v3  ;;  %v5800_v35 = vpop.eup %5799 }
0x11d1   :  { %1420 = vrot.lane.b32.xlu1 %v1402_v1, %s6140_s9  ;;  %v1411_v5 = vadd.f32 1.0, %v5800_v35 }
0x11d2   :  { %5801 = vrcp.f32 %v1410_v50  ;;  %5451 = vmatmul.mubr.msk.f32.gmra.mxu0 %vm66_vm0, %v53_v51 }
0x11d3   :  { %5803 = vrcp.f32 %v1411_v5  ;;  %269 = vmatprep.mubr.f32.mxu0 %v6138_v17 }
0x11d6   :  { %5452 = vmatmul.mubr.msk.f32.gmra.mxu0 %vm66_vm0, %v54_v55 }
0x11d7   :  { %1580 = vmatprep.mubr.f32.mxu0 %v6138_v17 }
0x11df   :  { %v5802_v7 = vpop.eup %5801 }
0x11e0   :  { %v5804_v13 = vpop.eup %5803 }
0x1241   :  { %v1423_v10 = vpop.permute.xlu0 %1422 }
0x1242   :  { %v1427_v12 = vmul.f32 %v1423_v10, %v1401_v2 }
0x1243   :  { %v1421_v14 = vpop.permute.xlu1 %1420 }
0x1244   :  { %v1426_v16 = vmul.f32 %v1421_v14, %v1399_v8  ;;  %1454 = vrot.lane.b32.xlu0 %v1427_v12, %s6141_s10  ;;  %v1439_v27 = vsub.f32 %v1401_v2, %v1427_v12  ;;  %v1451_v39 = vmul.f32 %v5804_v13, %v1427_v12  ;;  %v229_v14 = vpop.f32.mrf.mxu0 }
0x1246   :  { %1452 = vrot.lane.b32.xlu1 %v1426_v16, %s6141_s10  ;;  %v1438_v26 = vsub.f32 %v1399_v8, %v1426_v16  ;;  %v1450_v9 = vmul.f32 %v5802_v7, %v1426_v16 }
0x1248   :  { %1474 = vrot.lane.b32.xlu0 %v5794_v19, %s6139_s8 }
0x124c   :  { %1476 = vrot.lane.b32.xlu0 %v5796_v22, %s6139_s8 }
0x1250   :  { %1442 = vrot.lane.b32.xlu0 %v1438_v26, %s6140_s9 }
0x1254   :  { %1444 = vrot.lane.b32.xlu0 %v1439_v27, %s6140_s9 }
0x12b6   :  { %v1455_v33 = vpop.permute.xlu0 %1454 }
0x12b7   :  { %v1459_v34 = vsub.f32 %v1403_v6, %v1455_v33 }
0x12b8   :  { %v1453_v28 = vpop.permute.xlu1 %1452 }
0x12b9   :  { %v1458_v30 = vsub.f32 %v1402_v1, %v1453_v28 }
0x12ba   :  { %v1475_v36 = vpop.permute.xlu0 %1474 }
0x12bb   :  { %1462 = vrot.lane.b32.xlu1 %v1458_v30, %s6140_s9 }
0x12be   :  { %v1477_v31 = vpop.permute.xlu0 %1476 }
0x12bf   :  { %1464 = vrot.lane.b32.xlu1 %v1459_v34, %s6140_s9 }
0x12c2   :  { %v1443_v53 = vpop.permute.xlu0 %1442 }
0x12c3   :  { %1430 = vrot.lane.b32.xlu1 %v1426_v16, %s6140_s9  ;;  %v231_v16 = vpop.f32.mrf.mxu0 }
0x12c5   :  { %v235_v19 = vpop.f32.mrf.mxu0 }
0x12c6   :  { %v1445_v59 = vpop.permute.xlu0 %1444 }
0x12c7   :  { %1432 = vrot.lane.b32.xlu1 %v1427_v12, %s6140_s9  ;;  %v237_v22 = vpop.f32.mrf.mxu0 }
0x12c9   :  { %v6597_v26 = vpop.f32.mrf.mxu0 }
0x12cb   :  { %v6599_v27 = vpop.f32.mrf.mxu0 }
0x12cd   :  { %v6601_v28 = vpop.f32.mrf.mxu0 }
0x12cf   :  { %v6603_v30 = vpop.f32.mrf.mxu0 }
0x12d1   :  { %v6605_v33 = vpop.f32.mrf.mxu0 }
0x12d3   :  { %v6607_v34 = vpop.f32.mrf.mxu0 }
0x12d5   :  { %v6609_v29 = vpop.f32.mrf.mxu0 }
0x12d7   :  { %v6611_v47 = vpop.f32.mrf.mxu0 }
0x12d9   :  { %v6613_v3 = vpop.f32.mrf.mxu0 }
0x12db   :  { %v6615_v50 = vpop.f32.mrf.mxu0 }
0x12dd   :  { %v6617_v35 = vpop.f32.mrf.mxu0 }
0x12df   :  { %v6619_v5 = vpop.f32.mrf.mxu0 }
0x132d   :  { %v1463_v11 = vpop.permute.xlu1 %1462 }
0x132e   :  { %v1468_v37 = vadd.f32 %v1463_v11, %v1450_v9 }
0x1330   :  { %v1480_v15 = vmul.f32 %v1475_v36, %v1468_v37  ;;  %v232_v36 = vadd.f32 %v231_v16, %v6283_v25 }
0x1331   :  { %v1465_v41 = vpop.permute.xlu1 %1464 }
0x1332   :  { %v1469_v40 = vadd.f32 %v1465_v41, %v1451_v39  ;;  %1484 = vrot.lane.b32.xlu1 %v1480_v15, %s6140_s9  ;;  %v238_v41 = vadd.f32 %v237_v22, %v6283_v25 }
0x1334   :  { %v1481_v38 = vmul.f32 %v1477_v31, %v1469_v40 }
0x1335   :  { %v1431_v52 = vpop.permute.xlu1 %1430 }
0x1336   :  { %1486 = vrot.lane.b32.xlu0 %v1481_v38, %s6140_s9  ;;  %v1436_v58 = vmul.f32 %v5802_v7, %v1431_v52 }
0x1338   :  { %v1448_v56 = vadd.f32 %v1443_v53, %v1436_v58  ;;  %v6636_v53 = vld [vmem:[%s7559_s2 + $0x30] sm:$0xff] }
0x1339   :  { %v1433_v54 = vpop.permute.xlu1 %1432 }
0x133a   :  { %v1437_v57 = vmul.f32 %v5804_v13, %v1433_v54  ;;  %v1470_v62 = vmul.f32 %v1448_v56, %v6475_v32  ;;  %v6643_v54 = vld [vmem:[%s7559_s2 + $0x28] sm:$0xff]  ;;  %v6649_v56 = vld [vmem:[%s7559_s2 + $0x20] sm:$0xff] }
0x133c   :  { %v1449_v61 = vadd.f32 %v1445_v59, %v1437_v57  ;;  %v6655_v57 = vld [vmem:[%s7559_s2 + $0x18] sm:$0xff]  ;;  %v6661_v59 = vld [vmem:[%s7559_s2 + $0x10] sm:$0xff] }
0x133e   :  { %v1471_v4 = vmul.f32 %v1449_v61, %v6479_v18  ;;  %v6591_v18 = vld [vmem:[%s7561_s4] sm:$0xff]  ;;  %v6667_v61 = vld [vmem:[%s7559_s2 + $0x8] sm:$0xff] }
0x13a4   :  { %v1485_v63 = vpop.permute.xlu1 %1484 }
0x13a5   :  { %v6576_v0 = vadd.f32 %v1485_v63, %v1470_v62  ;;  %v6673_v62 = vld [vmem:[%s7559_s2] sm:$0xff] }
0x13a7   :  { %5805 = vtanh.f32 %v6576_v0 }
0x13a8   :  { %v1487_v2 = vpop.permute.xlu0 %1486 }
0x13a9   :  { %v6580_v44 = vadd.f32 %v1487_v2, %v1471_v4 }
0x13ab   :  { %5807 = vtanh.f32 %v6580_v44 }
0x13b4   :  { %v5806_v6 = vpop.eup %5805 }
0x13b5   :  { %1496 = vrot.lane.b32.xlu1 %v5806_v6, %s6139_s8 }
0x13b8   :  { %v5808_v8 = vpop.eup %5807 }
0x13b9   :  { %1498 = vrot.lane.b32.xlu0 %v5808_v8, %s6139_s8 }
0x1427   :  { %v1497_v1 = vpop.permute.xlu1 %1496 }
0x1428   :  { %v1502_v32 = vmul.f32 %v5802_v7, %v1497_v1  ;;  %v230_v7 = vadd.f32 %v229_v14, %v6279_v24 }
0x142a   :  { %1504 = vst.msk [vmem:[#allocation3 + $0x30] sm:$0xff] %vm66_vm0, %v1502_v32  ;;  %5475 = vmatmul.mubr.msk.f32.vlgmr.msra.gmra.mxu0 %vm66_vm0, %v1502_v32 }
0x142b   :  { %v1499_v10 = vpop.permute.xlu0 %1498  ;;  %1586 = vmatprep.mubr.f32.mxu0 %v6138_v17  ;;  %5652 = vmatpush3.msra.mxu0 %v6591_v18 }
0x142c   :  { %v1503_v12 = vmul.f32 %v5804_v13, %v1499_v10  ;;  %5656 = vmatprep.subr.mxu0 %v6591_v18  ;;  %v236_v13 = vadd.f32 %v235_v19, %v6279_v24 }
0x142e   :  { %1505 = vst.msk [vmem:[#allocation3 + $0x48] sm:$0xff] %vm66_vm0, %v1503_v12  ;;  %5476 = vmatmul.mubr.msk.f32.gmra.mxu0 %vm66_vm0, %v1503_v12 }
0x14ea   :  { %v1582_v9 = vpop.f32.mrf.mxu0 }
0x14eb   :  { %v6623_v11 = vadd.f32 %v1582_v9, %v230_v7 }
0x14ec   :  { %v1584_v37 = vpop.f32.mrf.mxu0 }
0x14ed   :  { %v1594_v15 = vadd.f32 %v1584_v37, %v232_v36 }
0x14ee   :  { %v1588_v39 = vpop.f32.mrf.mxu0 }
0x14ef   :  { %v6627_v40 = vadd.f32 %v1588_v39, %v236_v13  ;;  %v1597_v31 = vsel %vm396_vm1, %v1594_v15, -inf }
0x14f0   :  { %1598 = vmax.xlane.f32.xlu1 %v1597_v31  ;;  %v1590_v38 = vpop.f32.mrf.mxu0 }
0x14f1   :  { %v1596_v42 = vadd.f32 %v1590_v38, %v238_v41  ;;  %v5479_v38 = vmul.f32 -1.442695, %v6623_v11 }
0x14f3   :  { %v1600_v43 = vsel %vm396_vm1, %v1596_v42, -inf }
0x14f4   :  { %1601 = vmax.xlane.f32.xlu0 %v1600_v43 }
0x1579   :  { %v1599_v45 = vpop.xlane.xlu1 %1598 }
0x157a   :  { %v1603_v46 = vsub.f32 %v1594_v15, %v1599_v45 }
0x157c   :  { %v1605_v48 = vmul.f32 1.442695, %v1603_v46 }
0x157d   :  { %v1602_v49 = vpop.xlane.xlu0 %1601 }
0x157e   :  { %5809 = vpow2.f32 %v1605_v48  ;;  %v1604_v51 = vsub.f32 %v1596_v42, %v1602_v49  ;;  %v5480_v42 = vmul.f32 -1.442695, %v6627_v40 }
0x1580   :  { %v1607_v55 = vmul.f32 1.442695, %v1604_v51 }
0x1582   :  { %5811 = vpow2.f32 %v1607_v55 }
0x158b   :  { %v5810_v52 = vpop.eup %5809 }
0x158c   :  { %5648 = vmatprep.mubr.msk.f32.mxu1 %vm396_vm1, %v5810_v52 }
0x158f   :  { %v5812_v58 = vpop.eup %5811 }
0x1590   :  { %5649 = vmatmul.mubr.msk.f32.vlgmr.msra.gmra.mxu1 %vm396_vm1, %v5812_v58 }
0x1591   :  { %1841 = vmatpush1.msra.mxu1 %v6636_v53  ;;  %1880 = vmatprep.mubr.f32.mxu1 %v6138_v17 }
0x1592   :  { %1842 = vmatprep.subr.mxu1 %v6643_v54 }
0x1593   :  { %1843 = vmatpush1.msra.mxu1 %v6649_v56 }
0x1594   :  { %1844 = vmatprep.subr.mxu1 %v6655_v57 }
0x1595   :  { %1845 = vmatpush1.msra.mxu1 %v6661_v59 }
0x1596   :  { %1846 = vmatprep.subr.mxu1 %v6667_v61 }
0x1597   :  { %1847 = vmatpush1.msra.mxu1 %v6673_v62 }
0x1598   :  { %2140 = vmatprep.subr.mxu1 %v6512_v60 }
0x1650   :  { %v5650_v63 = vpop.f32.mrf.mxu1 }
0x1651   :  { %1694 = vrot.lane.b32.xlu1 %v5650_v63, %s6139_s8 }
0x1652   :  { %v1681_v4 = vpop.f32.mrf.mxu1 }
0x1653   :  { %1692 = vrot.lane.b32.xlu0 %v1681_v4, %s6139_s8 }
0x16c3   :  { %v1695_v2 = vpop.permute.xlu1 %1694 }
0x16c4   :  { %5813 = vrcp.f32 %v1695_v2 }
0x16c5   :  { %v1693_v6 = vpop.permute.xlu0 %1692 }
0x16c6   :  { %5815 = vrcp.f32 %v1693_v6 }
0x16c7   :  { %5817 = vtanh.f32 %v6623_v11 }
0x16c8   :  { %5819 = vtanh.f32 %v6627_v40 }
0x16c9   :  { %5821 = vpow2.f32 %v5479_v38 }
0x16ca   :  { %5823 = vpow2.f32 %v5480_v42  ;;  %v242_v42 = vadd.f32 %v6597_v26, %v6279_v24 }
0x16d1   :  { %v5814_v8 = vpop.eup %5813 }
0x16d2   :  { %v1701_v1 = vmul.f32 %v5814_v8, %v5650_v63 }
0x16d3   :  { %v5816_v32 = vpop.eup %5815 }
0x16d4   :  { %v1703_v10 = vsub.f32 1.0, %v1701_v1  ;;  %v1699_v12 = vmul.f32 %v5816_v32, %v1681_v4  ;;  %v5818_v9 = vpop.eup %5817 }
0x16d5   :  { %v5820_v36 = vpop.eup %5819 }
0x16d6   :  { %1722 = vrot.lane.b32.xlu0 %v1703_v10, %s6140_s9  ;;  %v1702_v14 = vsub.f32 1.0, %v1699_v12  ;;  %v5822_v43 = vpop.eup %5821 }
0x16d7   :  { %v1710_v45 = vadd.f32 1.0, %v5822_v43  ;;  %v5824_v46 = vpop.eup %5823 }
0x16d8   :  { %1720 = vrot.lane.b32.xlu1 %v1702_v14, %s6140_s9  ;;  %v1711_v48 = vadd.f32 1.0, %v5824_v46 }
0x16d9   :  { %5825 = vrcp.f32 %v1710_v45  ;;  %v244_v45 = vadd.f32 %v6599_v27, %v6283_v25 }
0x16da   :  { %5827 = vrcp.f32 %v1711_v48 }
0x16e6   :  { %v5826_v49 = vpop.eup %5825 }
0x16e7   :  { %v5828_v63 = vpop.eup %5827 }
0x1748   :  { %v1723_v16 = vpop.permute.xlu0 %1722 }
0x1749   :  { %v1727_v19 = vmul.f32 %v1723_v16, %v1701_v1 }
0x174a   :  { %v1721_v22 = vpop.permute.xlu1 %1720 }
0x174b   :  { %v1726_v7 = vmul.f32 %v1721_v22, %v1699_v12  ;;  %1754 = vrot.lane.b32.xlu0 %v1727_v19, %s6141_s10  ;;  %v1739_v13 = vsub.f32 %v1701_v1, %v1727_v19  ;;  %v1751_v2 = vmul.f32 %v5828_v63, %v1727_v19 }
0x174d   :  { %1752 = vrot.lane.b32.xlu1 %v1726_v7, %s6141_s10  ;;  %v1738_v37 = vsub.f32 %v1699_v12, %v1726_v7  ;;  %v1750_v51 = vmul.f32 %v5826_v49, %v1726_v7 }
0x174f   :  { %1774 = vrot.lane.b32.xlu0 %v5818_v9, %s6139_s8 }
0x1753   :  { %1776 = vrot.lane.b32.xlu0 %v5820_v36, %s6139_s8 }
0x1757   :  { %1742 = vrot.lane.b32.xlu0 %v1738_v37, %s6140_s9 }
0x175b   :  { %1744 = vrot.lane.b32.xlu0 %v1739_v13, %s6140_s9 }
0x17bd   :  { %v1755_v41 = vpop.permute.xlu0 %1754 }
0x17be   :  { %v1759_v31 = vsub.f32 %v1703_v10, %v1755_v41 }
0x17bf   :  { %v1753_v15 = vpop.permute.xlu1 %1752 }
0x17c0   :  { %v1758_v39 = vsub.f32 %v1702_v14, %v1753_v15 }
0x17c1   :  { %v1775_v55 = vpop.permute.xlu0 %1774 }
0x17c2   :  { %1762 = vrot.lane.b32.xlu1 %v1758_v39, %s6140_s9 }
0x17c5   :  { %v1777_v40 = vpop.permute.xlu0 %1776 }
0x17c6   :  { %1764 = vrot.lane.b32.xlu1 %v1759_v31, %s6140_s9 }
0x17c9   :  { %v1743_v10 = vpop.permute.xlu0 %1742 }
0x17ca   :  { %1730 = vrot.lane.b32.xlu1 %v1726_v7, %s6140_s9 }
0x17cd   :  { %v1745_v22 = vpop.permute.xlu0 %1744 }
0x17ce   :  { %1732 = vrot.lane.b32.xlu1 %v1727_v19, %s6140_s9 }
0x1834   :  { %v1763_v52 = vpop.permute.xlu1 %1762 }
0x1835   :  { %v1768_v58 = vadd.f32 %v1763_v52, %v1750_v51  ;;  %v250_v52 = vadd.f32 %v6603_v30, %v6283_v25 }
0x1837   :  { %v1780_v4 = vmul.f32 %v1775_v55, %v1768_v58 }
0x1838   :  { %v1765_v6 = vpop.permute.xlu1 %1764 }
0x1839   :  { %v1769_v11 = vadd.f32 %v1765_v6, %v1751_v2  ;;  %1784 = vrot.lane.b32.xlu1 %v1780_v4, %s6140_s9 }
0x183b   :  { %v1781_v8 = vmul.f32 %v1777_v40, %v1769_v11 }
0x183c   :  { %v1731_v1 = vpop.permute.xlu1 %1730 }
0x183d   :  { %1786 = vrot.lane.b32.xlu0 %v1781_v8, %s6140_s9  ;;  %v1736_v32 = vmul.f32 %v5826_v49, %v1731_v1 }
0x183f   :  { %v1748_v14 = vadd.f32 %v1743_v10, %v1736_v32 }
0x1840   :  { %v1733_v12 = vpop.permute.xlu1 %1732 }
0x1841   :  { %v1737_v16 = vmul.f32 %v5828_v63, %v1733_v12  ;;  %v1770_v9 = vmul.f32 %v1748_v14, %v6576_v0 }
0x1843   :  { %v1749_v7 = vadd.f32 %v1745_v22, %v1737_v16 }
0x1845   :  { %v1771_v37 = vmul.f32 %v1749_v7, %v6580_v44 }
0x18ab   :  { %v1785_v36 = vpop.permute.xlu1 %1784 }
0x18ac   :  { %v6698_v19 = vadd.f32 %v1785_v36, %v1770_v9 }
0x18ae   :  { %5829 = vtanh.f32 %v6698_v19 }
0x18af   :  { %v1787_v13 = vpop.permute.xlu0 %1786 }
0x18b0   :  { %v6702_v15 = vadd.f32 %v1787_v13, %v1771_v37 }
0x18b2   :  { %5831 = vtanh.f32 %v6702_v15 }
0x18bb   :  { %v5830_v39 = vpop.eup %5829 }
0x18bc   :  { %1796 = vrot.lane.b32.xlu1 %v5830_v39, %s6139_s8 }
0x18bf   :  { %v5832_v41 = vpop.eup %5831 }
0x18c0   :  { %1798 = vrot.lane.b32.xlu0 %v5832_v41, %s6139_s8 }
0x192e   :  { %v1797_v31 = vpop.permute.xlu1 %1796 }
0x192f   :  { %v1802_v0 = vmul.f32 %v5826_v49, %v1797_v31  ;;  %v248_v49 = vadd.f32 %v6601_v28, %v6279_v24 }
0x1931   :  { %1804 = vst.msk [vmem:[#allocation3 + $0x40] sm:$0xff] %vm66_vm0, %v1802_v0  ;;  %5481 = vmatmul.mubr.msk.f32.vlgmr.msra.gmra.mxu1 %vm66_vm0, %v1802_v0 }
0x1932   :  { %v1799_v38 = vpop.permute.xlu0 %1798  ;;  %1886 = vmatprep.mubr.f32.mxu1 %v6138_v17  ;;  %2141 = vmatpush1.msra.mxu1 %v6636_v53 }
0x1933   :  { %v1803_v44 = vmul.f32 %v5828_v63, %v1799_v38  ;;  %2142 = vmatprep.subr.mxu1 %v6643_v54 }
0x1934   :  { %2143 = vmatpush1.msra.mxu1 %v6649_v56 }
0x1935   :  { %1805 = vst.msk [vmem:[#allocation3 + $0x38] sm:$0xff] %vm66_vm0, %v1803_v44  ;;  %5482 = vmatmul.mubr.msk.f32.gmra.mxu1 %vm66_vm0, %v1803_v44  ;;  %2144 = vmatprep.subr.mxu1 %v6655_v57 }
0x1936   :  { %2145 = vmatpush1.msra.mxu1 %v6661_v59  ;;  %2180 = vmatprep.mubr.f32.mxu1 %v6138_v17 }
0x1937   :  { %2146 = vmatprep.subr.mxu1 %v6667_v61 }
0x1938   :  { %2147 = vmatpush1.msra.mxu1 %v6673_v62 }
0x1939   :  { %5661 = vmatprep.subr.mxu1 %v6591_v18 }
0x19f1   :  { %v1882_v43 = vpop.f32.mrf.mxu1 }
0x19f2   :  { %v6725_v46 = vadd.f32 %v1882_v43, %v242_v42 }
0x19f3   :  { %v1884_v48 = vpop.f32.mrf.mxu1 }
0x19f4   :  { %v1894_v51 = vadd.f32 %v1884_v48, %v244_v45 }
0x19f5   :  { %v1888_v55 = vpop.f32.mrf.mxu1 }
0x19f6   :  { %v1895_v58 = vadd.f32 %v1888_v55, %v248_v49  ;;  %v1897_v63 = vsel %vm396_vm1, %v1894_v51, -inf  ;;  %v5485_v49 = vmul.f32 -1.442695, %v6725_v46 }
0x19f7   :  { %1898 = vmax.xlane.f32.xlu1 %v1897_v63  ;;  %v1890_v26 = vpop.f32.mrf.mxu1 }
0x19f8   :  { %v1896_v4 = vadd.f32 %v1890_v26, %v250_v52 }
0x19fa   :  { %v1900_v2 = vsel %vm396_vm1, %v1896_v4, -inf }
0x19fb   :  { %1901 = vmax.xlane.f32.xlu0 %v1900_v2 }
0x1a80   :  { %v1899_v27 = vpop.xlane.xlu1 %1898 }
0x1a81   :  { %v1903_v6 = vsub.f32 %v1894_v51, %v1899_v27  ;;  %v5486_v51 = vmul.f32 -1.442695, %v1895_v58 }
0x1a83   :  { %v1905_v11 = vmul.f32 1.442695, %v1903_v6 }
0x1a84   :  { %v1902_v40 = vpop.xlane.xlu0 %1901 }
0x1a85   :  { %5833 = vpow2.f32 %v1905_v11  ;;  %v1904_v28 = vsub.f32 %v1896_v4, %v1902_v40 }
0x1a87   :  { %v1907_v8 = vmul.f32 1.442695, %v1904_v28 }
0x1a89   :  { %5835 = vpow2.f32 %v1907_v8 }
0x1a92   :  { %v5834_v1 = vpop.eup %5833 }
0x1a93   :  { %5653 = vmatprep.mubr.msk.f32.mxu0 %vm396_vm1, %v5834_v1 }
0x1a96   :  { %v5836_v30 = vpop.eup %5835 }
0x1a97   :  { %5654 = vmatmul.mubr.msk.f32.vlgmr.msra.gmra.mxu0 %vm396_vm1, %v5836_v30 }
0x1a98   :  { %5657 = vmatpush3.msra.mxu0 %v6591_v18 }
0x1a99   :  { %2440 = vmatprep.subr.mxu0 %v6512_v60 }
0x1b57   :  { %v5655_v32 = vpop.f32.mrf.mxu0 }
0x1b58   :  { %1994 = vrot.lane.b32.xlu1 %v5655_v32, %s6139_s8 }
0x1b59   :  { %v1981_v10 = vpop.f32.mrf.mxu0 }
0x1b5a   :  { %1992 = vrot.lane.b32.xlu0 %v1981_v10, %s6139_s8 }
0x1bca   :  { %v1995_v12 = vpop.permute.xlu1 %1994 }
0x1bcb   :  { %5837 = vrcp.f32 %v1995_v12 }
0x1bcc   :  { %v1993_v14 = vpop.permute.xlu0 %1992 }
0x1bcd   :  { %5839 = vrcp.f32 %v1993_v14 }
0x1bce   :  { %5841 = vtanh.f32 %v6725_v46 }
0x1bcf   :  { %5843 = vtanh.f32 %v1895_v58 }
0x1bd0   :  { %5845 = vpow2.f32 %v5485_v49 }
0x1bd1   :  { %5847 = vpow2.f32 %v5486_v51  ;;  %v260_v51 = vadd.f32 %v6609_v29, %v6279_v24 }
0x1bd8   :  { %v5838_v16 = vpop.eup %5837 }
0x1bd9   :  { %v2001_v22 = vmul.f32 %v5838_v16, %v5655_v32 }
0x1bda   :  { %v5840_v7 = vpop.eup %5839 }
0x1bdb   :  { %v2003_v9 = vsub.f32 1.0, %v2001_v22  ;;  %v1999_v36 = vmul.f32 %v5840_v7, %v1981_v10  ;;  %v5842_v31 = vpop.eup %5841 }
0x1bdc   :  { %v5844_v0 = vpop.eup %5843 }
0x1bdd   :  { %2022 = vrot.lane.b32.xlu0 %v2003_v9, %s6140_s9  ;;  %v2002_v37 = vsub.f32 1.0, %v1999_v36  ;;  %v5846_v55 = vpop.eup %5845 }
0x1bde   :  { %v2010_v52 = vadd.f32 1.0, %v5846_v55  ;;  %v5848_v63 = vpop.eup %5847 }
0x1bdf   :  { %2020 = vrot.lane.b32.xlu1 %v2002_v37, %s6140_s9  ;;  %v2011_v26 = vadd.f32 1.0, %v5848_v63  ;;  %v262_v63 = vadd.f32 %v6611_v47, %v6283_v25 }
0x1be0   :  { %5849 = vrcp.f32 %v2010_v52 }
0x1be1   :  { %5851 = vrcp.f32 %v2011_v26 }
0x1bed   :  { %v5850_v4 = vpop.eup %5849 }
0x1bee   :  { %v5852_v40 = vpop.eup %5851 }
0x1c4f   :  { %v2023_v60 = vpop.permute.xlu0 %2022 }
0x1c50   :  { %v2027_v13 = vmul.f32 %v2023_v60, %v2001_v22 }
0x1c51   :  { %v2021_v39 = vpop.permute.xlu1 %2020 }
0x1c52   :  { %v2026_v41 = vmul.f32 %v2021_v39, %v1999_v36  ;;  %2054 = vrot.lane.b32.xlu0 %v2027_v13, %s6141_s10  ;;  %v2039_v44 = vsub.f32 %v2001_v22, %v2027_v13  ;;  %v2051_v8 = vmul.f32 %v5852_v40, %v2027_v13 }
0x1c54   :  { %2052 = vrot.lane.b32.xlu1 %v2026_v41, %s6141_s10  ;;  %v2038_v38 = vsub.f32 %v1999_v36, %v2026_v41  ;;  %v2050_v2 = vmul.f32 %v5850_v4, %v2026_v41 }
0x1c56   :  { %2074 = vrot.lane.b32.xlu0 %v5842_v31, %s6139_s8 }
0x1c5a   :  { %2076 = vrot.lane.b32.xlu0 %v5844_v0, %s6139_s8 }
0x1c5e   :  { %2042 = vrot.lane.b32.xlu0 %v2038_v38, %s6140_s9 }
0x1c62   :  { %2044 = vrot.lane.b32.xlu0 %v2039_v44, %s6140_s9 }
0x1cc4   :  { %v2055_v45 = vpop.permute.xlu0 %2054 }
0x1cc5   :  { %v2059_v48 = vsub.f32 %v2003_v9, %v2055_v45  ;;  %v256_v45 = vadd.f32 %v6607_v34, %v6283_v25 }
0x1cc6   :  { %v2053_v42 = vpop.permute.xlu1 %2052 }
0x1cc7   :  { %v2058_v43 = vsub.f32 %v2002_v37, %v2053_v42  ;;  %v254_v42 = vadd.f32 %v6605_v33, %v6279_v24 }
0x1cc8   :  { %v2075_v27 = vpop.permute.xlu0 %2074 }
0x1cc9   :  { %2062 = vrot.lane.b32.xlu1 %v2058_v43, %s6140_s9 }
0x1ccc   :  { %v2077_v46 = vpop.permute.xlu0 %2076 }
0x1ccd   :  { %2064 = vrot.lane.b32.xlu1 %v2059_v48, %s6140_s9 }
0x1cd0   :  { %v2043_v12 = vpop.permute.xlu0 %2042 }
0x1cd1   :  { %2030 = vrot.lane.b32.xlu1 %v2026_v41, %s6140_s9 }
0x1cd4   :  { %v2045_v7 = vpop.permute.xlu0 %2044 }
0x1cd5   :  { %2032 = vrot.lane.b32.xlu1 %v2027_v13, %s6140_s9 }
0x1d3b   :  { %v2063_v6 = vpop.permute.xlu1 %2062 }
0x1d3c   :  { %v2068_v11 = vadd.f32 %v2063_v6, %v2050_v2 }
0x1d3e   :  { %v2080_v28 = vmul.f32 %v2075_v27, %v2068_v11 }
0x1d3f   :  { %v2065_v1 = vpop.permute.xlu1 %2064 }
0x1d40   :  { %v2069_v30 = vadd.f32 %v2065_v1, %v2051_v8  ;;  %2084 = vrot.lane.b32.xlu1 %v2080_v28, %s6140_s9 }
0x1d42   :  { %v2081_v58 = vmul.f32 %v2077_v46, %v2069_v30 }
0x1d43   :  { %v2031_v32 = vpop.permute.xlu1 %2030 }
0x1d44   :  { %2086 = vrot.lane.b32.xlu0 %v2081_v58, %s6140_s9  ;;  %v2036_v10 = vmul.f32 %v5850_v4, %v2031_v32 }
0x1d46   :  { %v2048_v16 = vadd.f32 %v2043_v12, %v2036_v10 }
0x1d47   :  { %v2033_v14 = vpop.permute.xlu1 %2032 }
0x1d48   :  { %v2037_v22 = vmul.f32 %v5852_v40, %v2033_v14  ;;  %v2070_v36 = vmul.f32 %v2048_v16, %v6698_v19 }
0x1d4a   :  { %v2049_v9 = vadd.f32 %v2045_v7, %v2037_v22 }
0x1d4c   :  { %v2071_v13 = vmul.f32 %v2049_v9, %v6702_v15 }
0x1db2   :  { %v2085_v37 = vpop.permute.xlu1 %2084 }
0x1db3   :  { %v6756_v60 = vadd.f32 %v2085_v37, %v2070_v36 }
0x1db5   :  { %5853 = vtanh.f32 %v6756_v60 }
0x1db6   :  { %v2087_v39 = vpop.permute.xlu0 %2086 }
0x1db7   :  { %v6760_v41 = vadd.f32 %v2087_v39, %v2071_v13 }
0x1db9   :  { %5855 = vtanh.f32 %v6760_v41 }
0x1dc2   :  { %v5854_v31 = vpop.eup %5853 }
0x1dc3   :  { %2096 = vrot.lane.b32.xlu1 %v5854_v31, %s6139_s8 }
0x1dc6   :  { %v5856_v0 = vpop.eup %5855 }
0x1dc7   :  { %2098 = vrot.lane.b32.xlu0 %v5856_v0, %s6139_s8 }
0x1e35   :  { %v2097_v38 = vpop.permute.xlu1 %2096 }
0x1e36   :  { %v2102_v19 = vmul.f32 %v5850_v4, %v2097_v38 }
0x1e38   :  { %2104 = vst.msk [vmem:[#allocation3 + $0x50] sm:$0xff] %vm66_vm0, %v2102_v19  ;;  %5487 = vmatmul.mubr.msk.f32.vlgmr.msra.gmra.mxu1 %vm66_vm0, %v2102_v19 }
0x1e39   :  { %v2099_v44 = vpop.permute.xlu0 %2098  ;;  %2186 = vmatprep.mubr.f32.mxu1 %v6138_v17  ;;  %5662 = vmatpush3.msra.mxu1 %v6591_v18 }
0x1e3a   :  { %v2103_v15 = vmul.f32 %v5852_v40, %v2099_v44 }
0x1e3c   :  { %2105 = vst.msk [vmem:[#allocation3 + $0x28] sm:$0xff] %vm66_vm0, %v2103_v15  ;;  %5488 = vmatmul.mubr.msk.f32.gmra.mxu1 %vm66_vm0, %v2103_v15 }
0x1ef8   :  { %v2182_v43 = vpop.f32.mrf.mxu1 }
0x1ef9   :  { %v6775_v48 = vadd.f32 %v2182_v43, %v254_v42 }
0x1efa   :  { %v2184_v49 = vpop.f32.mrf.mxu1 }
0x1efb   :  { %v2194_v55 = vadd.f32 %v2184_v49, %v256_v45  ;;  %v5491_v39 = vmul.f32 -1.442695, %v6775_v48 }
0x1efc   :  { %v2188_v52 = vpop.f32.mrf.mxu1 }
0x1efd   :  { %v6781_v26 = vadd.f32 %v2188_v52, %v260_v51  ;;  %v2197_v4 = vsel %vm396_vm1, %v2194_v55, -inf }
0x1efe   :  { %2198 = vmax.xlane.f32.xlu1 %v2197_v4  ;;  %v2190_v33 = vpop.f32.mrf.mxu1 }
0x1eff   :  { %v2196_v2 = vadd.f32 %v2190_v33, %v262_v63  ;;  %v5492_v31 = vmul.f32 -1.442695, %v6781_v26 }
0x1f01   :  { %v2200_v34 = vsel %vm396_vm1, %v2196_v2, -inf }
0x1f02   :  { %2201 = vmax.xlane.f32.xlu0 %v2200_v34 }
0x1f87   :  { %v2199_v27 = vpop.xlane.xlu1 %2198 }
0x1f88   :  { %v2203_v6 = vsub.f32 %v2194_v55, %v2199_v27 }
0x1f8a   :  { %v2205_v11 = vmul.f32 1.442695, %v2203_v6 }
0x1f8b   :  { %v2202_v40 = vpop.xlane.xlu0 %2201 }
0x1f8c   :  { %5857 = vpow2.f32 %v2205_v11  ;;  %v2204_v29 = vsub.f32 %v2196_v2, %v2202_v40 }
0x1f8e   :  { %v2207_v28 = vmul.f32 1.442695, %v2204_v29 }
0x1f90   :  { %5859 = vpow2.f32 %v2207_v28 }
0x1f99   :  { %v5858_v8 = vpop.eup %5857 }
0x1f9a   :  { %5658 = vmatprep.mubr.msk.f32.mxu0 %vm396_vm1, %v5858_v8 }
0x1f9d   :  { %v5860_v47 = vpop.eup %5859 }
0x1f9e   :  { %5659 = vmatmul.mubr.msk.f32.vlgmr.msra.gmra.mxu0 %vm396_vm1, %v5860_v47 }
0x1f9f   :  { %2441 = vmatpush1.msra.mxu0 %v6636_v53  ;;  %2480 = vmatprep.mubr.f32.mxu0 %v6138_v17 }
0x1fa0   :  { %2442 = vmatprep.subr.mxu0 %v6643_v54 }
0x1fa1   :  { %2443 = vmatpush1.msra.mxu0 %v6649_v56 }
0x1fa2   :  { %2444 = vmatprep.subr.mxu0 %v6655_v57 }
0x1fa3   :  { %2445 = vmatpush1.msra.mxu0 %v6661_v59 }
0x1fa4   :  { %2446 = vmatprep.subr.mxu0 %v6667_v61 }
0x1fa5   :  { %2447 = vmatpush1.msra.mxu0 %v6673_v62 }
0x205e   :  { %v5660_v1 = vpop.f32.mrf.mxu0 }
0x205f   :  { %2294 = vrot.lane.b32.xlu1 %v5660_v1, %s6139_s8 }
0x2060   :  { %v2281_v30 = vpop.f32.mrf.mxu0 }
0x2061   :  { %2292 = vrot.lane.b32.xlu0 %v2281_v30, %s6139_s8 }
0x20d1   :  { %v2295_v53 = vpop.permute.xlu1 %2294 }
0x20d2   :  { %5861 = vrcp.f32 %v2295_v53 }
0x20d3   :  { %v2293_v46 = vpop.permute.xlu0 %2292 }
0x20d4   :  { %5863 = vrcp.f32 %v2293_v46  ;;  %v5506_v46 = vld [vmem:[%s7558_s1 + $0x78] sm:$0xff] }
0x20d5   :  { %5865 = vtanh.f32 %v6775_v48  ;;  %2825 = vmatprep.subr.mxu0 %v5506_v46 }
0x20d6   :  { %5867 = vtanh.f32 %v6781_v26 }
0x20d7   :  { %5869 = vpow2.f32 %v5491_v39 }
0x20d8   :  { %5871 = vpow2.f32 %v5492_v31 }
0x20df   :  { %v5862_v54 = vpop.eup %5861 }
0x20e0   :  { %v2301_v56 = vmul.f32 %v5862_v54, %v5660_v1 }
0x20e1   :  { %v5864_v58 = vpop.eup %5863 }
0x20e2   :  { %v2303_v57 = vsub.f32 1.0, %v2301_v56  ;;  %v2299_v32 = vmul.f32 %v5864_v58, %v2281_v30  ;;  %v5866_v14 = vpop.eup %5865 }
0x20e3   :  { %v5868_v16 = vpop.eup %5867 }
0x20e4   :  { %2322 = vrot.lane.b32.xlu0 %v2303_v57, %s6140_s9  ;;  %v2302_v59 = vsub.f32 1.0, %v2299_v32  ;;  %v5870_v0 = vpop.eup %5869 }
0x20e5   :  { %v2310_v38 = vadd.f32 1.0, %v5870_v0  ;;  %v5872_v19 = vpop.eup %5871  ;;  %v274_v0 = vadd.f32 %v6619_v5, %v6283_v25  ;;  %v6898_v5 = vld [vmem:[%s7559_s2 + $0x58] sm:$0xff] }
0x20e6   :  { %2320 = vrot.lane.b32.xlu1 %v2302_v59, %s6140_s9  ;;  %v2311_v44 = vadd.f32 1.0, %v5872_v19 }
0x20e7   :  { %5873 = vrcp.f32 %v2310_v38 }
0x20e8   :  { %5875 = vrcp.f32 %v2311_v44 }
0x20f4   :  { %v5874_v15 = vpop.eup %5873 }
0x20f5   :  { %v5876_v51 = vpop.eup %5875 }
0x2156   :  { %v2323_v61 = vpop.permute.xlu0 %2322 }
0x2157   :  { %v2327_v62 = vmul.f32 %v2323_v61, %v2301_v56  ;;  %v5502_v61 = vld [vmem:[%s7558_s1 + $0x58] sm:$0xff] }
0x2158   :  { %v2321_v10 = vpop.permute.xlu1 %2320 }
0x2159   :  { %v2326_v12 = vmul.f32 %v2321_v10, %v2299_v32  ;;  %2354 = vrot.lane.b32.xlu0 %v2327_v62, %s6141_s10  ;;  %v2339_v7 = vsub.f32 %v2301_v56, %v2327_v62  ;;  %v2351_v52 = vmul.f32 %v5876_v51, %v2327_v62  ;;  %v5501_v10 = vld [vmem:[%s7558_s1 + $0x50] sm:$0xff] }
0x215b   :  { %2352 = vrot.lane.b32.xlu1 %v2326_v12, %s6141_s10  ;;  %v2338_v22 = vsub.f32 %v2299_v32, %v2326_v12  ;;  %v2350_v42 = vmul.f32 %v5874_v15, %v2326_v12  ;;  %v5503_v32 = vld [vmem:[%s7558_s1 + $0x60] sm:$0xff] }
0x215d   :  { %2374 = vrot.lane.b32.xlu0 %v5866_v14, %s6139_s8  ;;  %v5499_v14 = vld [vmem:[%s7558_s1 + $0x40] sm:$0xff] }
0x2161   :  { %2376 = vrot.lane.b32.xlu0 %v5868_v16, %s6139_s8  ;;  %v2726_v16 = vld [vmem:[#allocation3] sm:$0xff] }
0x2165   :  { %2342 = vrot.lane.b32.xlu0 %v2338_v22, %s6140_s9  ;;  %v266_v22 = vadd.f32 %v6613_v3, %v6279_v24 }
0x2169   :  { %2344 = vrot.lane.b32.xlu0 %v2339_v7, %s6140_s9 }
0x21cb   :  { %v2355_v37 = vpop.permute.xlu0 %2354 }
0x21cc   :  { %v2359_v13 = vsub.f32 %v2303_v57, %v2355_v37  ;;  %v5504_v57 = vld [vmem:[%s7558_s1 + $0x68] sm:$0xff] }
0x21cd   :  { %v2353_v9 = vpop.permute.xlu1 %2352 }
0x21ce   :  { %v2358_v36 = vsub.f32 %v2302_v59, %v2353_v9  ;;  %v268_v9 = vadd.f32 %v6615_v50, %v6283_v25  ;;  %v6887_v25 = vld [vmem:[%s7559_s2 + $0x68] sm:$0xff] }
0x21cf   :  { %v2375_v43 = vpop.permute.xlu0 %2374 }
0x21d0   :  { %2362 = vrot.lane.b32.xlu1 %v2358_v36, %s6140_s9 }
0x21d3   :  { %v2377_v26 = vpop.permute.xlu0 %2376 }
0x21d4   :  { %2364 = vrot.lane.b32.xlu1 %v2359_v13, %s6140_s9  ;;  %v272_v13 = vadd.f32 %v6617_v35, %v6279_v24  ;;  %v6881_v24 = vld [vmem:[%s7559_s2 + $0x70] sm:$0xff]  ;;  %v6892_v35 = vld [vmem:[%s7559_s2 + $0x60] sm:$0xff] }
0x21d7   :  { %v2343_v34 = vpop.permute.xlu0 %2342 }
0x21d8   :  { %2330 = vrot.lane.b32.xlu1 %v2326_v12, %s6140_s9  ;;  %v5500_v12 = vld [vmem:[%s7558_s1 + $0x48] sm:$0xff] }
0x21db   :  { %v2345_v40 = vpop.permute.xlu0 %2344 }
0x21dc   :  { %2332 = vrot.lane.b32.xlu1 %v2327_v62, %s6140_s9 }
0x2242   :  { %v2363_v45 = vpop.permute.xlu1 %2362 }
0x2243   :  { %v2368_v49 = vadd.f32 %v2363_v45, %v2350_v42  ;;  %v6904_v42 = vld [vmem:[%s7559_s2 + $0x50] sm:$0xff]  ;;  %v6916_v45 = vld [vmem:[%s7559_s2 + $0x40] sm:$0xff] }
0x2245   :  { %v2380_v55 = vmul.f32 %v2375_v43, %v2368_v49  ;;  %v6910_v43 = vld [vmem:[%s7559_s2 + $0x48] sm:$0xff] }
0x2246   :  { %v2365_v63 = vpop.permute.xlu1 %2364 }
0x2247   :  { %v2369_v48 = vadd.f32 %v2365_v63, %v2351_v52  ;;  %2384 = vrot.lane.b32.xlu1 %v2380_v55, %s6140_s9 }
0x2249   :  { %v2381_v4 = vmul.f32 %v2377_v26, %v2369_v48 }
0x224a   :  { %v2331_v33 = vpop.permute.xlu1 %2330 }
0x224b   :  { %2386 = vrot.lane.b32.xlu0 %v2381_v4, %s6140_s9  ;;  %v2336_v2 = vmul.f32 %v5874_v15, %v2331_v33  ;;  %v5515_v33 = vld [vmem:[%s7560_s3 + $0x2] sm:$0x3] }
0x224d   :  { %v2348_v6 = vadd.f32 %v2343_v34, %v2336_v2  ;;  %v6943_v34 = vrot.slane %v5515_v33, %v58_v21 }
0x224e   :  { %v2333_v27 = vpop.permute.xlu1 %2332 }
0x224f   :  { %v2337_v11 = vmul.f32 %v5876_v51, %v2333_v27  ;;  %v2370_v28 = vmul.f32 %v2348_v6, %v6756_v60 }
0x2251   :  { %v2349_v29 = vadd.f32 %v2345_v40, %v2337_v11 }
0x2253   :  { %v2371_v1 = vmul.f32 %v2349_v29, %v6760_v41  ;;  %v5505_v41 = vld [vmem:[%s7558_s1 + $0x70] sm:$0xff] }
0x22b9   :  { %v2385_v8 = vpop.permute.xlu1 %2384 }
0x22ba   :  { %v6816_v47 = vadd.f32 %v2385_v8, %v2370_v28 }
0x22bc   :  { %5877 = vtanh.f32 %v6816_v47 }
0x22bd   :  { %v2387_v30 = vpop.permute.xlu0 %2386 }
0x22be   :  { %v6820_v53 = vadd.f32 %v2387_v30, %v2371_v1 }
0x22c0   :  { %5879 = vtanh.f32 %v6820_v53 }
0x22c9   :  { %v5878_v54 = vpop.eup %5877 }
0x22ca   :  { %2396 = vrot.lane.b32.xlu1 %v5878_v54, %s6139_s8 }
0x22cd   :  { %v5880_v60 = vpop.eup %5879 }
0x22ce   :  { %2398 = vrot.lane.b32.xlu0 %v5880_v60, %s6139_s8 }
0x233c   :  { %v2397_v56 = vpop.permute.xlu1 %2396 }
0x233d   :  { %v2402_v58 = vmul.f32 %v5874_v15, %v2397_v56  ;;  %v6874_v15 = vld [vmem:[%s7559_s2 + $0x78] sm:$0xff] }
0x233e   :  { %3022 = vmatprep.subr.mxu1 %v6874_v15 }
0x233f   :  { %2404 = vst.msk [vmem:[#allocation3 + $0x60] sm:$0xff] %vm66_vm0, %v2402_v58  ;;  %5493 = vmatmul.mubr.msk.f32.vlgmr.msra.gmra.mxu0 %vm66_vm0, %v2402_v58 }
0x2340   :  { %2826 = vmatpush1.msra.mxu0 %v5505_v41  ;;  %v2399_v59 = vpop.permute.xlu0 %2398  ;;  %2486 = vmatprep.mubr.f32.mxu0 %v6138_v17 }
0x2341   :  { %v2403_v62 = vmul.f32 %v5876_v51, %v2399_v59  ;;  %2827 = vmatprep.subr.mxu0 %v5504_v57 }
0x2342   :  { %2828 = vmatpush1.msra.mxu0 %v5503_v32 }
0x2343   :  { %2405 = vst.msk [vmem:[#allocation3 + $0x18] sm:$0xff] %vm66_vm0, %v2403_v62  ;;  %5494 = vmatmul.mubr.msk.f32.gmra.mxu0 %vm66_vm0, %v2403_v62  ;;  %2829 = vmatprep.subr.mxu0 %v5502_v61 }
0x2344   :  { %2830 = vmatpush1.msra.mxu0 %v5501_v10  ;;  %2865 = vmatprep.mubr.f32.mxu0 %v6138_v17 }
0x2345   :  { %2831 = vmatprep.subr.mxu0 %v5500_v12 }
0x2346   :  { %2832 = vmatpush1.msra.mxu0 %v5499_v14  ;;  %v6961_v14 = vrot.slane %v5515_v33, %v62_v23  ;;  %v2733_v33 = vld [vmem:[#allocation3 + $0x38] sm:$0xff] }
0x2347   :  { %5516 = vmatmul.mubr.msk.f32.vlgmr.msra.gmra.mxu0 %vm66_vm0, %v2726_v16  ;;  %4238 = vmatprep.subr.mxu0 %v6874_v15 }
0x2348   :  { %2871 = vmatprep.mubr.f32.mxu0 %v6138_v17  ;;  %4239 = vmatpush1.msra.mxu0 %v6881_v24 }
0x2349   :  { %4240 = vmatprep.subr.mxu0 %v6887_v25 }
0x234a   :  { %4241 = vmatpush1.msra.mxu0 %v6892_v35 }
0x234b   :  { %4242 = vmatprep.subr.mxu0 %v6898_v5 }
0x234c   :  { %4243 = vmatpush1.msra.mxu0 %v6904_v42 }
0x234d   :  { %4244 = vmatprep.subr.mxu0 %v6910_v43 }
0x234e   :  { %4245 = vmatpush1.msra.mxu0 %v6916_v45 }
0x234f   :  { %5691 = vmatprep.subr.mxu0 %v6591_v18 }
0x23ff   :  { %v2482_v7 = vpop.f32.mrf.mxu0 }
0x2400   :  { %v6861_v36 = vadd.f32 %v2482_v7, %v266_v22 }
0x2401   :  { %v2484_v37 = vpop.f32.mrf.mxu0 }
0x2402   :  { %v2494_v39 = vadd.f32 %v2484_v37, %v268_v9 }
0x2403   :  { %v2488_v31 = vpop.f32.mrf.mxu0 }
0x2404   :  { %v6867_v38 = vadd.f32 %v2488_v31, %v272_v13  ;;  %v2497_v19 = vsel %vm396_vm1, %v2494_v39, -inf }
0x2405   :  { %2498 = vmax.xlane.f32.xlu1 %v2497_v19  ;;  %v2490_v3 = vpop.f32.mrf.mxu0 }
0x2406   :  { %v2496_v44 = vadd.f32 %v2490_v3, %v274_v0  ;;  %v5498_v58 = vmul.f32 -1.442695, %v6867_v38 }
0x2407   :  { %v2867_v27 = vpop.f32.mrf.mxu0 }
0x2408   :  { %v2500_v50 = vsel %vm396_vm1, %v2496_v44, -inf }
0x2409   :  { %2501 = vmax.xlane.f32.xlu0 %v2500_v50  ;;  %v2869_v16 = vpop.f32.mrf.mxu0 }
0x240a   :  { %v2870_v7 = vadd.f32 %v2869_v16, %v6961_v14 }
0x248e   :  { %v2499_v49 = vpop.xlane.xlu1 %2498 }
0x248f   :  { %v2503_v51 = vsub.f32 %v2494_v39, %v2499_v49 }
0x2491   :  { %v2505_v55 = vmul.f32 1.442695, %v2503_v51 }
0x2492   :  { %v2502_v52 = vpop.xlane.xlu0 %2501 }
0x2493   :  { %5881 = vpow2.f32 %v2505_v55  ;;  %v2504_v63 = vsub.f32 %v2496_v44, %v2502_v52 }
0x2495   :  { %v2507_v48 = vmul.f32 1.442695, %v2504_v63  ;;  %v2729_v63 = vld [vmem:[#allocation3 + $0x18] sm:$0xff] }
0x2497   :  { %5883 = vpow2.f32 %v2507_v48  ;;  %v2730_v48 = vld [vmem:[#allocation3 + $0x20] sm:$0xff] }
0x24a0   :  { %v5882_v26 = vpop.eup %5881 }
0x24a1   :  { %5663 = vmatprep.mubr.msk.f32.mxu1 %vm396_vm1, %v5882_v26  ;;  %v2731_v26 = vld [vmem:[#allocation3 + $0x28] sm:$0xff] }
0x24a4   :  { %v5884_v4 = vpop.eup %5883 }
0x24a5   :  { %5664 = vmatmul.mubr.msk.f32.vlgmr.msra.gmra.mxu1 %vm396_vm1, %v5884_v4  ;;  %v2732_v4 = vld [vmem:[#allocation3 + $0x30] sm:$0xff] }
0x24a6   :  { %3023 = vmatpush1.msra.mxu1 %v6881_v24  ;;  %3062 = vmatprep.mubr.f32.mxu1 %v6138_v17 }
0x24a7   :  { %3024 = vmatprep.subr.mxu1 %v6887_v25 }
0x24a8   :  { %3025 = vmatpush1.msra.mxu1 %v6892_v35 }
0x24a9   :  { %3026 = vmatprep.subr.mxu1 %v6898_v5 }
0x24aa   :  { %3027 = vmatpush1.msra.mxu1 %v6904_v42 }
0x24ab   :  { %3028 = vmatprep.subr.mxu1 %v6910_v43 }
0x24ac   :  { %3029 = vmatpush1.msra.mxu1 %v6916_v45 }
0x24ad   :  { %3063 = vmatmul.mubr.f32.vlgmr.msra.gmra.mxu1 %v6138_v17  ;;  %5666 = vmatprep.subr.mxu1 %v6591_v18 }
0x24ae   :  { %3068 = vmatprep.mubr.f32.mxu1 %v6138_v17  ;;  %5667 = vmatpush3.msra.mxu1 %v6591_v18  ;;  %v2868_v18 = vadd.f32 %v2867_v27, %v6943_v34  ;;  %v2735_v27 = vld [vmem:[#allocation3 + $0x48] sm:$0xff] }
0x24af   :  { %3326 = vmatprep.subr.mxu1 %v6874_v15 }
0x24b1   :  { %3069 = vmatmul.mubr.f32.gmra.mxu1 %v6138_v17 }
0x2565   :  { %v5665_v2 = vpop.f32.mrf.mxu1 }
0x2566   :  { %2594 = vrot.lane.b32.xlu0 %v5665_v2, %s6139_s8 }
0x2567   :  { %v6945_v6 = vpop.f32.mrf.mxu1 }
0x256d   :  { %v3064_v11 = vpop.f32.mrf.mxu1 }
0x256e   :  { %v6948_v40 = vadd.f32 %v3064_v11, %v2868_v18  ;;  %v2736_v18 = vld [vmem:[#allocation3 + $0x50] sm:$0xff]  ;;  %v2737_v11 = vld [vmem:[#allocation3 + $0x58] sm:$0xff] }
0x256f   :  { %v3066_v22 = vpop.f32.mrf.mxu1 }
0x2570   :  { %v3076_v9 = vadd.f32 %v3066_v22, %v2870_v7 }
0x2572   :  { %v3079_v37 = vsel %vm396_vm1, %v3076_v9, -inf }
0x25d8   :  { %v2595_v29 = vpop.permute.xlu0 %2594 }
0x25d9   :  { %5885 = vrcp.f32 %v2595_v29  ;;  %v2738_v29 = vld [vmem:[#allocation3 + $0x60] sm:$0xff] }
0x25da   :  { %5887 = vtanh.f32 %v6867_v38 }
0x25db   :  { %5889 = vpow2.f32 %v5498_v58 }
0x25e6   :  { %v5886_v28 = vpop.eup %5885 }
0x25e7   :  { %v2601_v8 = vmul.f32 %v5886_v28, %v5665_v2  ;;  %v5888_v46 = vpop.eup %5887  ;;  %v2734_v2 = vld [vmem:[#allocation3 + $0x40] sm:$0xff]  ;;  %v2739_v28 = vld [vmem:[#allocation3 + $0x68] sm:$0xff] }
0x25e8   :  { %v5890_v41 = vpop.eup %5889 }
0x25e9   :  { %v2603_v1 = vsub.f32 1.0, %v2601_v8  ;;  %v2611_v57 = vadd.f32 1.0, %v5890_v41 }
0x25eb   :  { %2622 = vrot.lane.b32.xlu1 %v2603_v1, %s6140_s9  ;;  %5891 = vrcp.f32 %v2611_v57 }
0x25f8   :  { %v5892_v32 = vpop.eup %5891 }
0x265d   :  { %v2623_v30 = vpop.permute.xlu1 %2622 }
0x265e   :  { %v2627_v21 = vmul.f32 %v2623_v30, %v2601_v8 }
0x2660   :  { %2654 = vrot.lane.b32.xlu1 %v2627_v21, %s6141_s10  ;;  %v2639_v54 = vsub.f32 %v2601_v8, %v2627_v21  ;;  %v2651_v59 = vmul.f32 %v5892_v32, %v2627_v21 }
0x2664   :  { %2676 = vrot.lane.b32.xlu1 %v5888_v46, %s6139_s8 }
0x2668   :  { %2644 = vrot.lane.b32.xlu1 %v2639_v54, %s6140_s9 }
0x26d2   :  { %v2655_v60 = vpop.permute.xlu1 %2654 }
0x26d3   :  { %v2659_v56 = vsub.f32 %v2603_v1, %v2655_v60  ;;  %v3070_v1 = vpop.f32.mrf.mxu1 }
0x26d5   :  { %2664 = vrot.lane.b32.xlu0 %v2659_v56, %s6140_s9  ;;  %v3072_v46 = vpop.f32.mrf.mxu1 }
0x26d6   :  { %v2677_v10 = vpop.permute.xlu1 %2676 }
0x26d9   :  { %2632 = vrot.lane.b32.xlu0 %v2627_v21, %s6140_s9 }
0x26da   :  { %v2645_v31 = vpop.permute.xlu1 %2644 }
0x2747   :  { %v2665_v61 = vpop.permute.xlu0 %2664 }
0x2748   :  { %v2669_v62 = vadd.f32 %v2665_v61, %v2651_v59 }
0x274a   :  { %v2681_v12 = vmul.f32 %v2677_v10, %v2669_v62 }
0x274b   :  { %v2633_v13 = vpop.permute.xlu0 %2632 }
0x274c   :  { %2686 = vrot.lane.b32.xlu0 %v2681_v12, %s6140_s9  ;;  %v2637_v39 = vmul.f32 %v5892_v32, %v2633_v13 }
0x274e   :  { %v2649_v0 = vadd.f32 %v2645_v31, %v2637_v39 }
0x2750   :  { %v2671_v38 = vmul.f32 %v2649_v0, %v6820_v53  ;;  %v2728_v53 = vld [vmem:[#allocation3 + $0x10] sm:$0xff] }
0x276b   :  { %3080 = vmax.xlane.f32.xlu0 %v3079_v37 }
0x27be   :  { %v2687_v19 = vpop.permute.xlu0 %2686 }
0x27bf   :  { %v2691_v3 = vadd.f32 %v2687_v19, %v2671_v38 }
0x27c1   :  { %5893 = vtanh.f32 %v2691_v3 }
0x27ce   :  { %v5894_v20 = vpop.eup %5893 }
0x27cf   :  { %2698 = vrot.lane.b32.xlu1 %v5894_v20, %s6139_s8 }
0x27f4   :  { %v3081_v23 = vpop.xlane.xlu0 %3080 }
0x27f5   :  { %v3085_v44 = vsub.f32 %v3076_v9, %v3081_v23 }
0x27f7   :  { %v3087_v50 = vmul.f32 1.442695, %v3085_v44 }
0x27f9   :  { %5895 = vpow2.f32 %v3087_v50 }
0x2806   :  { %v5896_v49 = vpop.eup %5895 }
0x2807   :  { %5668 = vmatprep.mubr.msk.f32.mxu1 %vm396_vm1, %v5896_v49 }
0x2841   :  { %v2699_v51 = vpop.permute.xlu1 %2698 }
0x2842   :  { %v2703_v55 = vmul.f32 %v5892_v32, %v2699_v51  ;;  %v7009_v32 = vld [vmem:[%s7561_s4] sm:$0xff] }
0x2844   :  { %2705 = vst.msk [vmem:[#allocation3 + $0x8] sm:$0xff] %vm66_vm0, %v2703_v55 }
0x284b   :  { %v2727_v52 = vld [vmem:[#allocation3 + $0x8] sm:$0xff] }
0x284c   :  { %5517 = vmatmul.mubr.msk.f32.gmra.mxu0 %vm66_vm0, %v2727_v52  ;;  %v5534_v52 = vmul.f32 -1.442695, %v6948_v40 }
0x284d   :  { %2877 = vmatprep.mubr.f32.mxu0 %v6138_v17 }
0x2850   :  { %5518 = vmatmul.mubr.msk.f32.gmra.mxu0 %vm66_vm0, %v2728_v53 }
0x2851   :  { %2883 = vmatprep.mubr.f32.mxu0 %v6138_v17 }
0x2854   :  { %5519 = vmatmul.mubr.msk.f32.gmra.mxu0 %vm66_vm0, %v2729_v63 }
0x2855   :  { %2889 = vmatprep.mubr.f32.mxu0 %v6138_v17 }
0x2858   :  { %5520 = vmatmul.mubr.msk.f32.gmra.mxu0 %vm66_vm0, %v2730_v48 }
0x2859   :  { %2895 = vmatprep.mubr.f32.mxu0 %v6138_v17 }
0x285c   :  { %5521 = vmatmul.mubr.msk.f32.gmra.mxu0 %vm66_vm0, %v2731_v26 }
0x285d   :  { %2901 = vmatprep.mubr.f32.mxu0 %v6138_v17 }
0x2860   :  { %5522 = vmatmul.mubr.msk.f32.gmra.mxu0 %vm66_vm0, %v2732_v4 }
0x2861   :  { %2907 = vmatprep.mubr.f32.mxu0 %v6138_v17 }
0x2864   :  { %5523 = vmatmul.mubr.msk.f32.gmra.mxu0 %vm66_vm0, %v2733_v33 }
0x2865   :  { %2913 = vmatprep.mubr.f32.mxu0 %v6138_v17 }
0x2868   :  { %5524 = vmatmul.mubr.msk.f32.gmra.mxu0 %vm66_vm0, %v2734_v2 }
0x2869   :  { %2919 = vmatprep.mubr.f32.mxu0 %v6138_v17 }
0x286c   :  { %5525 = vmatmul.mubr.msk.f32.gmra.mxu0 %vm66_vm0, %v2735_v27 }
0x286d   :  { %2925 = vmatprep.mubr.f32.mxu0 %v6138_v17 }
0x2870   :  { %5526 = vmatmul.mubr.msk.f32.gmra.mxu0 %vm66_vm0, %v2736_v18 }
0x2871   :  { %2931 = vmatprep.mubr.f32.mxu0 %v6138_v17 }
0x2874   :  { %5527 = vmatmul.mubr.msk.f32.gmra.mxu0 %vm66_vm0, %v2737_v11 }
0x2875   :  { %2937 = vmatprep.mubr.f32.mxu0 %v6138_v17 }
0x2878   :  { %5528 = vmatmul.mubr.msk.f32.gmra.mxu0 %vm66_vm0, %v2738_v29 }
0x2879   :  { %2943 = vmatprep.mubr.f32.mxu0 %v6138_v17 }
0x287c   :  { %5529 = vmatmul.mubr.msk.f32.gmra.mxu0 %vm66_vm0, %v2739_v28 }
0x287d   :  { %2949 = vmatprep.mubr.f32.mxu0 %v6138_v17 }
0x290c   :  { %v2873_v8 = vpop.f32.mrf.mxu0 }
0x290d   :  { %v2874_v13 = vadd.f32 %v2873_v8, %v6943_v34 }
0x290e   :  { %v2875_v30 = vpop.f32.mrf.mxu0 }
0x290f   :  { %v2876_v21 = vadd.f32 %v2875_v30, %v6961_v14  ;;  %v3077_v39 = vadd.f32 %v3070_v1, %v2874_v13 }
0x2911   :  { %v3078_v54 = vadd.f32 %v3072_v46, %v2876_v21  ;;  %v5535_v53 = vmul.f32 -1.442695, %v3077_v39 }
0x2913   :  { %v3082_v60 = vsel %vm396_vm1, %v3078_v54, -inf }
0x2914   :  { %3083 = vmax.xlane.f32.xlu1 %v3082_v60 }
0x299d   :  { %v3084_v56 = vpop.xlane.xlu1 %3083 }
0x299e   :  { %v3086_v58 = vsub.f32 %v3078_v54, %v3084_v56 }
0x29a0   :  { %v3089_v41 = vmul.f32 1.442695, %v3086_v58 }
0x29a2   :  { %5897 = vpow2.f32 %v3089_v41 }
0x29af   :  { %v5898_v57 = vpop.eup %5897 }
0x29b0   :  { %5669 = vmatmul.mubr.msk.f32.vlgmr.msra.gmra.mxu1 %vm396_vm1, %v5898_v57 }
0x29b1   :  { %3327 = vmatpush1.msra.mxu1 %v6881_v24  ;;  %3366 = vmatprep.mubr.f32.mxu1 %v6138_v17 }
0x29b2   :  { %3328 = vmatprep.subr.mxu1 %v6887_v25 }
0x29b3   :  { %3329 = vmatpush1.msra.mxu1 %v6892_v35 }
0x29b4   :  { %3330 = vmatprep.subr.mxu1 %v6898_v5 }
0x29b5   :  { %3331 = vmatpush1.msra.mxu1 %v6904_v42 }
0x29b6   :  { %3332 = vmatprep.subr.mxu1 %v6910_v43 }
0x29b7   :  { %3333 = vmatpush1.msra.mxu1 %v6916_v45 }
0x29b8   :  { %5671 = vmatprep.subr.mxu1 %v7009_v32 }
0x2a70   :  { %v5670_v59 = vpop.f32.mrf.mxu1 }
0x2a71   :  { %3176 = vrot.lane.b32.xlu1 %v5670_v59, %s6139_s8 }
0x2a72   :  { %v3163_v61 = vpop.f32.mrf.mxu1 }
0x2a73   :  { %3174 = vrot.lane.b32.xlu0 %v3163_v61, %s6139_s8 }
0x2ae3   :  { %v3177_v62 = vpop.permute.xlu1 %3176 }
0x2ae4   :  { %5899 = vrcp.f32 %v3177_v62 }
0x2ae5   :  { %v3175_v10 = vpop.permute.xlu0 %3174 }
0x2ae6   :  { %5901 = vrcp.f32 %v3175_v10 }
0x2ae7   :  { %5903 = vtanh.f32 %v6948_v40 }
0x2ae8   :  { %5905 = vtanh.f32 %v3077_v39 }
0x2ae9   :  { %5907 = vpow2.f32 %v5534_v52 }
0x2aea   :  { %5909 = vpow2.f32 %v5535_v53 }
0x2af1   :  { %v5900_v12 = vpop.eup %5899 }
0x2af2   :  { %v3183_v16 = vmul.f32 %v5900_v12, %v5670_v59 }
0x2af3   :  { %v5902_v22 = vpop.eup %5901 }
0x2af4   :  { %v3185_v7 = vsub.f32 1.0, %v3183_v16  ;;  %v3181_v9 = vmul.f32 %v5902_v22, %v3163_v61  ;;  %v5904_v3 = vpop.eup %5903 }
0x2af5   :  { %v5906_v20 = vpop.eup %5905 }
0x2af6   :  { %3204 = vrot.lane.b32.xlu1 %v3185_v7, %s6140_s9  ;;  %v3184_v37 = vsub.f32 1.0, %v3181_v9  ;;  %v5908_v63 = vpop.eup %5907 }
0x2af7   :  { %v3192_v48 = vadd.f32 1.0, %v5908_v63  ;;  %v5910_v26 = vpop.eup %5909 }
0x2af8   :  { %3202 = vrot.lane.b32.xlu0 %v3184_v37, %s6140_s9  ;;  %v3193_v4 = vadd.f32 1.0, %v5910_v26 }
0x2af9   :  { %5911 = vrcp.f32 %v3192_v48 }
0x2afa   :  { %5913 = vrcp.f32 %v3193_v4 }
0x2b06   :  { %v5912_v33 = vpop.eup %5911 }
0x2b07   :  { %v5914_v29 = vpop.eup %5913 }
0x2b68   :  { %v3205_v31 = vpop.permute.xlu1 %3204 }
0x2b69   :  { %v3209_v0 = vmul.f32 %v3205_v31, %v3183_v16 }
0x2b6a   :  { %v3203_v38 = vpop.permute.xlu0 %3202 }
0x2b6b   :  { %v3208_v19 = vmul.f32 %v3203_v38, %v3181_v9  ;;  %3236 = vrot.lane.b32.xlu1 %v3209_v0, %s6141_s10  ;;  %v3221_v44 = vsub.f32 %v3183_v16, %v3209_v0  ;;  %v3233_v8 = vmul.f32 %v5914_v29, %v3209_v0 }
0x2b6d   :  { %3234 = vrot.lane.b32.xlu0 %v3208_v19, %s6141_s10  ;;  %v3220_v23 = vsub.f32 %v3181_v9, %v3208_v19  ;;  %v3232_v2 = vmul.f32 %v5912_v33, %v3208_v19 }
0x2b6f   :  { %3256 = vrot.lane.b32.xlu1 %v5904_v3, %s6139_s8 }
0x2b73   :  { %3258 = vrot.lane.b32.xlu1 %v5906_v20, %s6139_s8 }
0x2b77   :  { %3224 = vrot.lane.b32.xlu1 %v3220_v23, %s6140_s9 }
0x2b7b   :  { %3226 = vrot.lane.b32.xlu1 %v3221_v44, %s6140_s9 }
0x2bdd   :  { %v3237_v51 = vpop.permute.xlu1 %3236 }
0x2bde   :  { %v3241_v55 = vsub.f32 %v3185_v7, %v3237_v51 }
0x2bdf   :  { %v3235_v50 = vpop.permute.xlu0 %3234 }
0x2be0   :  { %v3240_v49 = vsub.f32 %v3184_v37, %v3235_v50 }
0x2be1   :  { %v3257_v27 = vpop.permute.xlu1 %3256 }
0x2be2   :  { %3244 = vrot.lane.b32.xlu0 %v3240_v49, %s6140_s9 }
0x2be5   :  { %v3259_v40 = vpop.permute.xlu1 %3258 }
0x2be6   :  { %3246 = vrot.lane.b32.xlu0 %v3241_v55, %s6140_s9 }
0x2be9   :  { %v3225_v60 = vpop.permute.xlu1 %3224 }
0x2bea   :  { %3212 = vrot.lane.b32.xlu0 %v3208_v19, %s6140_s9 }
0x2bed   :  { %v3227_v57 = vpop.permute.xlu1 %3226 }
0x2bee   :  { %3214 = vrot.lane.b32.xlu0 %v3209_v0, %s6140_s9  ;;  %v2879_v0 = vpop.f32.mrf.mxu0 }
0x2bef   :  { %v2880_v3 = vadd.f32 %v2879_v0, %v6943_v34 }
0x2bf0   :  { %v2881_v38 = vpop.f32.mrf.mxu0 }
0x2bf1   :  { %v2882_v23 = vadd.f32 %v2881_v38, %v6961_v14 }
0x2bf2   :  { %v2885_v19 = vpop.f32.mrf.mxu0 }
0x2bf3   :  { %v2886_v51 = vadd.f32 %v2885_v19, %v6943_v34 }
0x2bf4   :  { %v2887_v50 = vpop.f32.mrf.mxu0 }
0x2bf5   :  { %v2888_v53 = vadd.f32 %v2887_v50, %v6961_v14 }
0x2c54   :  { %v3245_v18 = vpop.permute.xlu0 %3244 }
0x2c55   :  { %v3250_v11 = vadd.f32 %v3245_v18, %v3232_v2 }
0x2c57   :  { %v3262_v28 = vmul.f32 %v3257_v27, %v3250_v11 }
0x2c58   :  { %v3247_v1 = vpop.permute.xlu0 %3246 }
0x2c59   :  { %v3251_v30 = vadd.f32 %v3247_v1, %v3233_v8  ;;  %3266 = vrot.lane.b32.xlu0 %v3262_v28, %s6140_s9 }
0x2c5b   :  { %v3263_v21 = vmul.f32 %v3259_v40, %v3251_v30 }
0x2c5c   :  { %v3213_v46 = vpop.permute.xlu0 %3212 }
0x2c5d   :  { %3268 = vrot.lane.b32.xlu1 %v3263_v21, %s6140_s9  ;;  %v3218_v54 = vmul.f32 %v5912_v33, %v3213_v46 }
0x2c5f   :  { %v3230_v58 = vadd.f32 %v3225_v60, %v3218_v54 }
0x2c60   :  { %v3215_v56 = vpop.permute.xlu0 %3214 }
0x2c61   :  { %v3219_v41 = vmul.f32 %v5914_v29, %v3215_v56  ;;  %v3252_v61 = vmul.f32 0.0, %v3230_v58 }
0x2c63   :  { %v3231_v59 = vadd.f32 %v3227_v57, %v3219_v41 }
0x2c65   :  { %v3253_v12 = vmul.f32 0.0, %v3231_v59 }
0x2ccb   :  { %v3267_v62 = vpop.permute.xlu0 %3266 }
0x2ccc   :  { %v7031_v10 = vadd.f32 %v3267_v62, %v3252_v61 }
0x2cce   :  { %5915 = vtanh.f32 %v7031_v10 }
0x2ccf   :  { %v3269_v16 = vpop.permute.xlu1 %3268 }
0x2cd0   :  { %v7034_v22 = vadd.f32 %v3269_v16, %v3253_v12 }
0x2cd2   :  { %5917 = vtanh.f32 %v7034_v22 }
0x2cdb   :  { %v5916_v7 = vpop.eup %5915 }
0x2cdc   :  { %3278 = vrot.lane.b32.xlu0 %v5916_v7, %s6139_s8 }
0x2cdf   :  { %v5918_v9 = vpop.eup %5917 }
0x2ce0   :  { %3280 = vrot.lane.b32.xlu1 %v5918_v9, %s6139_s8 }
0x2d4e   :  { %v3279_v37 = vpop.permute.xlu0 %3278 }
0x2d4f   :  { %v3284_v13 = vmul.f32 %v5912_v33, %v3279_v37 }
0x2d51   :  { %3286 = vst.msk [vmem:[#allocation4] sm:$0xff] %vm66_vm0, %v3284_v13  ;;  %5536 = vmatmul.mubr.msk.f32.vlgmr.msra.gmra.mxu1 %vm66_vm0, %v3284_v13 }
0x2d52   :  { %v3281_v39 = vpop.permute.xlu1 %3280  ;;  %3372 = vmatprep.mubr.f32.mxu1 %v6138_v17  ;;  %5672 = vmatpush3.msra.mxu1 %v7009_v32 }
0x2d53   :  { %v7043_v31 = vmul.f32 %v5914_v29, %v3281_v39  ;;  %3630 = vmatprep.subr.mxu1 %v6874_v15 }
0x2d55   :  { %5537 = vmatmul.mubr.msk.f32.gmra.mxu1 %vm66_vm0, %v7043_v31 }
0x2e11   :  { %v3368_v20 = vpop.f32.mrf.mxu1 }
0x2e12   :  { %v7050_v44 = vadd.f32 %v3368_v20, %v2880_v3 }
0x2e13   :  { %v3370_v49 = vpop.f32.mrf.mxu1 }
0x2e14   :  { %v3380_v55 = vadd.f32 %v3370_v49, %v2882_v23  ;;  %v5540_v19 = vmul.f32 -1.442695, %v7050_v44 }
0x2e15   :  { %v3374_v52 = vpop.f32.mrf.mxu1 }
0x2e16   :  { %v7054_v63 = vadd.f32 %v3374_v52, %v2886_v51  ;;  %v3383_v48 = vsel %vm396_vm1, %v3380_v55, -inf }
0x2e17   :  { %3384 = vmax.xlane.f32.xlu0 %v3383_v48  ;;  %v3376_v26 = vpop.f32.mrf.mxu1 }
0x2e18   :  { %v3382_v4 = vadd.f32 %v3376_v26, %v2888_v53  ;;  %v5541_v3 = vmul.f32 -1.442695, %v7054_v63 }
0x2e1a   :  { %v3386_v33 = vsel %vm396_vm1, %v3382_v4, -inf }
0x2e1b   :  { %3387 = vmax.xlane.f32.xlu1 %v3386_v33 }
0x2ea0   :  { %v3385_v2 = vpop.xlane.xlu0 %3384 }
0x2ea1   :  { %v3389_v27 = vsub.f32 %v3380_v55, %v3385_v2 }
0x2ea3   :  { %v3391_v18 = vmul.f32 1.442695, %v3389_v27 }
0x2ea4   :  { %v3388_v11 = vpop.xlane.xlu1 %3387 }
0x2ea5   :  { %5919 = vpow2.f32 %v3391_v18  ;;  %v3390_v29 = vsub.f32 %v3382_v4, %v3388_v11 }
0x2ea7   :  { %v3393_v28 = vmul.f32 1.442695, %v3390_v29 }
0x2ea9   :  { %5921 = vpow2.f32 %v3393_v28 }
0x2eb2   :  { %v5920_v8 = vpop.eup %5919 }
0x2eb3   :  { %5673 = vmatprep.mubr.msk.f32.mxu1 %vm396_vm1, %v5920_v8 }
0x2eb6   :  { %v5922_v1 = vpop.eup %5921 }
0x2eb7   :  { %5674 = vmatmul.mubr.msk.f32.vlgmr.msra.gmra.mxu1 %vm396_vm1, %v5922_v1 }
0x2eb8   :  { %3631 = vmatpush1.msra.mxu1 %v6881_v24  ;;  %3670 = vmatprep.mubr.f32.mxu1 %v6138_v17 }
0x2eb9   :  { %3632 = vmatprep.subr.mxu1 %v6887_v25 }
0x2eba   :  { %3633 = vmatpush1.msra.mxu1 %v6892_v35 }
0x2ebb   :  { %3634 = vmatprep.subr.mxu1 %v6898_v5 }
0x2ebc   :  { %3635 = vmatpush1.msra.mxu1 %v6904_v42 }
0x2ebd   :  { %3636 = vmatprep.subr.mxu1 %v6910_v43 }
0x2ebe   :  { %3637 = vmatpush1.msra.mxu1 %v6916_v45 }
0x2ebf   :  { %5676 = vmatprep.subr.mxu1 %v7009_v32 }
0x2f77   :  { %v5675_v30 = vpop.f32.mrf.mxu1 }
0x2f78   :  { %3480 = vrot.lane.b32.xlu1 %v5675_v30, %s6139_s8 }
0x2f79   :  { %v3467_v40 = vpop.f32.mrf.mxu1 }
0x2f7a   :  { %3478 = vrot.lane.b32.xlu0 %v3467_v40, %s6139_s8 }
0x2fea   :  { %v3481_v21 = vpop.permute.xlu1 %3480 }
0x2feb   :  { %5923 = vrcp.f32 %v3481_v21 }
0x2fec   :  { %v3479_v46 = vpop.permute.xlu0 %3478 }
0x2fed   :  { %5925 = vrcp.f32 %v3479_v46 }
0x2fee   :  { %5927 = vtanh.f32 %v7050_v44 }
0x2fef   :  { %5929 = vtanh.f32 %v7054_v63 }
0x2ff0   :  { %5931 = vpow2.f32 %v5540_v19 }
0x2ff1   :  { %5933 = vpow2.f32 %v5541_v3 }
0x2ff8   :  { %v5924_v54 = vpop.eup %5923 }
0x2ff9   :  { %v3487_v60 = vmul.f32 %v5924_v54, %v5675_v30 }
0x2ffa   :  { %v5926_v56 = vpop.eup %5925 }
0x2ffb   :  { %v3489_v58 = vsub.f32 1.0, %v3487_v60  ;;  %v3485_v41 = vmul.f32 %v5926_v56, %v3467_v40  ;;  %v5928_v16 = vpop.eup %5927 }
0x2ffc   :  { %v5930_v7 = vpop.eup %5929 }
0x2ffd   :  { %3508 = vrot.lane.b32.xlu1 %v3489_v58, %s6140_s9  ;;  %v3488_v57 = vsub.f32 1.0, %v3485_v41  ;;  %v5932_v20 = vpop.eup %5931 }
0x2ffe   :  { %v3496_v23 = vadd.f32 1.0, %v5932_v20  ;;  %v5934_v50 = vpop.eup %5933 }
0x2fff   :  { %3506 = vrot.lane.b32.xlu0 %v3488_v57, %s6140_s9  ;;  %v3497_v49 = vadd.f32 1.0, %v5934_v50 }
0x3000   :  { %5935 = vrcp.f32 %v3496_v23 }
0x3001   :  { %5937 = vrcp.f32 %v3497_v49 }
0x300d   :  { %v5936_v51 = vpop.eup %5935 }
0x300e   :  { %v5938_v26 = vpop.eup %5937 }
0x306f   :  { %v3509_v59 = vpop.permute.xlu1 %3508 }
0x3070   :  { %v3513_v61 = vmul.f32 %v3509_v59, %v3487_v60 }
0x3071   :  { %v3507_v62 = vpop.permute.xlu0 %3506 }
0x3072   :  { %v3512_v12 = vmul.f32 %v3507_v62, %v3485_v41  ;;  %3540 = vrot.lane.b32.xlu1 %v3513_v61, %s6141_s10  ;;  %v3525_v37 = vsub.f32 %v3487_v60, %v3513_v61  ;;  %v3537_v33 = vmul.f32 %v5938_v26, %v3513_v61  ;;  %v2891_v62 = vpop.f32.mrf.mxu0 }
0x3074   :  { %3538 = vrot.lane.b32.xlu0 %v3512_v12, %s6141_s10  ;;  %v3524_v9 = vsub.f32 %v3485_v41, %v3512_v12  ;;  %v3536_v55 = vmul.f32 %v5936_v51, %v3512_v12 }
0x3076   :  { %3560 = vrot.lane.b32.xlu1 %v5928_v16, %s6139_s8 }
0x307a   :  { %3562 = vrot.lane.b32.xlu1 %v5930_v7, %s6139_s8  ;;  %v2892_v7 = vadd.f32 %v2891_v62, %v6943_v34 }
0x307e   :  { %3528 = vrot.lane.b32.xlu1 %v3524_v9, %s6140_s9 }
0x3082   :  { %3530 = vrot.lane.b32.xlu1 %v3525_v37, %s6140_s9 }
0x30e4   :  { %v3541_v0 = vpop.permute.xlu1 %3540 }
0x30e5   :  { %v3545_v38 = vsub.f32 %v3489_v58, %v3541_v0 }
0x30e6   :  { %v3539_v13 = vpop.permute.xlu0 %3538 }
0x30e7   :  { %v3544_v39 = vsub.f32 %v3488_v57, %v3539_v13 }
0x30e8   :  { %v3561_v52 = vpop.permute.xlu1 %3560 }
0x30e9   :  { %3548 = vrot.lane.b32.xlu0 %v3544_v39, %s6140_s9 }
0x30ec   :  { %v3563_v63 = vpop.permute.xlu1 %3562 }
0x30ed   :  { %3550 = vrot.lane.b32.xlu0 %v3545_v38, %s6140_s9 }
0x30f0   :  { %v3529_v29 = vpop.permute.xlu1 %3528 }
0x30f1   :  { %3516 = vrot.lane.b32.xlu0 %v3512_v12, %s6140_s9  ;;  %v2893_v12 = vpop.f32.mrf.mxu0 }
0x30f2   :  { %v2894_v37 = vadd.f32 %v2893_v12, %v6961_v14 }
0x30f3   :  { %v2897_v16 = vpop.f32.mrf.mxu0 }
0x30f4   :  { %v3531_v30 = vpop.permute.xlu1 %3530  ;;  %v2898_v38 = vadd.f32 %v2897_v16, %v6943_v34 }
0x30f5   :  { %3518 = vrot.lane.b32.xlu0 %v3513_v61, %s6140_s9  ;;  %v2899_v39 = vpop.f32.mrf.mxu0 }
0x315b   :  { %v3549_v53 = vpop.permute.xlu0 %3548 }
0x315c   :  { %v3554_v48 = vadd.f32 %v3549_v53, %v3536_v55 }
0x315e   :  { %v3566_v4 = vmul.f32 %v3561_v52, %v3554_v48 }
0x315f   :  { %v3551_v2 = vpop.permute.xlu0 %3550 }
0x3160   :  { %v3555_v44 = vadd.f32 %v3551_v2, %v3537_v33  ;;  %3570 = vrot.lane.b32.xlu0 %v3566_v4, %s6140_s9 }
0x3162   :  { %v3567_v27 = vmul.f32 %v3563_v63, %v3555_v44 }
0x3163   :  { %v3517_v18 = vpop.permute.xlu0 %3516 }
0x3164   :  { %3572 = vrot.lane.b32.xlu1 %v3567_v27, %s6140_s9  ;;  %v3522_v11 = vmul.f32 %v5936_v51, %v3517_v18 }
0x3166   :  { %v3534_v8 = vadd.f32 %v3529_v29, %v3522_v11 }
0x3167   :  { %v3519_v28 = vpop.permute.xlu0 %3518 }
0x3168   :  { %v3523_v1 = vmul.f32 %v5938_v26, %v3519_v28  ;;  %v3556_v21 = vmul.f32 %v3534_v8, %v7031_v10 }
0x316a   :  { %v3535_v40 = vadd.f32 %v3531_v30, %v3523_v1 }
0x316c   :  { %v3557_v60 = vmul.f32 %v3535_v40, %v7034_v22 }
0x31d2   :  { %v3571_v46 = vpop.permute.xlu0 %3570 }
0x31d3   :  { %v7090_v54 = vadd.f32 %v3571_v46, %v3556_v21 }
0x31d5   :  { %5939 = vtanh.f32 %v7090_v54 }
0x31d6   :  { %v3573_v56 = vpop.permute.xlu1 %3572 }
0x31d7   :  { %v7094_v58 = vadd.f32 %v3573_v56, %v3557_v60 }
0x31d9   :  { %5941 = vtanh.f32 %v7094_v58 }
0x31e2   :  { %v5940_v41 = vpop.eup %5939 }
0x31e3   :  { %3582 = vrot.lane.b32.xlu0 %v5940_v41, %s6139_s8 }
0x31e6   :  { %v5942_v57 = vpop.eup %5941 }
0x31e7   :  { %3584 = vrot.lane.b32.xlu1 %v5942_v57, %s6139_s8 }
0x3255   :  { %v3583_v59 = vpop.permute.xlu0 %3582 }
0x3256   :  { %v3588_v10 = vmul.f32 %v5936_v51, %v3583_v59 }
0x3258   :  { %3591 = vst.msk [vmem:[#allocation4 + $0x8] sm:$0xff] %vm66_vm0, %v3588_v10  ;;  %5542 = vmatmul.mubr.msk.f32.vlgmr.msra.gmra.mxu1 %vm66_vm0, %v3588_v10 }
0x3259   :  { %v3585_v61 = vpop.permute.xlu1 %3584  ;;  %3676 = vmatprep.mubr.f32.mxu1 %v6138_v17  ;;  %5677 = vmatpush3.msra.mxu1 %v7009_v32 }
0x325a   :  { %v7103_v22 = vmul.f32 %v5938_v26, %v3585_v61  ;;  %3934 = vmatprep.subr.mxu1 %v6874_v15  ;;  %v2900_v15 = vadd.f32 %v2899_v39, %v6961_v14 }
0x325c   :  { %5543 = vmatmul.mubr.msk.f32.gmra.mxu1 %vm66_vm0, %v7103_v22 }
0x3318   :  { %v3672_v9 = vpop.f32.mrf.mxu1 }
0x3319   :  { %v7110_v13 = vadd.f32 %v3672_v9, %v2892_v7 }
0x331a   :  { %v3674_v0 = vpop.f32.mrf.mxu1 }
0x331b   :  { %v3684_v19 = vadd.f32 %v3674_v0, %v2894_v37  ;;  %v5546_v41 = vmul.f32 -1.442695, %v7110_v13 }
0x331c   :  { %v3678_v3 = vpop.f32.mrf.mxu1 }
0x331d   :  { %v7114_v20 = vadd.f32 %v3678_v3, %v2898_v38  ;;  %v3687_v23 = vsel %vm396_vm1, %v3684_v19, -inf }
0x331e   :  { %3688 = vmax.xlane.f32.xlu0 %v3687_v23  ;;  %v3680_v50 = vpop.f32.mrf.mxu1 }
0x331f   :  { %v3686_v49 = vadd.f32 %v3680_v50, %v2900_v15  ;;  %v5547_v57 = vmul.f32 -1.442695, %v7114_v20 }
0x3321   :  { %v3690_v51 = vsel %vm396_vm1, %v3686_v49, -inf }
0x3322   :  { %3691 = vmax.xlane.f32.xlu1 %v3690_v51 }
0x33a7   :  { %v3689_v55 = vpop.xlane.xlu0 %3688 }
0x33a8   :  { %v3693_v52 = vsub.f32 %v3684_v19, %v3689_v55 }
0x33aa   :  { %v3695_v53 = vmul.f32 1.442695, %v3693_v52 }
0x33ab   :  { %v3692_v48 = vpop.xlane.xlu1 %3691 }
0x33ac   :  { %5943 = vpow2.f32 %v3695_v53  ;;  %v3694_v26 = vsub.f32 %v3686_v49, %v3692_v48 }
0x33ae   :  { %v3697_v4 = vmul.f32 1.442695, %v3694_v26 }
0x33b0   :  { %5945 = vpow2.f32 %v3697_v4 }
0x33b9   :  { %v5944_v33 = vpop.eup %5943 }
0x33ba   :  { %5678 = vmatprep.mubr.msk.f32.mxu1 %vm396_vm1, %v5944_v33 }
0x33bd   :  { %v5946_v2 = vpop.eup %5945 }
0x33be   :  { %5679 = vmatmul.mubr.msk.f32.vlgmr.msra.gmra.mxu1 %vm396_vm1, %v5946_v2 }
0x33bf   :  { %3935 = vmatpush1.msra.mxu1 %v6881_v24  ;;  %3974 = vmatprep.mubr.f32.mxu1 %v6138_v17 }
0x33c0   :  { %3936 = vmatprep.subr.mxu1 %v6887_v25 }
0x33c1   :  { %3937 = vmatpush1.msra.mxu1 %v6892_v35 }
0x33c2   :  { %3938 = vmatprep.subr.mxu1 %v6898_v5 }
0x33c3   :  { %3939 = vmatpush1.msra.mxu1 %v6904_v42 }
0x33c4   :  { %3940 = vmatprep.subr.mxu1 %v6910_v43 }
0x33c5   :  { %3941 = vmatpush1.msra.mxu1 %v6916_v45 }
0x33c6   :  { %5681 = vmatprep.subr.mxu1 %v7009_v32 }
0x347e   :  { %v5680_v44 = vpop.f32.mrf.mxu1 }
0x347f   :  { %3784 = vrot.lane.b32.xlu1 %v5680_v44, %s6139_s8 }
0x3480   :  { %v3771_v24 = vpop.f32.mrf.mxu1 }
0x3481   :  { %3782 = vrot.lane.b32.xlu0 %v3771_v24, %s6139_s8 }
0x34f1   :  { %v3785_v63 = vpop.permute.xlu1 %3784 }
0x34f2   :  { %5947 = vrcp.f32 %v3785_v63 }
0x34f3   :  { %v3783_v25 = vpop.permute.xlu0 %3782 }
0x34f4   :  { %5949 = vrcp.f32 %v3783_v25 }
0x34f5   :  { %5951 = vtanh.f32 %v7110_v13 }
0x34f6   :  { %5953 = vtanh.f32 %v7114_v20 }
0x34f7   :  { %5955 = vpow2.f32 %v5546_v41 }
0x34f8   :  { %5957 = vpow2.f32 %v5547_v57 }
0x34ff   :  { %v5948_v35 = vpop.eup %5947 }
0x3500   :  { %v3791_v5 = vmul.f32 %v5948_v35, %v5680_v44 }
0x3501   :  { %v5950_v27 = vpop.eup %5949 }
0x3502   :  { %v3793_v42 = vsub.f32 1.0, %v3791_v5  ;;  %v3789_v18 = vmul.f32 %v5950_v27, %v3771_v24  ;;  %v5952_v8 = vpop.eup %5951 }
0x3503   :  { %v5954_v1 = vpop.eup %5953 }
0x3504   :  { %3812 = vrot.lane.b32.xlu1 %v3793_v42, %s6140_s9  ;;  %v3792_v43 = vsub.f32 1.0, %v3789_v18  ;;  %v5956_v59 = vpop.eup %5955 }
0x3505   :  { %v3800_v10 = vadd.f32 1.0, %v5956_v59  ;;  %v5958_v61 = vpop.eup %5957 }
0x3506   :  { %3810 = vrot.lane.b32.xlu0 %v3792_v43, %s6140_s9  ;;  %v3801_v62 = vadd.f32 1.0, %v5958_v61 }
0x3507   :  { %5959 = vrcp.f32 %v3800_v10 }
0x3508   :  { %5961 = vrcp.f32 %v3801_v62 }
0x3514   :  { %v5960_v12 = vpop.eup %5959 }
0x3515   :  { %v5962_v39 = vpop.eup %5961 }
0x3576   :  { %v3813_v45 = vpop.permute.xlu1 %3812 }
0x3577   :  { %v3817_v11 = vmul.f32 %v3813_v45, %v3791_v5 }
0x3578   :  { %v3811_v29 = vpop.permute.xlu0 %3810 }
0x3579   :  { %v3816_v28 = vmul.f32 %v3811_v29, %v3789_v18  ;;  %3844 = vrot.lane.b32.xlu1 %v3817_v11, %s6141_s10  ;;  %v3829_v40 = vsub.f32 %v3791_v5, %v3817_v11  ;;  %v3841_v38 = vmul.f32 %v5962_v39, %v3817_v11  ;;  %v2903_v5 = vpop.f32.mrf.mxu0 }
0x357b   :  { %3842 = vrot.lane.b32.xlu0 %v3816_v28, %s6141_s10  ;;  %v3828_v30 = vsub.f32 %v3789_v18, %v3816_v28  ;;  %v3840_v16 = vmul.f32 %v5960_v12, %v3816_v28  ;;  %v2905_v27 = vpop.f32.mrf.mxu0  ;;  %v2904_v18 = vadd.f32 %v2903_v5, %v6943_v34 }
0x357c   :  { %v2906_v45 = vadd.f32 %v2905_v27, %v6961_v14 }
0x357d   :  { %3864 = vrot.lane.b32.xlu1 %v5952_v8, %s6139_s8 }
0x3581   :  { %3866 = vrot.lane.b32.xlu1 %v5954_v1, %s6139_s8 }
0x3585   :  { %3832 = vrot.lane.b32.xlu1 %v3828_v30, %s6140_s9 }
0x3589   :  { %3834 = vrot.lane.b32.xlu1 %v3829_v40, %s6140_s9 }
0x35eb   :  { %v3845_v60 = vpop.permute.xlu1 %3844 }
0x35ec   :  { %v3849_v56 = vsub.f32 %v3793_v42, %v3845_v60  ;;  %v2909_v42 = vpop.f32.mrf.mxu0 }
0x35ed   :  { %v3843_v21 = vpop.permute.xlu0 %3842  ;;  %v2910_v8 = vadd.f32 %v2909_v42, %v6943_v34 }
0x35ee   :  { %v3848_v46 = vsub.f32 %v3792_v43, %v3843_v21  ;;  %v2911_v29 = vpop.f32.mrf.mxu0 }
0x35ef   :  { %v3865_v7 = vpop.permute.xlu1 %3864  ;;  %v2912_v40 = vadd.f32 %v2911_v29, %v6961_v14 }
0x35f0   :  { %3852 = vrot.lane.b32.xlu0 %v3848_v46, %s6140_s9 }
0x35f3   :  { %v3867_v3 = vpop.permute.xlu1 %3866 }
0x35f4   :  { %3854 = vrot.lane.b32.xlu0 %v3849_v56, %s6140_s9 }
0x35f7   :  { %v3833_v50 = vpop.permute.xlu1 %3832 }
0x35f8   :  { %3820 = vrot.lane.b32.xlu0 %v3816_v28, %s6140_s9 }
0x35fb   :  { %v3835_v52 = vpop.permute.xlu1 %3834 }
0x35fc   :  { %3822 = vrot.lane.b32.xlu0 %v3817_v11, %s6140_s9 }
0x3662   :  { %v3853_v9 = vpop.permute.xlu0 %3852 }
0x3663   :  { %v3858_v37 = vadd.f32 %v3853_v9, %v3840_v16  ;;  %v7186_v9 = vld [vmem:[%s7559_s2 + $0x78] sm:$0xff] }
0x3665   :  { %v3870_v0 = vmul.f32 %v3865_v7, %v3858_v37 }
0x3666   :  { %v3855_v19 = vpop.permute.xlu0 %3854 }
0x3667   :  { %v3859_v13 = vadd.f32 %v3855_v19, %v3841_v38  ;;  %3874 = vrot.lane.b32.xlu0 %v3870_v0, %s6140_s9 }
0x3669   :  { %v3871_v15 = vmul.f32 %v3867_v3, %v3859_v13 }
0x366a   :  { %v3821_v20 = vpop.permute.xlu0 %3820 }
0x366b   :  { %3876 = vrot.lane.b32.xlu1 %v3871_v15, %s6140_s9  ;;  %v3826_v23 = vmul.f32 %v5960_v12, %v3821_v20 }
0x366d   :  { %v3838_v51 = vadd.f32 %v3833_v50, %v3826_v23 }
0x366e   :  { %v3823_v49 = vpop.permute.xlu0 %3822 }
0x366f   :  { %v3827_v55 = vmul.f32 %v5962_v39, %v3823_v49  ;;  %v3860_v48 = vmul.f32 %v3838_v51, %v7090_v54 }
0x3671   :  { %v3839_v53 = vadd.f32 %v3835_v52, %v3827_v55 }
0x3673   :  { %v3861_v33 = vmul.f32 %v3839_v53, %v7094_v58 }
0x36d9   :  { %v3875_v26 = vpop.permute.xlu0 %3874 }
0x36da   :  { %v7150_v4 = vadd.f32 %v3875_v26, %v3860_v48 }
0x36dc   :  { %5963 = vtanh.f32 %v7150_v4 }
0x36dd   :  { %v3877_v2 = vpop.permute.xlu1 %3876 }
0x36de   :  { %v7154_v44 = vadd.f32 %v3877_v2, %v3861_v33 }
0x36e0   :  { %5965 = vtanh.f32 %v7154_v44 }
0x36e9   :  { %v5964_v24 = vpop.eup %5963 }
0x36ea   :  { %3886 = vrot.lane.b32.xlu0 %v5964_v24, %s6139_s8 }
0x36ed   :  { %v5966_v63 = vpop.eup %5965 }
0x36ee   :  { %3888 = vrot.lane.b32.xlu1 %v5966_v63, %s6139_s8 }
0x375c   :  { %v3887_v25 = vpop.permute.xlu0 %3886 }
0x375d   :  { %v3892_v54 = vmul.f32 %v5960_v12, %v3887_v25 }
0x375f   :  { %3895 = vst.msk [vmem:[#allocation4 + $0x10] sm:$0xff] %vm66_vm0, %v3892_v54  ;;  %5548 = vmatmul.mubr.msk.f32.vlgmr.msra.gmra.mxu1 %vm66_vm0, %v3892_v54 }
0x3760   :  { %v3889_v35 = vpop.permute.xlu1 %3888  ;;  %3980 = vmatprep.mubr.f32.mxu1 %v6138_v17  ;;  %5682 = vmatpush3.msra.mxu1 %v7009_v32 }
0x3761   :  { %v7163_v58 = vmul.f32 %v5962_v39, %v3889_v35  ;;  %5686 = vmatprep.subr.mxu1 %v7009_v32  ;;  %v5497_v35 = vmul.f32 -1.442695, %v6861_v36 }
0x3763   :  { %5549 = vmatmul.mubr.msk.f32.gmra.mxu1 %vm66_vm0, %v7163_v58 }
0x381f   :  { %v3976_v43 = vpop.f32.mrf.mxu1 }
0x3820   :  { %v7170_v11 = vadd.f32 %v3976_v43, %v2904_v18 }
0x3821   :  { %v3978_v28 = vpop.f32.mrf.mxu1 }
0x3822   :  { %v3988_v1 = vadd.f32 %v3978_v28, %v2906_v45 }
0x3823   :  { %v3982_v30 = vpop.f32.mrf.mxu1 }
0x3824   :  { %v7174_v21 = vadd.f32 %v3982_v30, %v2910_v8  ;;  %v3991_v46 = vsel %vm396_vm1, %v3988_v1, -inf }
0x3825   :  { %3992 = vmax.xlane.f32.xlu0 %v3991_v46  ;;  %v3984_v60 = vpop.f32.mrf.mxu1 }
0x3826   :  { %v3990_v56 = vadd.f32 %v3984_v60, %v2912_v40  ;;  %v5552_v60 = vmul.f32 -1.442695, %v7170_v11 }
0x3828   :  { %v3994_v41 = vsel %vm396_vm1, %v3990_v56, -inf }
0x3829   :  { %3995 = vmax.xlane.f32.xlu1 %v3994_v41 }
0x383b   :  { %2592 = vrot.lane.b32.xlu0 %v6945_v6, %s6139_s8 }
0x38ae   :  { %v3993_v57 = vpop.xlane.xlu0 %3992 }
0x38af   :  { %v3997_v59 = vsub.f32 %v3988_v1, %v3993_v57 }
0x38b1   :  { %v3999_v10 = vmul.f32 1.442695, %v3997_v59 }
0x38b2   :  { %v3996_v61 = vpop.xlane.xlu1 %3995  ;;  %v2593_v37 = vpop.permute.xlu0 %2592 }
0x38b3   :  { %5967 = vpow2.f32 %v3999_v10  ;;  %v3998_v62 = vsub.f32 %v3990_v56, %v3996_v61  ;;  %v5553_v56 = vmul.f32 -1.442695, %v7174_v21 }
0x38b5   :  { %v4001_v12 = vmul.f32 1.442695, %v3998_v62 }
0x38b7   :  { %5969 = vpow2.f32 %v4001_v12 }
0x38b8   :  { %5971 = vrcp.f32 %v2593_v37 }
0x38c0   :  { %v5968_v16 = vpop.eup %5967 }
0x38c1   :  { %5683 = vmatprep.mubr.msk.f32.mxu1 %vm396_vm1, %v5968_v16 }
0x38c4   :  { %v5970_v7 = vpop.eup %5969 }
0x38c5   :  { %5684 = vmatmul.mubr.msk.f32.vlgmr.msra.gmra.mxu1 %vm396_vm1, %v5970_v7  ;;  %v5972_v39 = vpop.eup %5971 }
0x38c6   :  { %5687 = vmatpush3.msra.mxu1 %v7009_v32  ;;  %v2599_v38 = vmul.f32 %v5972_v39, %v6945_v6 }
0x38c7   :  { %4542 = vmatprep.subr.mxu1 %v7186_v9 }
0x38c8   :  { %v2602_v13 = vsub.f32 1.0, %v2599_v38 }
0x3985   :  { %v5685_v0 = vpop.f32.mrf.mxu1 }
0x3986   :  { %4088 = vrot.lane.b32.xlu0 %v5685_v0, %s6139_s8 }
0x3987   :  { %v4075_v19 = vpop.f32.mrf.mxu1 }
0x3988   :  { %4086 = vrot.lane.b32.xlu1 %v4075_v19, %s6139_s8 }
0x398c   :  { %2620 = vrot.lane.b32.xlu1 %v2602_v13, %s6140_s9 }
0x39f8   :  { %v4089_v32 = vpop.permute.xlu0 %4088 }
0x39f9   :  { %5973 = vrcp.f32 %v4089_v32 }
0x39fa   :  { %v4087_v3 = vpop.permute.xlu1 %4086 }
0x39fb   :  { %5975 = vrcp.f32 %v4087_v3 }
0x39fc   :  { %5977 = vtanh.f32 %v6861_v36 }
0x39fd   :  { %5979 = vtanh.f32 %v7170_v11 }
0x39fe   :  { %v2621_v55 = vpop.permute.xlu1 %2620  ;;  %5981 = vtanh.f32 %v7174_v21 }
0x39ff   :  { %v2626_v6 = vmul.f32 %v2621_v55, %v2599_v38  ;;  %5983 = vpow2.f32 %v5497_v35 }
0x3a01   :  { %v2638_v54 = vsub.f32 %v2599_v38, %v2626_v6 }
0x3a06   :  { %v5974_v15 = vpop.eup %5973 }
0x3a07   :  { %v4095_v20 = vmul.f32 %v5974_v15, %v5685_v0 }
0x3a08   :  { %v5976_v23 = vpop.eup %5975 }
0x3a09   :  { %v4097_v50 = vsub.f32 1.0, %v4095_v20  ;;  %v4093_v49 = vmul.f32 %v5976_v23, %v4075_v19  ;;  %v5978_v33 = vpop.eup %5977 }
0x3a0a   :  { %v5980_v63 = vpop.eup %5979 }
0x3a0b   :  { %4116 = vrot.lane.b32.xlu1 %v4097_v50, %s6140_s9  ;;  %v4096_v51 = vsub.f32 1.0, %v4093_v49  ;;  %v5982_v25 = vpop.eup %5981 }
0x3a0c   :  { %v5984_v5 = vpop.eup %5983 }
0x3a0d   :  { %4114 = vrot.lane.b32.xlu0 %v4096_v51, %s6140_s9  ;;  %v2610_v27 = vadd.f32 1.0, %v5984_v5 }
0x3a0f   :  { %5985 = vrcp.f32 %v2610_v27 }
0x3a10   :  { %5987 = vpow2.f32 %v5552_v60 }
0x3a11   :  { %2652 = vrot.lane.b32.xlu0 %v2626_v6, %s6141_s10  ;;  %5989 = vpow2.f32 %v5553_v56 }
0x3a1c   :  { %v7210_v29 = vpop.eup %5985 }
0x3a1d   :  { %v2650_v8 = vmul.f32 %v7210_v29, %v2626_v6  ;;  %v5988_v41 = vpop.eup %5987 }
0x3a1e   :  { %v4104_v57 = vadd.f32 1.0, %v5988_v41  ;;  %v5990_v59 = vpop.eup %5989 }
0x3a1f   :  { %v4105_v10 = vadd.f32 1.0, %v5990_v59 }
0x3a20   :  { %5991 = vrcp.f32 %v4104_v57 }
0x3a21   :  { %5993 = vrcp.f32 %v4105_v10 }
0x3a2d   :  { %v5992_v61 = vpop.eup %5991 }
0x3a2e   :  { %v5994_v37 = vpop.eup %5993 }
0x3a7d   :  { %v4117_v52 = vpop.permute.xlu1 %4116 }
0x3a7e   :  { %v4121_v53 = vmul.f32 %v4117_v52, %v4095_v20 }
0x3a7f   :  { %v4115_v48 = vpop.permute.xlu0 %4114 }
0x3a80   :  { %v4120_v26 = vmul.f32 %v4115_v48, %v4093_v49  ;;  %4148 = vrot.lane.b32.xlu0 %v4121_v53, %s6141_s10  ;;  %v4133_v46 = vsub.f32 %v4095_v20, %v4121_v53  ;;  %v4145_v0 = vmul.f32 %v5994_v37, %v4121_v53 }
0x3a82   :  { %4146 = vrot.lane.b32.xlu1 %v4120_v26, %s6141_s10  ;;  %v4132_v40 = vsub.f32 %v4093_v49, %v4120_v26  ;;  %v4144_v12 = vmul.f32 %v5992_v61, %v4120_v26 }
0x3a83   :  { %v2653_v2 = vpop.permute.xlu0 %2652 }
0x3a84   :  { %v2658_v24 = vsub.f32 %v2602_v13, %v2653_v2  ;;  %2674 = vrot.lane.b32.xlu0 %v5978_v33, %s6139_s8 }
0x3a86   :  { %2662 = vrot.lane.b32.xlu1 %v2658_v24, %s6140_s9 }
0x3a88   :  { %4168 = vrot.lane.b32.xlu0 %v5980_v63, %s6139_s8 }
0x3a8c   :  { %4170 = vrot.lane.b32.xlu0 %v5982_v25, %s6139_s8 }
0x3a90   :  { %2642 = vrot.lane.b32.xlu0 %v2638_v54, %s6140_s9 }
0x3a94   :  { %4124 = vrot.lane.b32.xlu0 %v4120_v26, %s6140_s9 }
0x3a98   :  { %4126 = vrot.lane.b32.xlu0 %v4121_v53, %s6140_s9 }
0x3af2   :  { %v4149_v43 = vpop.permute.xlu0 %4148 }
0x3af3   :  { %v4153_v45 = vsub.f32 %v4097_v50, %v4149_v43 }
0x3af4   :  { %v4147_v42 = vpop.permute.xlu1 %4146 }
0x3af5   :  { %v4152_v18 = vsub.f32 %v4096_v51, %v4147_v42 }
0x3af6   :  { %v2675_v36 = vpop.permute.xlu0 %2674 }
0x3af7   :  { %4156 = vrot.lane.b32.xlu1 %v4152_v18, %s6140_s9 }
0x3af8   :  { %v2663_v28 = vpop.permute.xlu1 %2662 }
0x3af9   :  { %v2668_v1 = vadd.f32 %v2663_v28, %v2650_v8  ;;  %v2915_v8 = vpop.f32.mrf.mxu0 }
0x3afa   :  { %v4169_v62 = vpop.permute.xlu0 %4168 }
0x3afb   :  { %4158 = vrot.lane.b32.xlu1 %v4153_v45, %s6140_s9  ;;  %v2680_v30 = vmul.f32 %v2675_v36, %v2668_v1  ;;  %v2917_v1 = vpop.f32.mrf.mxu0 }
0x3afd   :  { %v2921_v36 = vpop.f32.mrf.mxu0 }
0x3afe   :  { %v4171_v38 = vpop.permute.xlu0 %4170 }
0x3aff   :  { %2630 = vrot.lane.b32.xlu1 %v2626_v6, %s6140_s9 }
0x3b02   :  { %v2643_v3 = vpop.permute.xlu0 %2642 }
0x3b03   :  { %2684 = vrot.lane.b32.xlu1 %v2680_v30, %s6140_s9  ;;  %v2923_v30 = vpop.f32.mrf.mxu0 }
0x3b06   :  { %v4125_v51 = vpop.permute.xlu0 %4124 }
0x3b07   :  { %4136 = vrot.lane.b32.xlu1 %v4132_v40, %s6140_s9  ;;  %v4130_v6 = vmul.f32 %v5992_v61, %v4125_v51  ;;  %v7255_v40 = vpop.f32.mrf.mxu0 }
0x3b0a   :  { %v4127_v52 = vpop.permute.xlu0 %4126 }
0x3b0b   :  { %4138 = vrot.lane.b32.xlu1 %v4133_v46, %s6140_s9  ;;  %v4131_v26 = vmul.f32 %v5994_v37, %v4127_v52  ;;  %v7257_v46 = vpop.f32.mrf.mxu0 }
0x3b0d   :  { %v7259_v60 = vpop.f32.mrf.mxu0 }
0x3b0f   :  { %v7261_v56 = vpop.f32.mrf.mxu0 }
0x3b11   :  { %v7263_v41 = vpop.f32.mrf.mxu0 }
0x3b13   :  { %v7265_v57 = vpop.f32.mrf.mxu0 }
0x3b15   :  { %v7267_v59 = vpop.f32.mrf.mxu0 }
0x3b17   :  { %v7269_v10 = vpop.f32.mrf.mxu0 }
0x3b69   :  { %v4157_v16 = vpop.permute.xlu1 %4156 }
0x3b6a   :  { %v4162_v7 = vadd.f32 %v4157_v16, %v4144_v12 }
0x3b6c   :  { %v4174_v39 = vmul.f32 %v4169_v62, %v4162_v7  ;;  %v2916_v7 = vadd.f32 %v2915_v8, %v6943_v34 }
0x3b6d   :  { %v4159_v11 = vpop.permute.xlu1 %4158 }
0x3b6e   :  { %v4163_v19 = vadd.f32 %v4159_v11, %v4145_v0  ;;  %4178 = vrot.lane.b32.xlu0 %v4174_v39, %s6140_s9  ;;  %v2918_v39 = vadd.f32 %v2917_v1, %v6961_v14  ;;  %v2922_v11 = vadd.f32 %v2921_v36, %v6943_v34 }
0x3b70   :  { %v4175_v21 = vmul.f32 %v4171_v38, %v4163_v19 }
0x3b71   :  { %v2631_v13 = vpop.permute.xlu1 %2630 }
0x3b72   :  { %v2636_v32 = vmul.f32 %v7210_v29, %v2631_v13  ;;  %4180 = vrot.lane.b32.xlu1 %v4175_v21, %s6140_s9  ;;  %v2924_v13 = vadd.f32 %v2923_v30, %v6961_v14 }
0x3b74   :  { %v2648_v15 = vadd.f32 %v2643_v3, %v2636_v32 }
0x3b75   :  { %v2685_v23 = vpop.permute.xlu1 %2684 }
0x3b76   :  { %v2670_v20 = vmul.f32 %v2648_v15, %v6816_v47 }
0x3b78   :  { %v2690_v50 = vadd.f32 %v2685_v23, %v2670_v20 }
0x3b79   :  { %v4137_v55 = vpop.permute.xlu1 %4136 }
0x3b7a   :  { %5995 = vtanh.f32 %v2690_v50  ;;  %v4142_v53 = vadd.f32 %v4137_v55, %v4130_v6 }
0x3b7c   :  { %v4164_v2 = vmul.f32 %v4142_v53, %v7150_v4 }
0x3b7d   :  { %v4139_v48 = vpop.permute.xlu1 %4138 }
0x3b7e   :  { %v4143_v33 = vadd.f32 %v4139_v48, %v4131_v26  ;;  %v7294_v26 = vld [vmem:[%s7559_s2 + $0x70] sm:$0xff] }
0x3b80   :  { %v4165_v47 = vmul.f32 %v4143_v33, %v7154_v44  ;;  %v2741_v44 = vld [vmem:[#allocation3 + $0x78] sm:$0xff]  ;;  %v7301_v33 = vld [vmem:[%s7559_s2 + $0x68] sm:$0xff] }
0x3b87   :  { %v5996_v49 = vpop.eup %5995 }
0x3b88   :  { %2696 = vrot.lane.b32.xlu0 %v5996_v49, %s6139_s8 }
0x3be0   :  { %v4179_v24 = vpop.permute.xlu0 %4178 }
0x3be1   :  { %v7226_v63 = vadd.f32 %v4179_v24, %v4164_v2  ;;  %v7307_v2 = vld [vmem:[%s7559_s2 + $0x60] sm:$0xff]  ;;  %v7313_v24 = vld [vmem:[%s7559_s2 + $0x58] sm:$0xff] }
0x3be3   :  { %5997 = vtanh.f32 %v7226_v63 }
0x3be4   :  { %v4181_v25 = vpop.permute.xlu1 %4180 }
0x3be5   :  { %v7230_v54 = vadd.f32 %v4181_v25, %v4165_v47  ;;  %v7319_v47 = vld [vmem:[%s7559_s2 + $0x50] sm:$0xff]  ;;  %v7325_v25 = vld [vmem:[%s7559_s2 + $0x48] sm:$0xff] }
0x3be7   :  { %5999 = vtanh.f32 %v7230_v54 }
0x3bf0   :  { %v5998_v35 = vpop.eup %5997 }
0x3bf1   :  { %4190 = vrot.lane.b32.xlu1 %v5998_v35, %s6139_s8  ;;  %v7331_v35 = vld [vmem:[%s7559_s2 + $0x40] sm:$0xff]  ;;  %s6142_s2 = smov [#allocation4]  }
0x3bf4   :  { %v6000_v5 = vpop.eup %5999 }
0x3bf5   :  { %4192 = vrot.lane.b32.xlu0 %v6000_v5, %s6139_s8 }
0x3bfa   :  { %v2697_v27 = vpop.permute.xlu0 %2696 }
0x3bfb   :  { %v2702_v4 = vmul.f32 %v7210_v29, %v2697_v27  ;;  %v7247_v29 = vld [vmem:[%s7561_s4] sm:$0xff] }
0x3bfd   :  { %2704 = vst.msk [vmem:[#allocation3 + $0x70] sm:$0xff] %vm66_vm0, %v2702_v4 }
0x3c04   :  { %v2740_v42 = vld [vmem:[#allocation3 + $0x70] sm:$0xff] }
0x3c05   :  { %5530 = vmatmul.mubr.msk.f32.gmra.mxu0 %vm66_vm0, %v2740_v42 }
0x3c06   :  { %2955 = vmatprep.mubr.f32.mxu0 %v6138_v17 }
0x3c09   :  { %5531 = vmatmul.mubr.msk.f32.gmra.mxu0 %vm66_vm0, %v2741_v44 }
0x3c0a   :  { %4278 = vmatprep.mubr.f32.mxu0 %v6138_v17 }
0x3c63   :  { %v4191_v18 = vpop.permute.xlu1 %4190 }
0x3c64   :  { %v4196_v43 = vmul.f32 %v5992_v61, %v4191_v18 }
0x3c66   :  { %4199 = vst.msk [vmem:[#allocation4 + $0x18] sm:$0xff] %vm66_vm0, %v4196_v43  ;;  %5554 = vmatmul.mubr.msk.f32.vlgmr.msra.gmra.mxu0 %vm66_vm0, %v4196_v43 }
0x3c67   :  { %v4193_v45 = vpop.permute.xlu0 %4192  ;;  %4284 = vmatprep.mubr.f32.mxu0 %v6138_v17  ;;  %5692 = vmatpush3.msra.mxu0 %v7247_v29 }
0x3c68   :  { %v7250_v28 = vmul.f32 %v5994_v37, %v4193_v45  ;;  %5696 = vmatprep.subr.mxu0 %v7247_v29 }
0x3c6a   :  { %5555 = vmatmul.mubr.msk.f32.gmra.mxu0 %vm66_vm0, %v7250_v28 }
0x3cc5   :  { %v7271_v61 = vpop.f32.mrf.mxu0 }
0x3cc7   :  { %v7273_v62 = vpop.f32.mrf.mxu0 }
0x3cc9   :  { %v7275_v12 = vpop.f32.mrf.mxu0 }
0x3ccb   :  { %v7277_v16 = vpop.f32.mrf.mxu0 }
0x3d26   :  { %v4280_v37 = vpop.f32.mrf.mxu0 }
0x3d27   :  { %v7281_v0 = vadd.f32 %v4280_v37, %v2916_v7 }
0x3d28   :  { %v4282_v38 = vpop.f32.mrf.mxu0 }
0x3d29   :  { %v4292_v19 = vadd.f32 %v4282_v38, %v2918_v39 }
0x3d2a   :  { %v4286_v21 = vpop.f32.mrf.mxu0 }
0x3d2b   :  { %v7285_v32 = vadd.f32 %v4286_v21, %v2922_v11  ;;  %v4295_v3 = vsel %vm396_vm1, %v4292_v19, -inf }
0x3d2c   :  { %4296 = vmax.xlane.f32.xlu1 %v4295_v3  ;;  %v4288_v15 = vpop.f32.mrf.mxu0 }
0x3d2d   :  { %v4294_v20 = vadd.f32 %v4288_v15, %v2924_v13 }
0x3d2f   :  { %v4298_v23 = vsel %vm396_vm1, %v4294_v20, -inf }
0x3d30   :  { %4299 = vmax.xlane.f32.xlu0 %v4298_v23  ;;  %v5559_v23 = vmul.f32 -1.442695, %v7285_v32 }
0x3db5   :  { %v4297_v50 = vpop.xlane.xlu1 %4296 }
0x3db6   :  { %v4301_v49 = vsub.f32 %v4292_v19, %v4297_v50 }
0x3db8   :  { %v4303_v51 = vmul.f32 1.442695, %v4301_v49 }
0x3db9   :  { %v4300_v55 = vpop.xlane.xlu0 %4299 }
0x3dba   :  { %6001 = vpow2.f32 %v4303_v51  ;;  %v4302_v6 = vsub.f32 %v4294_v20, %v4300_v55  ;;  %v5558_v20 = vmul.f32 -1.442695, %v7281_v0 }
0x3dbc   :  { %v4305_v52 = vmul.f32 1.442695, %v4302_v6 }
0x3dbe   :  { %6003 = vpow2.f32 %v4305_v52 }
0x3dc7   :  { %v6002_v53 = vpop.eup %6001 }
0x3dc8   :  { %5688 = vmatprep.mubr.msk.f32.mxu1 %vm396_vm1, %v6002_v53 }
0x3dcb   :  { %v6004_v48 = vpop.eup %6003 }
0x3dcc   :  { %5689 = vmatmul.mubr.msk.f32.vlgmr.msra.gmra.mxu1 %vm396_vm1, %v6004_v48 }
0x3dcd   :  { %4543 = vmatpush1.msra.mxu1 %v7294_v26  ;;  %4582 = vmatprep.mubr.f32.mxu1 %v6138_v17 }
0x3dce   :  { %4544 = vmatprep.subr.mxu1 %v7301_v33 }
0x3dcf   :  { %4545 = vmatpush1.msra.mxu1 %v7307_v2 }
0x3dd0   :  { %4546 = vmatprep.subr.mxu1 %v7313_v24 }
0x3dd1   :  { %4547 = vmatpush1.msra.mxu1 %v7319_v47 }
0x3dd2   :  { %4548 = vmatprep.subr.mxu1 %v7325_v25 }
0x3dd3   :  { %4549 = vmatpush1.msra.mxu1 %v7331_v35 }
0x3dd4   :  { %4846 = vmatprep.subr.mxu1 %v7186_v9 }
0x3e8c   :  { %v5690_v5 = vpop.f32.mrf.mxu1 }
0x3e8d   :  { %4392 = vrot.lane.b32.xlu1 %v5690_v5, %s6139_s8 }
0x3e8e   :  { %v4379_v27 = vpop.f32.mrf.mxu1 }
0x3e8f   :  { %4390 = vrot.lane.b32.xlu0 %v4379_v27, %s6139_s8 }
0x3eff   :  { %v4393_v4 = vpop.permute.xlu1 %4392 }
0x3f00   :  { %6005 = vrcp.f32 %v4393_v4 }
0x3f01   :  { %v4391_v42 = vpop.permute.xlu0 %4390 }
0x3f02   :  { %6007 = vrcp.f32 %v4391_v42 }
0x3f03   :  { %6009 = vtanh.f32 %v7281_v0 }
0x3f04   :  { %6011 = vtanh.f32 %v7285_v32 }
0x3f05   :  { %6013 = vpow2.f32 %v5558_v20 }
0x3f06   :  { %6015 = vpow2.f32 %v5559_v23 }
0x3f0d   :  { %v6006_v44 = vpop.eup %6005 }
0x3f0e   :  { %v4399_v18 = vmul.f32 %v6006_v44, %v5690_v5 }
0x3f0f   :  { %v6008_v43 = vpop.eup %6007 }
0x3f10   :  { %v4401_v45 = vsub.f32 1.0, %v4399_v18  ;;  %v4397_v8 = vmul.f32 %v6008_v43, %v4379_v27  ;;  %v6010_v39 = vpop.eup %6009 }
0x3f11   :  { %v6012_v38 = vpop.eup %6011 }
0x3f12   :  { %4420 = vrot.lane.b32.xlu0 %v4401_v45, %s6140_s9  ;;  %v4400_v1 = vsub.f32 1.0, %v4397_v8  ;;  %v6014_v50 = vpop.eup %6013 }
0x3f13   :  { %v4408_v49 = vadd.f32 1.0, %v6014_v50  ;;  %v6016_v51 = vpop.eup %6015  ;;  %v2928_v50 = vadd.f32 %v7255_v40, %v6943_v34 }
0x3f14   :  { %4418 = vrot.lane.b32.xlu1 %v4400_v1, %s6140_s9  ;;  %v4409_v55 = vadd.f32 1.0, %v6016_v51  ;;  %v2930_v51 = vadd.f32 %v7257_v46, %v6961_v14 }
0x3f15   :  { %6017 = vrcp.f32 %v4408_v49 }
0x3f16   :  { %6019 = vrcp.f32 %v4409_v55 }
0x3f22   :  { %v6018_v6 = vpop.eup %6017 }
0x3f23   :  { %v6020_v27 = vpop.eup %6019 }
0x3f84   :  { %v4421_v36 = vpop.permute.xlu0 %4420 }
0x3f85   :  { %v4425_v30 = vmul.f32 %v4421_v36, %v4399_v18 }
0x3f86   :  { %v4419_v7 = vpop.permute.xlu1 %4418 }
0x3f87   :  { %v4424_v37 = vmul.f32 %v4419_v7, %v4397_v8  ;;  %4452 = vrot.lane.b32.xlu0 %v4425_v30, %s6141_s10  ;;  %v4437_v19 = vsub.f32 %v4399_v18, %v4425_v30  ;;  %v4449_v42 = vmul.f32 %v6020_v27, %v4425_v30 }
0x3f89   :  { %4450 = vrot.lane.b32.xlu1 %v4424_v37, %s6141_s10  ;;  %v4436_v11 = vsub.f32 %v4397_v8, %v4424_v37  ;;  %v4448_v52 = vmul.f32 %v6018_v6, %v4424_v37 }
0x3f8b   :  { %4472 = vrot.lane.b32.xlu0 %v6010_v39, %s6139_s8 }
0x3f8f   :  { %4474 = vrot.lane.b32.xlu0 %v6012_v38, %s6139_s8 }
0x3f93   :  { %4440 = vrot.lane.b32.xlu0 %v4436_v11, %s6140_s9 }
0x3f97   :  { %4442 = vrot.lane.b32.xlu0 %v4437_v19, %s6140_s9 }
0x3ff9   :  { %v4453_v3 = vpop.permute.xlu0 %4452 }
0x3ffa   :  { %v4457_v15 = vsub.f32 %v4401_v45, %v4453_v3 }
0x3ffb   :  { %v4451_v21 = vpop.permute.xlu1 %4450 }
0x3ffc   :  { %v4456_v13 = vsub.f32 %v4400_v1, %v4451_v21 }
0x3ffd   :  { %v4473_v53 = vpop.permute.xlu0 %4472 }
0x3ffe   :  { %4460 = vrot.lane.b32.xlu1 %v4456_v13, %s6140_s9 }
0x4001   :  { %v4475_v32 = vpop.permute.xlu0 %4474 }
0x4002   :  { %4462 = vrot.lane.b32.xlu1 %v4457_v15, %s6140_s9 }
0x4005   :  { %v4441_v8 = vpop.permute.xlu0 %4440 }
0x4006   :  { %4428 = vrot.lane.b32.xlu1 %v4424_v37, %s6140_s9 }
0x4009   :  { %v4443_v37 = vpop.permute.xlu0 %4442 }
0x400a   :  { %4430 = vrot.lane.b32.xlu1 %v4425_v30, %s6140_s9 }
0x4070   :  { %v4461_v48 = vpop.permute.xlu1 %4460 }
0x4071   :  { %v4466_v5 = vadd.f32 %v4461_v48, %v4448_v52  ;;  %v2934_v52 = vadd.f32 %v7259_v60, %v6943_v34 }
0x4073   :  { %v4478_v4 = vmul.f32 %v4473_v53, %v4466_v5  ;;  %v2936_v5 = vadd.f32 %v7261_v56, %v6961_v14 }
0x4074   :  { %v4463_v44 = vpop.permute.xlu1 %4462 }
0x4075   :  { %v4467_v0 = vadd.f32 %v4463_v44, %v4449_v42  ;;  %4482 = vrot.lane.b32.xlu1 %v4478_v4, %s6140_s9 }
0x4077   :  { %v4479_v18 = vmul.f32 %v4475_v32, %v4467_v0 }
0x4078   :  { %v4429_v43 = vpop.permute.xlu1 %4428 }
0x4079   :  { %4484 = vrot.lane.b32.xlu0 %v4479_v18, %s6140_s9  ;;  %v4434_v45 = vmul.f32 %v6018_v6, %v4429_v43 }
0x407b   :  { %v4446_v36 = vadd.f32 %v4441_v8, %v4434_v45 }
0x407c   :  { %v4431_v1 = vpop.permute.xlu1 %4430 }
0x407d   :  { %v4435_v7 = vmul.f32 %v6020_v27, %v4431_v1  ;;  %v4468_v38 = vmul.f32 %v4446_v36, %v7226_v63 }
0x407f   :  { %v4447_v39 = vadd.f32 %v4443_v37, %v4435_v7 }
0x4081   :  { %v4469_v19 = vmul.f32 %v4447_v39, %v7230_v54 }
0x40e7   :  { %v4483_v11 = vpop.permute.xlu1 %4482 }
0x40e8   :  { %v7356_v30 = vadd.f32 %v4483_v11, %v4468_v38 }
0x40ea   :  { %6021 = vtanh.f32 %v7356_v30 }
0x40eb   :  { %v4485_v21 = vpop.permute.xlu0 %4484 }
0x40ec   :  { %v7360_v13 = vadd.f32 %v4485_v21, %v4469_v19 }
0x40ee   :  { %6023 = vtanh.f32 %v7360_v13 }
0x40f7   :  { %v6022_v3 = vpop.eup %6021 }
0x40f8   :  { %4494 = vrot.lane.b32.xlu1 %v6022_v3, %s6139_s8 }
0x40fb   :  { %v6024_v15 = vpop.eup %6023 }
0x40fc   :  { %4496 = vrot.lane.b32.xlu0 %v6024_v15, %s6139_s8 }
0x416a   :  { %v4495_v20 = vpop.permute.xlu1 %4494 }
0x416b   :  { %v4500_v63 = vmul.f32 %v6018_v6, %v4495_v20 }
0x416d   :  { %4503 = vst.msk [vmem:[#allocation4 + $0x20] sm:$0xff] %vm66_vm0, %v4500_v63  ;;  %5560 = vmatmul.mubr.msk.f32.vlgmr.msra.gmra.mxu1 %vm66_vm0, %v4500_v63 }
0x416e   :  { %v4497_v23 = vpop.permute.xlu0 %4496  ;;  %4588 = vmatprep.mubr.f32.mxu1 %v6138_v17  ;;  %4847 = vmatpush1.msra.mxu1 %v7294_v26 }
0x416f   :  { %v7369_v54 = vmul.f32 %v6020_v27, %v4497_v23  ;;  %4848 = vmatprep.subr.mxu1 %v7301_v33 }
0x4170   :  { %4849 = vmatpush1.msra.mxu1 %v7307_v2 }
0x4171   :  { %5561 = vmatmul.mubr.msk.f32.gmra.mxu1 %vm66_vm0, %v7369_v54  ;;  %4850 = vmatprep.subr.mxu1 %v7313_v24 }
0x4172   :  { %4851 = vmatpush1.msra.mxu1 %v7319_v47  ;;  %4886 = vmatprep.mubr.f32.mxu1 %v6138_v17 }
0x4173   :  { %4852 = vmatprep.subr.mxu1 %v7325_v25 }
0x4174   :  { %4853 = vmatpush1.msra.mxu1 %v7331_v35 }
0x4175   :  { %5701 = vmatprep.subr.mxu1 %v7247_v29 }
0x422d   :  { %v4584_v49 = vpop.f32.mrf.mxu1 }
0x422e   :  { %v7385_v55 = vadd.f32 %v4584_v49, %v2928_v50 }
0x422f   :  { %v4586_v6 = vpop.f32.mrf.mxu1 }
0x4230   :  { %v4596_v53 = vadd.f32 %v4586_v6, %v2930_v51 }
0x4231   :  { %v4590_v48 = vpop.f32.mrf.mxu1 }
0x4232   :  { %v4597_v27 = vadd.f32 %v4590_v48, %v2934_v52  ;;  %v4599_v4 = vsel %vm396_vm1, %v4596_v53, -inf  ;;  %v5564_v48 = vmul.f32 -1.442695, %v7385_v55 }
0x4233   :  { %4600 = vmax.xlane.f32.xlu1 %v4599_v4  ;;  %v4592_v40 = vpop.f32.mrf.mxu1 }
0x4234   :  { %v4598_v42 = vadd.f32 %v4592_v40, %v2936_v5  ;;  %v5565_v5 = vmul.f32 -1.442695, %v4597_v27 }
0x4236   :  { %v4602_v44 = vsel %vm396_vm1, %v4598_v42, -inf }
0x4237   :  { %4603 = vmax.xlane.f32.xlu0 %v4602_v44 }
0x42bc   :  { %v4601_v46 = vpop.xlane.xlu1 %4600 }
0x42bd   :  { %v4605_v0 = vsub.f32 %v4596_v53, %v4601_v46 }
0x42bf   :  { %v4607_v32 = vmul.f32 1.442695, %v4605_v0 }
0x42c0   :  { %v4604_v18 = vpop.xlane.xlu0 %4603 }
0x42c1   :  { %6025 = vpow2.f32 %v4607_v32  ;;  %v4606_v60 = vsub.f32 %v4598_v42, %v4604_v18 }
0x42c3   :  { %v4609_v43 = vmul.f32 1.442695, %v4606_v60 }
0x42c5   :  { %6027 = vpow2.f32 %v4609_v43 }
0x42ce   :  { %v6026_v45 = vpop.eup %6025 }
0x42cf   :  { %5693 = vmatprep.mubr.msk.f32.mxu0 %vm396_vm1, %v6026_v45 }
0x42d2   :  { %v6028_v56 = vpop.eup %6027 }
0x42d3   :  { %5694 = vmatmul.mubr.msk.f32.vlgmr.msra.gmra.mxu0 %vm396_vm1, %v6028_v56 }
0x42d4   :  { %5697 = vmatpush3.msra.mxu0 %v7247_v29 }
0x42d5   :  { %5150 = vmatprep.subr.mxu0 %v7186_v9 }
0x4393   :  { %v5695_v8 = vpop.f32.mrf.mxu0 }
0x4394   :  { %4696 = vrot.lane.b32.xlu1 %v5695_v8, %s6139_s8 }
0x4395   :  { %v4683_v1 = vpop.f32.mrf.mxu0 }
0x4396   :  { %4694 = vrot.lane.b32.xlu0 %v4683_v1, %s6139_s8 }
0x4406   :  { %v4697_v36 = vpop.permute.xlu1 %4696 }
0x4407   :  { %6029 = vrcp.f32 %v4697_v36 }
0x4408   :  { %v4695_v7 = vpop.permute.xlu0 %4694 }
0x4409   :  { %6031 = vrcp.f32 %v4695_v7 }
0x440a   :  { %6033 = vtanh.f32 %v7385_v55 }
0x440b   :  { %6035 = vtanh.f32 %v4597_v27 }
0x440c   :  { %6037 = vpow2.f32 %v5564_v48  ;;  %v2942_v48 = vadd.f32 %v7265_v57, %v6961_v14 }
0x440d   :  { %6039 = vpow2.f32 %v5565_v5 }
0x4414   :  { %v6030_v37 = vpop.eup %6029 }
0x4415   :  { %v4703_v39 = vmul.f32 %v6030_v37, %v5695_v8 }
0x4416   :  { %v6032_v38 = vpop.eup %6031 }
0x4417   :  { %v4705_v11 = vsub.f32 1.0, %v4703_v39  ;;  %v4701_v19 = vmul.f32 %v6032_v38, %v4683_v1  ;;  %v6034_v63 = vpop.eup %6033 }
0x4418   :  { %v6036_v23 = vpop.eup %6035 }
0x4419   :  { %4724 = vrot.lane.b32.xlu0 %v4705_v11, %s6140_s9  ;;  %v4704_v21 = vsub.f32 1.0, %v4701_v19  ;;  %v6038_v4 = vpop.eup %6037 }
0x441a   :  { %v4712_v40 = vadd.f32 1.0, %v6038_v4  ;;  %v6040_v42 = vpop.eup %6039 }
0x441b   :  { %4722 = vrot.lane.b32.xlu1 %v4704_v21, %s6140_s9  ;;  %v4713_v44 = vadd.f32 1.0, %v6040_v42 }
0x441c   :  { %6041 = vrcp.f32 %v4712_v40  ;;  %v2946_v40 = vadd.f32 %v7267_v59, %v6943_v34 }
0x441d   :  { %6043 = vrcp.f32 %v4713_v44  ;;  %v2948_v44 = vadd.f32 %v7269_v10, %v6961_v14 }
0x4429   :  { %v6042_v46 = vpop.eup %6041 }
0x442a   :  { %v6044_v43 = vpop.eup %6043 }
0x448b   :  { %v4725_v9 = vpop.permute.xlu0 %4724 }
0x448c   :  { %v4729_v3 = vmul.f32 %v4725_v9, %v4703_v39 }
0x448d   :  { %v4723_v15 = vpop.permute.xlu1 %4722 }
0x448e   :  { %v4728_v20 = vmul.f32 %v4723_v15, %v4701_v19  ;;  %4756 = vrot.lane.b32.xlu0 %v4729_v3, %s6141_s10  ;;  %v4741_v49 = vsub.f32 %v4703_v39, %v4729_v3  ;;  %v4753_v56 = vmul.f32 %v6044_v43, %v4729_v3 }
0x4490   :  { %4754 = vrot.lane.b32.xlu1 %v4728_v20, %s6141_s10  ;;  %v4740_v50 = vsub.f32 %v4701_v19, %v4728_v20  ;;  %v4752_v0 = vmul.f32 %v6042_v46, %v4728_v20 }
0x4492   :  { %4776 = vrot.lane.b32.xlu0 %v6034_v63, %s6139_s8 }
0x4496   :  { %4778 = vrot.lane.b32.xlu0 %v6036_v23, %s6139_s8 }
0x449a   :  { %4744 = vrot.lane.b32.xlu0 %v4740_v50, %s6140_s9 }
0x449e   :  { %4746 = vrot.lane.b32.xlu0 %v4741_v49, %s6140_s9 }
0x4500   :  { %v4757_v52 = vpop.permute.xlu0 %4756 }
0x4501   :  { %v4761_v53 = vsub.f32 %v4705_v11, %v4757_v52  ;;  %v2940_v52 = vadd.f32 %v7263_v41, %v6943_v34 }
0x4502   :  { %v4755_v51 = vpop.permute.xlu1 %4754 }
0x4503   :  { %v4760_v6 = vsub.f32 %v4704_v21, %v4755_v51 }
0x4504   :  { %v4777_v32 = vpop.permute.xlu0 %4776 }
0x4505   :  { %4764 = vrot.lane.b32.xlu1 %v4760_v6, %s6140_s9 }
0x4508   :  { %v4779_v55 = vpop.permute.xlu0 %4778 }
0x4509   :  { %4766 = vrot.lane.b32.xlu1 %v4761_v53, %s6140_s9 }
0x450c   :  { %v4745_v37 = vpop.permute.xlu0 %4744 }
0x450d   :  { %4732 = vrot.lane.b32.xlu1 %v4728_v20, %s6140_s9 }
0x4510   :  { %v4747_v19 = vpop.permute.xlu0 %4746 }
0x4511   :  { %4734 = vrot.lane.b32.xlu1 %v4729_v3, %s6140_s9 }
0x4577   :  { %v4765_v18 = vpop.permute.xlu1 %4764 }
0x4578   :  { %v4770_v60 = vadd.f32 %v4765_v18, %v4752_v0 }
0x457a   :  { %v4782_v45 = vmul.f32 %v4777_v32, %v4770_v60 }
0x457b   :  { %v4767_v8 = vpop.permute.xlu1 %4766 }
0x457c   :  { %v4771_v1 = vadd.f32 %v4767_v8, %v4753_v56  ;;  %4786 = vrot.lane.b32.xlu1 %v4782_v45, %s6140_s9 }
0x457e   :  { %v4783_v27 = vmul.f32 %v4779_v55, %v4771_v1 }
0x457f   :  { %v4733_v36 = vpop.permute.xlu1 %4732 }
0x4580   :  { %4788 = vrot.lane.b32.xlu0 %v4783_v27, %s6140_s9  ;;  %v4738_v7 = vmul.f32 %v6042_v46, %v4733_v36 }
0x4582   :  { %v4750_v38 = vadd.f32 %v4745_v37, %v4738_v7 }
0x4583   :  { %v4735_v39 = vpop.permute.xlu1 %4734 }
0x4584   :  { %v4739_v11 = vmul.f32 %v6044_v43, %v4735_v39  ;;  %v4772_v9 = vmul.f32 %v4750_v38, %v7356_v30 }
0x4586   :  { %v4751_v21 = vadd.f32 %v4747_v19, %v4739_v11 }
0x4588   :  { %v4773_v20 = vmul.f32 %v4751_v21, %v7360_v13 }
0x45ee   :  { %v4787_v15 = vpop.permute.xlu1 %4786 }
0x45ef   :  { %v7416_v3 = vadd.f32 %v4787_v15, %v4772_v9 }
0x45f1   :  { %6045 = vtanh.f32 %v7416_v3 }
0x45f2   :  { %v4789_v63 = vpop.permute.xlu0 %4788 }
0x45f3   :  { %v7420_v23 = vadd.f32 %v4789_v63, %v4773_v20 }
0x45f5   :  { %6047 = vtanh.f32 %v7420_v23 }
0x45fe   :  { %v6046_v50 = vpop.eup %6045 }
0x45ff   :  { %4798 = vrot.lane.b32.xlu1 %v6046_v50, %s6139_s8 }
0x4602   :  { %v6048_v49 = vpop.eup %6047 }
0x4603   :  { %4800 = vrot.lane.b32.xlu0 %v6048_v49, %s6139_s8 }
0x4671   :  { %v4799_v51 = vpop.permute.xlu1 %4798 }
0x4672   :  { %v4804_v30 = vmul.f32 %v6042_v46, %v4799_v51 }
0x4674   :  { %4807 = vst.msk [vmem:[#allocation4 + $0x28] sm:$0xff] %vm66_vm0, %v4804_v30  ;;  %5566 = vmatmul.mubr.msk.f32.vlgmr.msra.gmra.mxu1 %vm66_vm0, %v4804_v30 }
0x4675   :  { %v4801_v6 = vpop.permute.xlu0 %4800  ;;  %4892 = vmatprep.mubr.f32.mxu1 %v6138_v17  ;;  %5702 = vmatpush3.msra.mxu1 %v7247_v29 }
0x4676   :  { %v7429_v13 = vmul.f32 %v6044_v43, %v4801_v6 }
0x4678   :  { %5567 = vmatmul.mubr.msk.f32.gmra.mxu1 %vm66_vm0, %v7429_v13 }
0x4734   :  { %v4888_v53 = vpop.f32.mrf.mxu1 }
0x4735   :  { %v7437_v5 = vadd.f32 %v4888_v53, %v2940_v52 }
0x4736   :  { %v4890_v4 = vpop.f32.mrf.mxu1 }
0x4737   :  { %v4900_v42 = vadd.f32 %v4890_v4, %v2942_v48  ;;  %v5570_v50 = vmul.f32 -1.442695, %v7437_v5 }
0x4738   :  { %v4894_v29 = vpop.f32.mrf.mxu1 }
0x4739   :  { %v7443_v46 = vadd.f32 %v4894_v29, %v2946_v40  ;;  %v4903_v0 = vsel %vm396_vm1, %v4900_v42, -inf }
0x473a   :  { %4904 = vmax.xlane.f32.xlu1 %v4903_v0  ;;  %v4896_v41 = vpop.f32.mrf.mxu1 }
0x473b   :  { %v4902_v32 = vadd.f32 %v4896_v41, %v2948_v44  ;;  %v5571_v49 = vmul.f32 -1.442695, %v7443_v46 }
0x473d   :  { %v4906_v57 = vsel %vm396_vm1, %v4902_v32, -inf }
0x473e   :  { %4907 = vmax.xlane.f32.xlu0 %v4906_v57 }
0x47c3   :  { %v4905_v18 = vpop.xlane.xlu1 %4904 }
0x47c4   :  { %v4909_v60 = vsub.f32 %v4900_v42, %v4905_v18 }
0x47c6   :  { %v4911_v43 = vmul.f32 1.442695, %v4909_v60 }
0x47c7   :  { %v4908_v45 = vpop.xlane.xlu0 %4907 }
0x47c8   :  { %6049 = vpow2.f32 %v4911_v43  ;;  %v4910_v59 = vsub.f32 %v4902_v32, %v4908_v45 }
0x47ca   :  { %v4913_v56 = vmul.f32 1.442695, %v4910_v59 }
0x47cc   :  { %6051 = vpow2.f32 %v4913_v56 }
0x47d5   :  { %v6050_v8 = vpop.eup %6049 }
0x47d6   :  { %5698 = vmatprep.mubr.msk.f32.mxu0 %vm396_vm1, %v6050_v8 }
0x47d9   :  { %v6052_v10 = vpop.eup %6051 }
0x47da   :  { %5699 = vmatmul.mubr.msk.f32.vlgmr.msra.gmra.mxu0 %vm396_vm1, %v6052_v10 }
0x47db   :  { %5151 = vmatpush1.msra.mxu0 %v7294_v26  ;;  %5190 = vmatprep.mubr.f32.mxu0 %v6138_v17 }
0x47dc   :  { %5152 = vmatprep.subr.mxu0 %v7301_v33 }
0x47dd   :  { %5153 = vmatpush1.msra.mxu0 %v7307_v2 }
0x47de   :  { %5154 = vmatprep.subr.mxu0 %v7313_v24 }
0x47df   :  { %5155 = vmatpush1.msra.mxu0 %v7319_v47 }
0x47e0   :  { %5156 = vmatprep.subr.mxu0 %v7325_v25 }
0x47e1   :  { %5157 = vmatpush1.msra.mxu0 %v7331_v35 }
0x489a   :  { %v5700_v1 = vpop.f32.mrf.mxu0 }
0x489b   :  { %5000 = vrot.lane.b32.xlu1 %v5700_v1, %s6139_s8 }
0x489c   :  { %v4987_v55 = vpop.f32.mrf.mxu0 }
0x489d   :  { %4998 = vrot.lane.b32.xlu0 %v4987_v55, %s6139_s8 }
0x490d   :  { %v5001_v26 = vpop.permute.xlu1 %5000 }
0x490e   :  { %6053 = vrcp.f32 %v5001_v26 }
0x490f   :  { %v4999_v27 = vpop.permute.xlu0 %4998 }
0x4910   :  { %6055 = vrcp.f32 %v4999_v27 }
0x4911   :  { %6057 = vtanh.f32 %v7437_v5 }
0x4912   :  { %6059 = vtanh.f32 %v7443_v46 }
0x4913   :  { %6061 = vpow2.f32 %v5570_v50 }
0x4914   :  { %6063 = vpow2.f32 %v5571_v49 }
0x491b   :  { %v6054_v33 = vpop.eup %6053 }
0x491c   :  { %v5007_v2 = vmul.f32 %v6054_v33, %v5700_v1 }
0x491d   :  { %v6056_v36 = vpop.eup %6055 }
0x491e   :  { %v5009_v24 = vsub.f32 1.0, %v5007_v2  ;;  %v5005_v7 = vmul.f32 %v6056_v36, %v4987_v55  ;;  %v6058_v38 = vpop.eup %6057 }
0x491f   :  { %v6060_v11 = vpop.eup %6059 }
0x4920   :  { %5028 = vrot.lane.b32.xlu0 %v5009_v24, %s6140_s9  ;;  %v5008_v47 = vsub.f32 1.0, %v5005_v7  ;;  %v6062_v51 = vpop.eup %6061 }
0x4921   :  { %v5016_v30 = vadd.f32 1.0, %v6062_v51  ;;  %v6064_v6 = vpop.eup %6063 }
0x4922   :  { %5026 = vrot.lane.b32.xlu1 %v5008_v47, %s6140_s9  ;;  %v5017_v52 = vadd.f32 1.0, %v6064_v6 }
0x4923   :  { %6065 = vrcp.f32 %v5016_v30 }
0x4924   :  { %6067 = vrcp.f32 %v5017_v52 }
0x4930   :  { %v6066_v53 = vpop.eup %6065 }
0x4931   :  { %v6068_v29 = vpop.eup %6067 }
0x4992   :  { %v5029_v25 = vpop.permute.xlu0 %5028 }
0x4993   :  { %v5033_v35 = vmul.f32 %v5029_v25, %v5007_v2 }
0x4994   :  { %v5027_v37 = vpop.permute.xlu1 %5026 }
0x4995   :  { %v5032_v39 = vmul.f32 %v5027_v37, %v5005_v7  ;;  %5060 = vrot.lane.b32.xlu0 %v5033_v35, %s6141_s10  ;;  %v5045_v21 = vsub.f32 %v5007_v2, %v5033_v35  ;;  %v5057_v0 = vmul.f32 %v6068_v29, %v5033_v35 }
0x4997   :  { %5058 = vrot.lane.b32.xlu1 %v5032_v39, %s6141_s10  ;;  %v5044_v19 = vsub.f32 %v5005_v7, %v5032_v39  ;;  %v5056_v48 = vmul.f32 %v6066_v53, %v5032_v39 }
0x4999   :  { %5080 = vrot.lane.b32.xlu0 %v6058_v38, %s6139_s8  ;;  %v2958_v38 = vadd.f32 %v7275_v12, %v6943_v34 }
0x499d   :  { %5082 = vrot.lane.b32.xlu0 %v6060_v11, %s6139_s8 }
0x49a1   :  { %5048 = vrot.lane.b32.xlu0 %v5044_v19, %s6140_s9  ;;  %v2960_v19 = vadd.f32 %v7277_v16, %v6961_v14 }
0x49a5   :  { %5050 = vrot.lane.b32.xlu0 %v5045_v21, %s6140_s9 }
0x4a07   :  { %v5061_v20 = vpop.permute.xlu0 %5060 }
0x4a08   :  { %v5065_v63 = vsub.f32 %v5009_v24, %v5061_v20 }
0x4a09   :  { %v5059_v9 = vpop.permute.xlu1 %5058 }
0x4a0a   :  { %v5064_v15 = vsub.f32 %v5008_v47, %v5059_v9  ;;  %v2952_v47 = vadd.f32 %v7271_v61, %v6943_v34 }
0x4a0b   :  { %v5081_v4 = vpop.permute.xlu0 %5080 }
0x4a0c   :  { %5068 = vrot.lane.b32.xlu1 %v5064_v15, %s6140_s9 }
0x4a0f   :  { %v5083_v46 = vpop.permute.xlu0 %5082 }
0x4a10   :  { %5070 = vrot.lane.b32.xlu1 %v5065_v63, %s6140_s9 }
0x4a13   :  { %v5049_v60 = vpop.permute.xlu0 %5048 }
0x4a14   :  { %5036 = vrot.lane.b32.xlu1 %v5032_v39, %s6140_s9 }
0x4a17   :  { %v5051_v56 = vpop.permute.xlu0 %5050 }
0x4a18   :  { %5038 = vrot.lane.b32.xlu1 %v5033_v35, %s6140_s9  ;;  %v2954_v35 = vadd.f32 %v7273_v62, %v6961_v14 }
0x4a7e   :  { %v5069_v40 = vpop.permute.xlu1 %5068 }
0x4a7f   :  { %v5074_v42 = vadd.f32 %v5069_v40, %v5056_v48 }
0x4a81   :  { %v5086_v44 = vmul.f32 %v5081_v4, %v5074_v42 }
0x4a82   :  { %v5071_v41 = vpop.permute.xlu1 %5070 }
0x4a83   :  { %v5075_v5 = vadd.f32 %v5071_v41, %v5057_v0  ;;  %5090 = vrot.lane.b32.xlu1 %v5086_v44, %s6140_s9 }
0x4a85   :  { %v5087_v32 = vmul.f32 %v5083_v46, %v5075_v5 }
0x4a86   :  { %v5037_v57 = vpop.permute.xlu1 %5036 }
0x4a87   :  { %5092 = vrot.lane.b32.xlu0 %v5087_v32, %s6140_s9  ;;  %v5042_v18 = vmul.f32 %v6066_v53, %v5037_v57 }
0x4a89   :  { %v5054_v45 = vadd.f32 %v5049_v60, %v5042_v18 }
0x4a8a   :  { %v5039_v43 = vpop.permute.xlu1 %5038 }
0x4a8b   :  { %v5043_v59 = vmul.f32 %v6068_v29, %v5039_v43  ;;  %v5076_v10 = vmul.f32 %v5054_v45, %v7416_v3 }
0x4a8d   :  { %v5055_v8 = vadd.f32 %v5051_v56, %v5043_v59 }
0x4a8f   :  { %v5077_v26 = vmul.f32 %v5055_v8, %v7420_v23 }
0x4af5   :  { %v5091_v1 = vpop.permute.xlu1 %5090 }
0x4af6   :  { %v7478_v55 = vadd.f32 %v5091_v1, %v5076_v10 }
0x4af8   :  { %6069 = vtanh.f32 %v7478_v55 }
0x4af9   :  { %v5093_v27 = vpop.permute.xlu0 %5092 }
0x4afa   :  { %v7482_v33 = vadd.f32 %v5093_v27, %v5077_v26 }
0x4afc   :  { %6071 = vtanh.f32 %v7482_v33 }
0x4b05   :  { %v6070_v2 = vpop.eup %6069 }
0x4b06   :  { %5102 = vrot.lane.b32.xlu1 %v6070_v2, %s6139_s8 }
0x4b09   :  { %v6072_v36 = vpop.eup %6071 }
0x4b0a   :  { %5104 = vrot.lane.b32.xlu0 %v6072_v36, %s6139_s8 }
0x4b78   :  { %v5103_v24 = vpop.permute.xlu1 %5102 }
0x4b79   :  { %v5108_v3 = vmul.f32 %v6066_v53, %v5103_v24 }
0x4b7b   :  { %5111 = vst.msk [vmem:[#allocation4 + $0x30] sm:$0xff] %vm66_vm0, %v5108_v3  ;;  %5572 = vmatmul.mubr.msk.f32.vlgmr.msra.gmra.mxu0 %vm66_vm0, %v5108_v3 }
0x4b7c   :  { %v5105_v7 = vpop.permute.xlu0 %5104  ;;  %5196 = vmatprep.mubr.f32.mxu0 %v6138_v17 }
0x4b7d   :  { %v7490_v23 = vmul.f32 %v6068_v29, %v5105_v7 }
0x4b7f   :  { %5573 = vmatmul.mubr.msk.f32.gmra.mxu0 %vm66_vm0, %v7490_v23 }
0x4c3b   :  { %v5192_v25 = vpop.f32.mrf.mxu0 }
0x4c3c   :  { %v7498_v37 = vadd.f32 %v5192_v25, %v2952_v47 }
0x4c3d   :  { %v5194_v39 = vpop.f32.mrf.mxu0 }
0x4c3e   :  { %v5204_v11 = vadd.f32 %v5194_v39, %v2954_v35  ;;  %v5576_v56 = vmul.f32 -1.442695, %v7498_v37 }
0x4c3f   :  { %v5198_v17 = vpop.f32.mrf.mxu0 }
0x4c40   :  { %v5205_v21 = vadd.f32 %v5198_v17, %v2958_v38  ;;  %v5207_v9 = vsel %vm396_vm1, %v5204_v11, -inf }
0x4c41   :  { %5208 = vmax.xlane.f32.xlu1 %v5207_v9  ;;  %v5200_v61 = vpop.f32.mrf.mxu0 }
0x4c42   :  { %v5206_v15 = vadd.f32 %v5200_v61, %v2960_v19  ;;  %v5577_v59 = vmul.f32 -1.442695, %v5205_v21 }
0x4c44   :  { %v5210_v20 = vsel %vm396_vm1, %v5206_v15, -inf }
0x4c45   :  { %5211 = vmax.xlane.f32.xlu0 %v5210_v20 }
0x4cca   :  { %v5209_v62 = vpop.xlane.xlu1 %5208 }
0x4ccb   :  { %v5213_v63 = vsub.f32 %v5204_v11, %v5209_v62 }
0x4ccd   :  { %v5215_v50 = vmul.f32 1.442695, %v5213_v63 }
0x4cce   :  { %v5212_v49 = vpop.xlane.xlu0 %5211 }
0x4ccf   :  { %6073 = vpow2.f32 %v5215_v50  ;;  %v5214_v34 = vsub.f32 %v5206_v15, %v5212_v49 }
0x4cd1   :  { %v5217_v12 = vmul.f32 1.442695, %v5214_v34 }
0x4cd3   :  { %6075 = vpow2.f32 %v5217_v12 }
0x4cdc   :  { %v6074_v51 = vpop.eup %6073 }
0x4cdd   :  { %5703 = vmatprep.mubr.msk.f32.mxu1 %vm396_vm1, %v6074_v51 }
0x4ce0   :  { %v6076_v14 = vpop.eup %6075 }
0x4ce1   :  { %5704 = vmatmul.mubr.msk.f32.vlgmr.msra.gmra.mxu1 %vm396_vm1, %v6076_v14 }
0x4da1   :  { %v5705_v16 = vpop.f32.mrf.mxu1 }
0x4da2   :  { %5304 = vrot.lane.b32.xlu0 %v5705_v16, %s6139_s8 }
0x4da3   :  { %v5291_v30 = vpop.f32.mrf.mxu1 }
0x4da4   :  { %5302 = vrot.lane.b32.xlu1 %v5291_v30, %s6139_s8 }
0x4e14   :  { %v5305_v6 = vpop.permute.xlu0 %5304 }
0x4e15   :  { %6077 = vrcp.f32 %v5305_v6 }
0x4e16   :  { %v5303_v52 = vpop.permute.xlu1 %5302 }
0x4e17   :  { %6079 = vrcp.f32 %v5303_v52 }
0x4e18   :  { %6081 = vtanh.f32 %v5205_v21 }
0x4e19   :  { %6083 = vtanh.f32 %v7498_v37 }
0x4e1a   :  { %6085 = vpow2.f32 %v5577_v59 }
0x4e1b   :  { %6087 = vpow2.f32 %v5576_v56 }
0x4e22   :  { %v6078_v53 = vpop.eup %6077 }
0x4e23   :  { %v5311_v48 = vmul.f32 %v6078_v53, %v5705_v16 }
0x4e24   :  { %v6080_v4 = vpop.eup %6079 }
0x4e25   :  { %v5313_v40 = vsub.f32 1.0, %v5311_v48  ;;  %v5309_v42 = vmul.f32 %v6080_v4, %v5291_v30  ;;  %v6082_v46 = vpop.eup %6081 }
0x4e26   :  { %v6084_v43 = vpop.eup %6083 }
0x4e27   :  { %5332 = vrot.lane.b32.xlu1 %v5313_v40, %s6140_s9  ;;  %v5312_v29 = vsub.f32 1.0, %v5309_v42  ;;  %v6086_v8 = vpop.eup %6085 }
0x4e28   :  { %v5321_v10 = vadd.f32 1.0, %v6086_v8  ;;  %v6088_v1 = vpop.eup %6087 }
0x4e29   :  { %5330 = vrot.lane.b32.xlu0 %v5312_v29, %s6140_s9  ;;  %v5320_v26 = vadd.f32 1.0, %v6088_v1 }
0x4e2a   :  { %6089 = vrcp.f32 %v5321_v10 }
0x4e2b   :  { %6091 = vrcp.f32 %v5320_v26 }
0x4e37   :  { %v6090_v27 = vpop.eup %6089 }
0x4e38   :  { %v6092_v7 = vpop.eup %6091 }
0x4e99   :  { %v5333_v44 = vpop.permute.xlu1 %5332 }
0x4e9a   :  { %v5337_v0 = vmul.f32 %v5333_v44, %v5311_v48 }
0x4e9b   :  { %v5331_v41 = vpop.permute.xlu0 %5330 }
0x4e9c   :  { %v5336_v5 = vmul.f32 %v5331_v41, %v5309_v42  ;;  %5364 = vrot.lane.b32.xlu1 %v5337_v0, %s6141_s10  ;;  %v5349_v45 = vsub.f32 %v5311_v48, %v5337_v0  ;;  %v5361_v36 = vmul.f32 %v6090_v27, %v5337_v0 }
0x4e9e   :  { %5362 = vrot.lane.b32.xlu0 %v5336_v5, %s6141_s10  ;;  %v5360_v35 = vmul.f32 %v6092_v7, %v5336_v5  ;;  %v5348_v11 = vsub.f32 %v5309_v42, %v5336_v5 }
0x4ea2   :  { %5386 = vrot.lane.b32.xlu0 %v6082_v46, %s6139_s8 }
0x4f0e   :  { %v5365_v32 = vpop.permute.xlu1 %5364 }
0x4f0f   :  { %v5369_v57 = vsub.f32 %v5313_v40, %v5365_v32 }
0x4f10   :  { %v5363_v18 = vpop.permute.xlu0 %5362 }
0x4f11   :  { %v5368_v60 = vsub.f32 %v5312_v29, %v5363_v18  ;;  %5374 = vrot.lane.b32.xlu1 %v5369_v57, %s6140_s9 }
0x4f13   :  { %5372 = vrot.lane.b32.xlu0 %v5368_v60, %s6140_s9 }
0x4f14   :  { %v5387_v2 = vpop.permute.xlu0 %5386 }
0x4f15   :  { %5342 = vrot.lane.b32.xlu1 %v5337_v0, %s6140_s9 }
0x4f17   :  { %5384 = vrot.lane.b32.xlu0 %v6084_v43, %s6139_s8 }
0x4f19   :  { %5354 = vrot.lane.b32.xlu1 %v5349_v45, %s6140_s9 }
0x4f1b   :  { %5340 = vrot.lane.b32.xlu0 %v5336_v5, %s6140_s9 }
0x4f83   :  { %v5375_v24 = vpop.permute.xlu1 %5374 }
0x4f84   :  { %v5379_v3 = vadd.f32 %v5375_v24, %v5361_v36 }
0x4f85   :  { %v5373_v47 = vpop.permute.xlu0 %5372 }
0x4f86   :  { %v5391_v25 = vmul.f32 %v5387_v2, %v5379_v3  ;;  %v5378_v39 = vadd.f32 %v5373_v47, %v5360_v35 }
0x4f87   :  { %v5343_v17 = vpop.permute.xlu1 %5342 }
0x4f88   :  { %5396 = vrot.lane.b32.xlu1 %v5391_v25, %s6140_s9  ;;  %v5347_v21 = vmul.f32 %v6090_v27, %v5343_v17 }
0x4f89   :  { %v5385_v37 = vpop.permute.xlu0 %5384 }
0x4f8a   :  { %v5390_v38 = vmul.f32 %v5385_v37, %v5378_v39 }
0x4f8b   :  { %v5355_v19 = vpop.permute.xlu1 %5354 }
0x4f8c   :  { %5394 = vrot.lane.b32.xlu0 %v5390_v38, %s6140_s9  ;;  %5352 = vrot.lane.b32.xlu1 %v5348_v11, %s6140_s9  ;;  %v5359_v9 = vadd.f32 %v5355_v19, %v5347_v21 }
0x4f8d   :  { %v5341_v15 = vpop.permute.xlu0 %5340 }
0x4f8e   :  { %v5381_v61 = vmul.f32 %v5359_v9, %v7482_v33  ;;  %v5346_v63 = vmul.f32 %v6092_v7, %v5341_v15 }
0x4f90   :  { %3593 = vrot.lane.b32.xlu0 %v7103_v22, %s6140_s9 }
0x4f94   :  { %4201 = vrot.lane.b32.xlu0 %v7250_v28, %s6140_s9 }
0x4f98   :  { %4809 = vrot.lane.b32.xlu0 %v7429_v13, %s6140_s9 }
0x4ffa   :  { %v5397_v20 = vpop.permute.xlu1 %5396 }
0x4ffb   :  { %v5401_v62 = vadd.f32 %v5397_v20, %v5381_v61 }
0x4ffd   :  { %6093 = vtanh.f32 %v5401_v62 }
0x4ffe   :  { %v5395_v50 = vpop.permute.xlu0 %5394  ;;  %v5353_v49 = vpop.permute.xlu1 %5352 }
0x4fff   :  { %v5358_v22 = vadd.f32 %v5353_v49, %v5346_v63 }
0x5001   :  { %v5380_v28 = vmul.f32 %v5358_v22, %v7478_v55 }
0x5002   :  { %v3594_v34 = vpop.permute.xlu0 %3593 }
0x5003   :  { %v5400_v12 = vadd.f32 %v5395_v50, %v5380_v28  ;;  %3596 = vst.msk [vmem:[#allocation4 + $0x8] sm:$0xff] %vm3291_vm2, %v3594_v34 }
0x5005   :  { %6095 = vtanh.f32 %v5400_v12 }
0x5006   :  { %v4202_v13 = vpop.permute.xlu0 %4201 }
0x5007   :  { %4204 = vst.msk [vmem:[#allocation4 + $0x18] sm:$0xff] %vm3291_vm2, %v4202_v13 }
0x500a   :  { %v6094_v33 = vpop.eup %6093  ;;  %v4810_v51 = vpop.permute.xlu0 %4809 }
0x500b   :  { %4812 = vst.msk [vmem:[#allocation4 + $0x28] sm:$0xff] %vm3291_vm2, %v4810_v51  ;;  %5408 = vrot.lane.b32.xlu1 %v6094_v33, %s6139_s8 }
0x500f   :  { %3288 = vrot.lane.b32.xlu1 %v7043_v31, %s6140_s9 }
0x5012   :  { %v6096_v14 = vpop.eup %6095 }
0x5013   :  { %3897 = vrot.lane.b32.xlu1 %v7163_v58, %s6140_s9  ;;  %5406 = vrot.lane.b32.xlu0 %v6096_v14, %s6139_s8  ;;  %s5426_s8 = sshll.u32 %s6142_s2, 4  ;;  %s5427_s8 = int_to_ptr.vmem [resolvable:$true] %s5426_s8 }
0x5014   :  { %p6121_p1 = scmp.lt.s32.totalorder %s5427_s8, %s5427_s8 }
0x5017   :  { %4505 = vrot.lane.b32.xlu1 %v7369_v54, %s6140_s9 }
0x501b   :  { %5113 = vrot.lane.b32.xlu1 %v7490_v23, %s6140_s9 }
0x507d   :  { %v5409_v55 = vpop.permute.xlu1 %5408 }
0x507e   :  { %v5413_v16 = vmul.f32 %v6090_v27, %v5409_v55 }
0x5080   :  { %5417 = vrot.lane.b32.xlu0 %v5413_v16, %s6140_s9  ;;  %s6116_s9 = scalar_lea.vmem %s5427_s8, 1024 }
0x5081   :  { %v3289_v30 = vpop.permute.xlu1 %3288  ;;  %p6117_p0 = scmp.ne.s32.totalorder %s5427_s8, %s6116_s9  ;;  %p6122_p2 = scmp.lt.s32.totalorder %s6116_s9, %s6116_s9 }
0x5082   :  { %3292 = vst.msk [vmem:[#allocation4] sm:$0xff] %vm3291_vm2, %v3289_v30 }
0x5083   :  { %p6123_p3 = por %p6122_p2, %p6121_p1 }
0x5085   :  { %v5407_v31 = vpop.permute.xlu0 %5406  ;;  %v3898_v6 = vpop.permute.xlu1 %3897  ;;  %p6124_p4 = pnand %p6123_p3, %p6117_p0 }
0x5086   :  { %v5412_v52 = vmul.f32 %v6092_v7, %v5407_v31  ;;  %3900 = vst.msk [vmem:[#allocation4 + $0x10] sm:$0xff] %vm3291_vm2, %v3898_v6 }
0x5088   :  { %5415 = vst.msk [vmem:[#allocation4 + $0x38] sm:$0xff] %vm66_vm0, %v5412_v52 }
0x5089   :  { %v4506_v58 = vpop.permute.xlu1 %4505 }
0x508a   :  { %4508 = vst.msk [vmem:[#allocation4 + $0x20] sm:$0xff] %vm3291_vm2, %v4506_v58 }
0x508d   :  { %v5114_v54 = vpop.permute.xlu1 %5113 }
0x508e   :  { %5116 = vst.msk [vmem:[#allocation4 + $0x30] sm:$0xff] %vm3291_vm2, %v5114_v54 }
0x50f2   :  { %v5418_v23 = vpop.permute.xlu0 %5417 }
0x50f3   :  { %5420 = vst.msk [vmem:[#allocation4 + $0x38] sm:$0xff] %vm3291_vm2, %v5418_v23 }
0x50f4   :  { %6127 = shalt.err (!%p6124_p4)
}
0x50f5   :  { %s6143_s10 = smov 128   ;;  %s6144_s16 = smov 8  }
0x50f6   :  { %5432 = dma.vmem_to_hbm [thread:$0]  %s5427_s8, 1024, %s7562_s5, [#allocation5], %s6143_s10, %s6143_s10, %s6144_s16  }
0x50f7   :  { %6136 = dma.done.wait [#allocation5], 1024  }
0x50f8   :  { %6137 = vsyncadd [#allocation5], 4294966272 }
0x50f9   :  { %5436 = vsyncpa [#allocation5], 1 }

</bundles_post_ra>
